<compile_context>
chip_gen: v6e
topology: v6e:2x2x1
jax: 0.10.0
libtpu: 0.0.40
codegen_flags: <defaults>
</compile_context>

<pallas_src>
import jax
import jax.numpy as jnp
from jax.experimental import pallas as pl
from jax.experimental.pallas import tpu as pltpu

EPS = 1e-5                    # PyTorch BatchNorm2d default
MXU_DTYPE = jnp.bfloat16      # operand dtype for conv1 / shortcut matmuls


def _make_kernel(N, H, W, Cin, Chid, Cout, has_sc_conv):
    R = N * H                       # folded row count (n, h)
    WC_h = W * Chid                 # folded lane count for hidden activations
    WC_o = W * Cout                 # folded lane count for output activations
    inv_count = 1.0 / float(R * W)  # 1 / (N*H*W) samples per channel (stride=1)

    def _group_allsum(v, c):
        """v: (1, W*c). Return (1, W*c) where every lane holds the sum over the
        W lanes sharing its channel.  Exact f32 roll-reduce on the XLU; the
        result is already broadcast back to the folded lane layout."""
        wc = v.shape[1]
        if W & (W - 1) == 0:                      # power-of-two W: log tree
            shift = c
            while shift < wc:
                v = v + pltpu.roll(v, shift=shift, axis=1)
                shift *= 2
            return v
        acc = v                                   # generic fallback
        for w in range(1, W):
            acc = acc + pltpu.roll(v, shift=w * c, axis=1)
        return acc

    def bn_train(act, g_t, b_t, c):
        """Training-mode BatchNorm on a lane-folded (rows, W*c) slab.
        Single pass over the activations (sum and sum-of-squares together);
        g_t / b_t are gamma / beta already tiled across W on the lane axis."""
        s1 = jnp.sum(act, axis=0, keepdims=True)          # (1, W*c)
        s2 = jnp.sum(act * act, axis=0, keepdims=True)    # (1, W*c)
        mean_f = _group_allsum(s1, c) * inv_count         # per-channel, lane-tiled
        ex2_f = _group_allsum(s2, c) * inv_count
        var_f = ex2_f - mean_f * mean_f                   # biased variance
        return (act - mean_f) * (jax.lax.rsqrt(var_f + EPS) * g_t) + b_t

    def kernel(*refs):
        if has_sc_conv:
            (xf_ref, w1_ref, g1_ref, b1_ref, w2_ref, g2_ref, b2_ref,
             w3_ref, g3_ref, b3_ref, ws_ref, gs_ref, bs_ref,
             out_ref, pad_ref) = refs
        else:
            (xf_ref, w1_ref, g1_ref, b1_ref, w2_ref, g2_ref, b2_ref,
             w3_ref, g3_ref, b3_ref, out_ref, pad_ref) = refs

        xf = xf_ref[...]                     # (R, W*Cin) f32, lane-folded
        xb = xf.astype(MXU_DTYPE)            # bf16 MXU operand, f32 accumulate

        # ---- conv1 (1x1 expand; block-diagonal folded matmul) -> BN1 -> ReLU
        h1 = jnp.dot(xb, w1_ref[...], preferred_element_type=jnp.float32)
        h1 = jnp.maximum(bn_train(h1, g1_ref[...], b1_ref[...], Chid), 0.0)

        # ---- conv2 (3x3 depthwise, stride 1, pad 1) -> BN2 -> ReLU
        # H halo: 2 zero border rows in a small lane-dense scratch (no full
        # zero fill).  W halo: lane masks after pltpu.roll shifts.
        pad_ref[0:1, :] = jnp.zeros((1, WC_h), jnp.float32)
        pad_ref[R + 1:R + 2, :] = jnp.zeros((1, WC_h), jnp.float32)
        pad_ref[1:R + 1, :] = h1

        w2 = w2_ref[...]                                            # (9, W*Chid)
        row = jax.lax.broadcasted_iota(jnp.int32, (R, 1), 0) % H    # h position
        lane = jax.lax.broadcasted_iota(jnp.int32, (1, WC_h), 1)    # w*Chid + c
        row_ok = (row >= 1, None, row < H - 1)                      # dh = -1,0,+1
        lane_ok = (lane >= Chid, None, lane < (W - 1) * Chid)       # dw = -1,0,+1
        w_shift = (Chid, None, WC_h - Chid)                         # lane rolls

        acc = None
        for kh in range(3):                        # 3 slab reads ...
            slab = h1 if kh == 1 else pad_ref[kh:kh + R, :]
            for kw in range(3):                    # ... x (roll + mask + fma)
                tap = slab if kw == 1 else pltpu.roll(
                    slab, shift=w_shift[kw], axis=1)
                rm, lm = row_ok[kh], lane_ok[kw]
                if rm is not None and lm is not None:
                    mask = jnp.logical_and(rm, lm)
                else:
                    mask = rm if rm is not None else lm
                if mask is not None:
                    tap = jnp.where(mask, tap, 0.0)
                k = 3 * kh + kw
                term = tap * w2[k:k + 1, :]
                acc = term if acc is None else acc + term

        h2 = jnp.maximum(bn_train(acc, g2_ref[...], b2_ref[...], Chid), 0.0)

        # ---- conv3 (1x1 project; folded matmul, f32 operands) -> BN3
        h3 = jnp.dot(h2, w3_ref[...], preferred_element_type=jnp.float32)
        h3 = bn_train(h3, g3_ref[...], b3_ref[...], Cout)            # (R, W*Cout)

        # ---- shortcut
        if has_sc_conv:               # stride == 1 and Cin != Cout: conv + BN
            sc = jnp.dot(xb, ws_ref[...], preferred_element_type=jnp.float32)
            sc = bn_train(sc, gs_ref[...], bs_ref[...], Cout)
        else:                         # identity (Cin == Cout)
            sc = xf

        out_ref[...] = h3 + sc        # (R, W*Cout) = (32, 128): lane-dense store

    return kernel


def mobilenetv2_bottleneck(x, params, *, expansion_factor, out_channels, stride):
    """x is NHWC; returns NHWC.  Matches the PyTorch module's train-mode forward."""
    N, H, W, Cin = x.shape
    Chid = Cin * expansion_factor
    Cout = out_channels
    if stride != 1:
        # The PyTorch module's residual `x + shortcut` only type-checks for
        # stride == 1.  TODO(synk): a stride=2 (non-residual) variant would need
        # strided-H tap slices; it is unreachable through the reference module.
        raise NotImplementedError("MobileNetV2Bottleneck residual requires stride == 1")
    has_sc_conv = Cin != Cout
    R, WC_in, WC_h, WC_o = N * H, W * Cin, W * Chid, W * Cout

    f32 = jnp.float32
    eye_w = jnp.eye(W, dtype=f32)

    # Lane-folded input: (N*H, W*Cin); channels stay fused with W on the lane axis.
    xf = x.reshape(R, WC_in).astype(f32)
    # 1x1 convs become block-diagonal matmuls in the folded layout.
    w1b = jnp.kron(eye_w, params["w1"].astype(f32)).astype(MXU_DTYPE)
    w3b = jnp.kron(eye_w, params["w3"].astype(f32))                  # f32 (see TODO)
    # Depthwise weights / BN affine params tiled across W to broadcast on lanes.
    w2t = jnp.tile(params["w2"].astype(f32), (1, W))
    g1t, b1t = jnp.tile(params["g1"], (1, W)), jnp.tile(params["b1"], (1, W))
    g2t, b2t = jnp.tile(params["g2"], (1, W)), jnp.tile(params["b2"], (1, W))
    g3t, b3t = jnp.tile(params["g3"], (1, W)), jnp.tile(params["b3"], (1, W))

    args = [xf, w1b, g1t, b1t, w2t, g2t, b2t, w3b, g3t, b3t]
    if has_sc_conv:
        wsb = jnp.kron(eye_w, params["ws"].astype(f32)).astype(MXU_DTYPE)
        gst, bst = jnp.tile(params["gs"], (1, W)), jnp.tile(params["bs"], (1, W))
        args += [wsb, gst, bst]

    kernel = _make_kernel(N, H, W, Cin, Chid, Cout, has_sc_conv)

    flops = (2 * R * WC_in * WC_h + 2 * R * WC_h * WC_o
             + (2 * R * WC_in * WC_o if has_sc_conv else 0)
             + 2 * 9 * R * WC_h + 14 * R * WC_h + 10 * R * WC_o)
    bytes_accessed = sum(int(a.size) * a.dtype.itemsize for a in args) + R * WC_o * 4
    cost = pl.CostEstimate(flops=int(flops), transcendentals=4 * WC_h,
                           bytes_accessed=int(bytes_accessed))

    out2d = pl.pallas_call(
        kernel,
        out_shape=jax.ShapeDtypeStruct((R, WC_o), jnp.float32),
        grid_spec=pltpu.PrefetchScalarGridSpec(
            num_scalar_prefetch=0,
            grid=(1,),
            in_specs=[pl.BlockSpec(a.shape, lambda i: (0, 0)) for a in args],
            out_specs=pl.BlockSpec((R, WC_o), lambda i: (0, 0)),
            scratch_shapes=[pltpu.VMEM((R + 2, WC_h), jnp.float32)],  # H-halo only
        ),
        compiler_params=pltpu.CompilerParams(
            dimension_semantics=("arbitrary",),
            vmem_limit_bytes=32 * 1024 * 1024,
        ),
        cost_estimate=cost,
    )(*args)

    return out2d.reshape(N, H, W, Cout)


def ref_forward(x, p, *, expansion_factor, out_channels, stride):
    """Pure-JAX reference (train-mode BN, independent depthwise via lax.conv).

    conv1 / shortcut use the same bf16-operand, f32-accumulate precision as the
    kernel's MXU matmuls so both paths are numerically comparable."""
    N, H, W, Cin = x.shape
    Chid = Cin * expansion_factor
    has_sc_conv = (stride == 1 and Cin != out_channels)

    def bn(h, g, b):
        m = h.mean(axis=(0, 1, 2), keepdims=True)
        v = ((h - m) ** 2).mean(axis=(0, 1, 2), keepdims=True)
        return (h - m) * jax.lax.rsqrt(v + EPS) * g.reshape(1, 1, 1, -1) \
            + b.reshape(1, 1, 1, -1)

    def conv1x1_mxu(h, w):
        return jnp.einsum("nhwc,cd->nhwd", h.astype(MXU_DTYPE),
                          w.astype(MXU_DTYPE),
                          preferred_element_type=jnp.float32)

    h = jax.nn.relu(bn(conv1x1_mxu(x, p["w1"]), p["g1"], p["b1"]))
    wdw = p["w2"].reshape(3, 3, 1, Chid)            # HWIO, groups = Chid
    h = jax.lax.conv_general_dilated(
        h, wdw, window_strides=(stride, stride), padding=((1, 1), (1, 1)),
        dimension_numbers=("NHWC", "HWIO", "NHWC"), feature_group_count=Chid)
    h = jax.nn.relu(bn(h, p["g2"], p["b2"]))
    h = bn(jnp.einsum("nhwc,cd->nhwd", h, p["w3"],
                      preferred_element_type=jnp.float32), p["g3"], p["b3"])
    if has_sc_conv:
        sc = bn(conv1x1_mxu(x, p["ws"]), p["gs"], p["bs"])
    else:
        sc = x
    return h + sc


if __name__ == "__main__":
    # module config: MobileNetV2Bottleneck(in=4, out=8, expansion=6, stride=1)
    N, H, W = 2, 16, 16
    Cin, Cout, expansion, stride = 4, 8, 6, 1
    Chid = Cin * expansion

    key = jax.random.PRNGKey(0)
    ks = jax.random.split(key, 16)
    x = jax.random.normal(ks[0], (N, H, W, Cin), jnp.float32)

    params = {
        # conv1: PyTorch (Chid, Cin, 1, 1) -> matmul layout (Cin, Chid)
        "w1": 0.2 * jax.random.normal(ks[1], (Cin, Chid), jnp.float32),
        "g1": 1.0 + 0.1 * jax.random.normal(ks[2], (1, Chid), jnp.float32),
        "b1": 0.1 * jax.random.normal(ks[3], (1, Chid), jnp.float32),
        # conv2 depthwise: PyTorch (Chid, 1, 3, 3) -> (kh*3+kw, Chid)
        "w2": 0.2 * jax.random.normal(ks[4], (9, Chid), jnp.float32),
        "g2": 1.0 + 0.1 * jax.random.normal(ks[5], (1, Chid), jnp.float32),
        "b2": 0.1 * jax.random.normal(ks[6], (1, Chid), jnp.float32),
        # conv3: PyTorch (Cout, Chid, 1, 1) -> (Chid, Cout)
        "w3": 0.2 * jax.random.normal(ks[7], (Chid, Cout), jnp.float32),
        "g3": 1.0 + 0.1 * jax.random.normal(ks[8], (1, Cout), jnp.float32),
        "b3": 0.1 * jax.random.normal(ks[9], (1, Cout), jnp.float32),
        # shortcut 1x1 conv (stride==1 and Cin != Cout)
        "ws": 0.2 * jax.random.normal(ks[10], (Cin, Cout), jnp.float32),
        "gs": 1.0 + 0.1 * jax.random.normal(ks[11], (1, Cout), jnp.float32),
        "bs": 0.1 * jax.random.normal(ks[12], (1, Cout), jnp.float32),
    }

    out = mobilenetv2_bottleneck(
        x, params, expansion_factor=expansion, out_channels=Cout, stride=stride)
    out = jax.block_until_ready(out)

    ref = ref_forward(
        x, params, expansion_factor=expansion, out_channels=Cout, stride=stride)
    ref = jax.block_until_ready(ref)

    assert out.shape == (N, H, W, Cout), out.shape
    assert jnp.allclose(out, ref, atol=1e-4, rtol=1e-4), \
        float(jnp.max(jnp.abs(out - ref)))
    print("KERNEL_OK")
</pallas_src>

<mosaic_0001>
module attributes {stable_mosaic.version = 11 : i64} {
  func.func @kernel(%arg0: i32, %arg1: memref<32x64xf32, #tpu.memory_space<vmem>>, %arg2: memref<64x384xbf16, #tpu.memory_space<vmem>>, %arg3: memref<1x384xf32, #tpu.memory_space<vmem>>, %arg4: memref<1x384xf32, #tpu.memory_space<vmem>>, %arg5: memref<9x384xf32, #tpu.memory_space<vmem>>, %arg6: memref<1x384xf32, #tpu.memory_space<vmem>>, %arg7: memref<1x384xf32, #tpu.memory_space<vmem>>, %arg8: memref<384x128xf32, #tpu.memory_space<vmem>>, %arg9: memref<1x128xf32, #tpu.memory_space<vmem>>, %arg10: memref<1x128xf32, #tpu.memory_space<vmem>>, %arg11: memref<64x128xbf16, #tpu.memory_space<vmem>>, %arg12: memref<1x128xf32, #tpu.memory_space<vmem>>, %arg13: memref<1x128xf32, #tpu.memory_space<vmem>>, %arg14: memref<32x128xf32, #tpu.memory_space<vmem>>, %arg15: memref<34x384xf32, #tpu.memory_space<vmem>>) attributes {dimension_semantics = [#tpu.dimension_semantics<arbitrary>], iteration_bounds = array<i64: 1>, scalar_prefetch = 0 : i64, scratch_operands = 1 : i64, tpu.core_type = #tpu.core_type<tc>, window_params = [{pipeline_mode = #tpu.pipeline_mode<synchronous>, transform_indices = @transform_0, window_bounds = array<i64: 32, 64>}, {pipeline_mode = #tpu.pipeline_mode<synchronous>, transform_indices = @transform_1, window_bounds = array<i64: 64, 384>}, {pipeline_mode = #tpu.pipeline_mode<synchronous>, transform_indices = @transform_2, window_bounds = array<i64: 1, 384>}, {pipeline_mode = #tpu.pipeline_mode<synchronous>, transform_indices = @transform_3, window_bounds = array<i64: 1, 384>}, {pipeline_mode = #tpu.pipeline_mode<synchronous>, transform_indices = @transform_4, window_bounds = array<i64: 9, 384>}, {pipeline_mode = #tpu.pipeline_mode<synchronous>, transform_indices = @transform_5, window_bounds = array<i64: 1, 384>}, {pipeline_mode = #tpu.pipeline_mode<synchronous>, transform_indices = @transform_6, window_bounds = array<i64: 1, 384>}, {pipeline_mode = #tpu.pipeline_mode<synchronous>, transform_indices = @transform_7, window_bounds = array<i64: 384, 128>}, {pipeline_mode = #tpu.pipeline_mode<synchronous>, transform_indices = @transform_8, window_bounds = array<i64: 1, 128>}, {pipeline_mode = #tpu.pipeline_mode<synchronous>, transform_indices = @transform_9, window_bounds = array<i64: 1, 128>}, {pipeline_mode = #tpu.pipeline_mode<synchronous>, transform_indices = @transform_10, window_bounds = array<i64: 64, 128>}, {pipeline_mode = #tpu.pipeline_mode<synchronous>, transform_indices = @transform_11, window_bounds = array<i64: 1, 128>}, {pipeline_mode = #tpu.pipeline_mode<synchronous>, transform_indices = @transform_12, window_bounds = array<i64: 1, 128>}, {pipeline_mode = #tpu.pipeline_mode<synchronous>, transform_indices = @transform_13, window_bounds = array<i64: 32, 128>}]} {
    %c0 = arith.constant 0 : index
    %c0_0 = arith.constant 0 : index
    %0 = vector.load %arg1[%c0, %c0_0] : memref<32x64xf32, #tpu.memory_space<vmem>>, vector<32x64xf32>
    %1 = arith.truncf %0 : vector<32x64xf32> to vector<32x64xbf16>
    %c0_1 = arith.constant 0 : index
    %c0_2 = arith.constant 0 : index
    %2 = vector.load %arg2[%c0_1, %c0_2] : memref<64x384xbf16, #tpu.memory_space<vmem>>, vector<64x384xbf16>
    %cst = arith.constant dense<0.000000e+00> : vector<32x384xf32>
    %3 = tpu.matmul %1, %2, %cst {dimension_numbers = #tpu.dot_dimension_numbers<[1], [0], [0], [1], [0, 0, 1, 1], [], []>} : vector<32x64xbf16>, vector<64x384xbf16>, vector<32x384xf32> -> vector<32x384xf32>
    %c0_3 = arith.constant 0 : index
    %c0_4 = arith.constant 0 : index
    %4 = vector.load %arg3[%c0_3, %c0_4] : memref<1x384xf32, #tpu.memory_space<vmem>>, vector<1x384xf32>
    %c0_5 = arith.constant 0 : index
    %c0_6 = arith.constant 0 : index
    %5 = vector.load %arg4[%c0_5, %c0_6] : memref<1x384xf32, #tpu.memory_space<vmem>>, vector<1x384xf32>
    %cst_7 = arith.constant dense<0.000000e+00> : vector<384xf32>
    %6 = vector.multi_reduction <add>, %3, %cst_7 [0] : vector<32x384xf32> to vector<384xf32>
    %7 = vector.shape_cast %6 : vector<384xf32> to vector<1x384xf32>
    %8 = arith.mulf %3, %3 : vector<32x384xf32>
    %cst_8 = arith.constant dense<0.000000e+00> : vector<384xf32>
    %9 = vector.multi_reduction <add>, %8, %cst_8 [0] : vector<32x384xf32> to vector<384xf32>
    %10 = vector.shape_cast %9 : vector<384xf32> to vector<1x384xf32>
    %c24_i32 = arith.constant 24 : i32
    %11 = tpu.dynamic_rotate %7 by %c24_i32 dim 1 : vector<1x384xf32>, i32 -> vector<1x384xf32>
    %12 = arith.addf %7, %11 : vector<1x384xf32>
    %c48_i32 = arith.constant 48 : i32
    %13 = tpu.dynamic_rotate %12 by %c48_i32 dim 1 : vector<1x384xf32>, i32 -> vector<1x384xf32>
    %14 = arith.addf %12, %13 : vector<1x384xf32>
    %c96_i32 = arith.constant 96 : i32
    %15 = tpu.dynamic_rotate %14 by %c96_i32 dim 1 : vector<1x384xf32>, i32 -> vector<1x384xf32>
    %16 = arith.addf %14, %15 : vector<1x384xf32>
    %c192_i32 = arith.constant 192 : i32
    %17 = tpu.dynamic_rotate %16 by %c192_i32 dim 1 : vector<1x384xf32>, i32 -> vector<1x384xf32>
    %18 = arith.addf %16, %17 : vector<1x384xf32>
    %cst_9 = arith.constant 0.001953125 : f32
    %19 = vector.broadcast %cst_9 : f32 to vector<1x384xf32>
    %20 = arith.mulf %18, %19 : vector<1x384xf32>
    %c24_i32_10 = arith.constant 24 : i32
    %21 = tpu.dynamic_rotate %10 by %c24_i32_10 dim 1 : vector<1x384xf32>, i32 -> vector<1x384xf32>
    %22 = arith.addf %10, %21 : vector<1x384xf32>
    %c48_i32_11 = arith.constant 48 : i32
    %23 = tpu.dynamic_rotate %22 by %c48_i32_11 dim 1 : vector<1x384xf32>, i32 -> vector<1x384xf32>
    %24 = arith.addf %22, %23 : vector<1x384xf32>
    %c96_i32_12 = arith.constant 96 : i32
    %25 = tpu.dynamic_rotate %24 by %c96_i32_12 dim 1 : vector<1x384xf32>, i32 -> vector<1x384xf32>
    %26 = arith.addf %24, %25 : vector<1x384xf32>
    %c192_i32_13 = arith.constant 192 : i32
    %27 = tpu.dynamic_rotate %26 by %c192_i32_13 dim 1 : vector<1x384xf32>, i32 -> vector<1x384xf32>
    %28 = arith.addf %26, %27 : vector<1x384xf32>
    %cst_14 = arith.constant 0.001953125 : f32
    %29 = vector.broadcast %cst_14 : f32 to vector<1x384xf32>
    %30 = arith.mulf %28, %29 : vector<1x384xf32>
    %31 = arith.mulf %20, %20 : vector<1x384xf32>
    %32 = arith.subf %30, %31 : vector<1x384xf32>
    %33 = vector.broadcast %20 : vector<1x384xf32> to vector<32x384xf32>
    %34 = arith.subf %3, %33 : vector<32x384xf32>
    %cst_15 = arith.constant 9.99999974E-6 : f32
    %35 = vector.broadcast %cst_15 : f32 to vector<1x384xf32>
    %36 = arith.addf %32, %35 : vector<1x384xf32>
    %37 = math.rsqrt %36 : vector<1x384xf32>
    %38 = arith.mulf %37, %4 : vector<1x384xf32>
    %39 = vector.broadcast %38 : vector<1x384xf32> to vector<32x384xf32>
    %40 = arith.mulf %34, %39 : vector<32x384xf32>
    %41 = vector.broadcast %5 : vector<1x384xf32> to vector<32x384xf32>
    %42 = arith.addf %40, %41 : vector<32x384xf32>
    %cst_16 = arith.constant 0.000000e+00 : f32
    %43 = vector.broadcast %cst_16 : f32 to vector<32x384xf32>
    %44 = arith.maximumf %42, %43 : vector<32x384xf32>
    %cst_17 = arith.constant 0.000000e+00 : f32
    %45 = vector.broadcast %cst_17 : f32 to vector<1x384xf32>
    %c0_18 = arith.constant 0 : index
    %c0_19 = arith.constant 0 : index
    %46 = vector.load %arg15[%c0_18, %c0_19] : memref<34x384xf32, #tpu.memory_space<vmem>>, vector<1x384xf32>
    tpu.vector_store %arg15[%c0_18, %c0_19], %45 {strides = array<i32>} : memref<34x384xf32, #tpu.memory_space<vmem>>, vector<1x384xf32>,
    %cst_20 = arith.constant 0.000000e+00 : f32
    %47 = vector.broadcast %cst_20 : f32 to vector<1x384xf32>
    %c33 = arith.constant 33 : index
    %c0_21 = arith.constant 0 : index
    %48 = vector.load %arg15[%c33, %c0_21] : memref<34x384xf32, #tpu.memory_space<vmem>>, vector<1x384xf32>
    tpu.vector_store %arg15[%c33, %c0_21], %47 {strides = array<i32>} : memref<34x384xf32, #tpu.memory_space<vmem>>, vector<1x384xf32>,
    %c1 = arith.constant 1 : index
    %c0_22 = arith.constant 0 : index
    %49 = vector.load %arg15[%c1, %c0_22] : memref<34x384xf32, #tpu.memory_space<vmem>>, vector<32x384xf32>
    tpu.vector_store %arg15[%c1, %c0_22], %44 {strides = array<i32>} : memref<34x384xf32, #tpu.memory_space<vmem>>, vector<32x384xf32>,
    %c0_23 = arith.constant 0 : index
    %c0_24 = arith.constant 0 : index
    %50 = vector.load %arg5[%c0_23, %c0_24] : memref<9x384xf32, #tpu.memory_space<vmem>>, vector<9x384xf32>
    %51 = tpu.iota {dimensions = array<i32: 0>} : vector<32x1xi32>
    %c16_i32 = arith.constant 16 : i32
    %c0_i32 = arith.constant 0 : i32
    %52 = arith.cmpi eq, %c16_i32, %c0_i32 : i32
    %c1_i32 = arith.constant 1 : i32
    %53 = arith.select %52, %c1_i32, %c16_i32 : i32
    %54 = vector.broadcast %53 : i32 to vector<32x1xi32>
    %55 = arith.remsi %51, %54 : vector<32x1xi32>
    %c0_i32_25 = arith.constant 0 : i32
    %56 = vector.broadcast %c0_i32_25 : i32 to vector<32x1xi32>
    %57 = arith.cmpi ne, %55, %56 : vector<32x1xi32>
    %c0_i32_26 = arith.constant 0 : i32
    %58 = vector.broadcast %c0_i32_26 : i32 to vector<32x1xi32>
    %59 = arith.cmpi slt, %55, %58 : vector<32x1xi32>
    %c0_i32_27 = arith.constant 0 : i32
    %60 = arith.cmpi slt, %53, %c0_i32_27 : i32
    %61 = vector.broadcast %60 : i1 to vector<32x1xi1>
    %62 = vector.broadcast %61 : vector<32x1xi1> to vector<32x1xi1>
    %63 = arith.xori %59, %62 : vector<32x1xi1>
    %64 = arith.andi %63, %57 : vector<32x1xi1>
    %65 = vector.broadcast %53 : i32 to vector<32x1xi32>
    %66 = arith.addi %55, %65 : vector<32x1xi32>
    %67 = arith.select %64, %66, %55 : vector<32x1xi1>, vector<32x1xi32>
    %68 = tpu.iota {dimensions = array<i32: 1>} : vector<1x384xi32>
    %c1_i32_28 = arith.constant 1 : i32
    %69 = vector.broadcast %c1_i32_28 : i32 to vector<32x1xi32>
    %70 = arith.cmpi sge, %67, %69 : vector<32x1xi32>
    %c15_i32 = arith.constant 15 : i32
    %71 = vector.broadcast %c15_i32 : i32 to vector<32x1xi32>
    %72 = arith.cmpi slt, %67, %71 : vector<32x1xi32>
    %c24_i32_29 = arith.constant 24 : i32
    %73 = vector.broadcast %c24_i32_29 : i32 to vector<1x384xi32>
    %74 = arith.cmpi sge, %68, %73 : vector<1x384xi32>
    %c360_i32 = arith.constant 360 : i32
    %75 = vector.broadcast %c360_i32 : i32 to vector<1x384xi32>
    %76 = arith.cmpi slt, %68, %75 : vector<1x384xi32>
    %c0_30 = arith.constant 0 : index
    %c0_31 = arith.constant 0 : index
    %77 = vector.load %arg15[%c0_30, %c0_31] : memref<34x384xf32, #tpu.memory_space<vmem>>, vector<32x384xf32>
    %c24_i32_32 = arith.constant 24 : i32
    %78 = tpu.dynamic_rotate %77 by %c24_i32_32 dim 1 : vector<32x384xf32>, i32 -> vector<32x384xf32>
    %79 = vector.broadcast %70 : vector<32x1xi1> to vector<32x384xi1>
    %80 = vector.broadcast %74 : vector<1x384xi1> to vector<32x384xi1>
    %81 = arith.andi %79, %80 : vector<32x384xi1>
    %cst_33 = arith.constant 0.000000e+00 : f32
    %82 = vector.broadcast %cst_33 : f32 to vector<32x384xf32>
    %83 = arith.select %81, %78, %82 : vector<32x384xi1>, vector<32x384xf32>
    %84 = vector.extract_strided_slice %50 {offsets = [0, 0], sizes = [1, 384], strides = [1, 1]} : vector<9x384xf32> to vector<1x384xf32>
    %85 = vector.broadcast %84 : vector<1x384xf32> to vector<32x384xf32>
    %86 = arith.mulf %83, %85 : vector<32x384xf32>
    %cst_34 = arith.constant 0.000000e+00 : f32
    %87 = vector.shape_cast %70 : vector<32x1xi1> to vector<32x1xi1>
    %88 = vector.broadcast %87 : vector<32x1xi1> to vector<32x384xi1>
    %89 = vector.broadcast %cst_34 : f32 to vector<32x384xf32>
    %90 = arith.select %88, %77, %89 : vector<32x384xi1>, vector<32x384xf32>
    %91 = vector.extract_strided_slice %50 {offsets = [1, 0], sizes = [1, 384], strides = [1, 1]} : vector<9x384xf32> to vector<1x384xf32>
    %92 = vector.broadcast %91 : vector<1x384xf32> to vector<32x384xf32>
    %93 = arith.mulf %90, %92 : vector<32x384xf32>
    %94 = arith.addf %86, %93 : vector<32x384xf32>
    %c360_i32_35 = arith.constant 360 : i32
    %95 = tpu.dynamic_rotate %77 by %c360_i32_35 dim 1 : vector<32x384xf32>, i32 -> vector<32x384xf32>
    %96 = vector.broadcast %70 : vector<32x1xi1> to vector<32x384xi1>
    %97 = vector.broadcast %76 : vector<1x384xi1> to vector<32x384xi1>
    %98 = arith.andi %96, %97 : vector<32x384xi1>
    %cst_36 = arith.constant 0.000000e+00 : f32
    %99 = vector.broadcast %cst_36 : f32 to vector<32x384xf32>
    %100 = arith.select %98, %95, %99 : vector<32x384xi1>, vector<32x384xf32>
    %101 = vector.extract_strided_slice %50 {offsets = [2, 0], sizes = [1, 384], strides = [1, 1]} : vector<9x384xf32> to vector<1x384xf32>
    %102 = vector.broadcast %101 : vector<1x384xf32> to vector<32x384xf32>
    %103 = arith.mulf %100, %102 : vector<32x384xf32>
    %104 = arith.addf %94, %103 : vector<32x384xf32>
    %c24_i32_37 = arith.constant 24 : i32
    %105 = tpu.dynamic_rotate %44 by %c24_i32_37 dim 1 : vector<32x384xf32>, i32 -> vector<32x384xf32>
    %cst_38 = arith.constant 0.000000e+00 : f32
    %106 = vector.shape_cast %74 : vector<1x384xi1> to vector<1x384xi1>
    %107 = vector.broadcast %106 : vector<1x384xi1> to vector<32x384xi1>
    %108 = vector.broadcast %cst_38 : f32 to vector<32x384xf32>
    %109 = arith.select %107, %105, %108 : vector<32x384xi1>, vector<32x384xf32>
    %110 = vector.extract_strided_slice %50 {offsets = [3, 0], sizes = [1, 384], strides = [1, 1]} : vector<9x384xf32> to vector<1x384xf32>
    %111 = vector.broadcast %110 : vector<1x384xf32> to vector<32x384xf32>
    %112 = arith.mulf %109, %111 : vector<32x384xf32>
    %113 = arith.addf %104, %112 : vector<32x384xf32>
    %114 = vector.extract_strided_slice %50 {offsets = [4, 0], sizes = [1, 384], strides = [1, 1]} : vector<9x384xf32> to vector<1x384xf32>
    %115 = vector.broadcast %114 : vector<1x384xf32> to vector<32x384xf32>
    %116 = arith.mulf %44, %115 : vector<32x384xf32>
    %117 = arith.addf %113, %116 : vector<32x384xf32>
    %c360_i32_39 = arith.constant 360 : i32
    %118 = tpu.dynamic_rotate %44 by %c360_i32_39 dim 1 : vector<32x384xf32>, i32 -> vector<32x384xf32>
    %cst_40 = arith.constant 0.000000e+00 : f32
    %119 = vector.shape_cast %76 : vector<1x384xi1> to vector<1x384xi1>
    %120 = vector.broadcast %119 : vector<1x384xi1> to vector<32x384xi1>
    %121 = vector.broadcast %cst_40 : f32 to vector<32x384xf32>
    %122 = arith.select %120, %118, %121 : vector<32x384xi1>, vector<32x384xf32>
    %123 = vector.extract_strided_slice %50 {offsets = [5, 0], sizes = [1, 384], strides = [1, 1]} : vector<9x384xf32> to vector<1x384xf32>
    %124 = vector.broadcast %123 : vector<1x384xf32> to vector<32x384xf32>
    %125 = arith.mulf %122, %124 : vector<32x384xf32>
    %126 = arith.addf %117, %125 : vector<32x384xf32>
    %c2 = arith.constant 2 : index
    %c0_41 = arith.constant 0 : index
    %127 = vector.load %arg15[%c2, %c0_41] : memref<34x384xf32, #tpu.memory_space<vmem>>, vector<32x384xf32>
    %c24_i32_42 = arith.constant 24 : i32
    %128 = tpu.dynamic_rotate %127 by %c24_i32_42 dim 1 : vector<32x384xf32>, i32 -> vector<32x384xf32>
    %129 = vector.broadcast %72 : vector<32x1xi1> to vector<32x384xi1>
    %130 = vector.broadcast %74 : vector<1x384xi1> to vector<32x384xi1>
    %131 = arith.andi %129, %130 : vector<32x384xi1>
    %cst_43 = arith.constant 0.000000e+00 : f32
    %132 = vector.broadcast %cst_43 : f32 to vector<32x384xf32>
    %133 = arith.select %131, %128, %132 : vector<32x384xi1>, vector<32x384xf32>
    %134 = vector.extract_strided_slice %50 {offsets = [6, 0], sizes = [1, 384], strides = [1, 1]} : vector<9x384xf32> to vector<1x384xf32>
    %135 = vector.broadcast %134 : vector<1x384xf32> to vector<32x384xf32>
    %136 = arith.mulf %133, %135 : vector<32x384xf32>
    %137 = arith.addf %126, %136 : vector<32x384xf32>
    %cst_44 = arith.constant 0.000000e+00 : f32
    %138 = vector.shape_cast %72 : vector<32x1xi1> to vector<32x1xi1>
    %139 = vector.broadcast %138 : vector<32x1xi1> to vector<32x384xi1>
    %140 = vector.broadcast %cst_44 : f32 to vector<32x384xf32>
    %141 = arith.select %139, %127, %140 : vector<32x384xi1>, vector<32x384xf32>
    %142 = vector.extract_strided_slice %50 {offsets = [7, 0], sizes = [1, 384], strides = [1, 1]} : vector<9x384xf32> to vector<1x384xf32>
    %143 = vector.broadcast %142 : vector<1x384xf32> to vector<32x384xf32>
    %144 = arith.mulf %141, %143 : vector<32x384xf32>
    %145 = arith.addf %137, %144 : vector<32x384xf32>
    %c360_i32_45 = arith.constant 360 : i32
    %146 = tpu.dynamic_rotate %127 by %c360_i32_45 dim 1 : vector<32x384xf32>, i32 -> vector<32x384xf32>
    %147 = vector.broadcast %72 : vector<32x1xi1> to vector<32x384xi1>
    %148 = vector.broadcast %76 : vector<1x384xi1> to vector<32x384xi1>
    %149 = arith.andi %147, %148 : vector<32x384xi1>
    %cst_46 = arith.constant 0.000000e+00 : f32
    %150 = vector.broadcast %cst_46 : f32 to vector<32x384xf32>
    %151 = arith.select %149, %146, %150 : vector<32x384xi1>, vector<32x384xf32>
    %152 = vector.extract_strided_slice %50 {offsets = [8, 0], sizes = [1, 384], strides = [1, 1]} : vector<9x384xf32> to vector<1x384xf32>
    %153 = vector.broadcast %152 : vector<1x384xf32> to vector<32x384xf32>
    %154 = arith.mulf %151, %153 : vector<32x384xf32>
    %155 = arith.addf %145, %154 : vector<32x384xf32>
    %c0_47 = arith.constant 0 : index
    %c0_48 = arith.constant 0 : index
    %156 = vector.load %arg6[%c0_47, %c0_48] : memref<1x384xf32, #tpu.memory_space<vmem>>, vector<1x384xf32>
    %c0_49 = arith.constant 0 : index
    %c0_50 = arith.constant 0 : index
    %157 = vector.load %arg7[%c0_49, %c0_50] : memref<1x384xf32, #tpu.memory_space<vmem>>, vector<1x384xf32>
    %cst_51 = arith.constant dense<0.000000e+00> : vector<384xf32>
    %158 = vector.multi_reduction <add>, %155, %cst_51 [0] : vector<32x384xf32> to vector<384xf32>
    %159 = vector.shape_cast %158 : vector<384xf32> to vector<1x384xf32>
    %160 = arith.mulf %155, %155 : vector<32x384xf32>
    %cst_52 = arith.constant dense<0.000000e+00> : vector<384xf32>
    %161 = vector.multi_reduction <add>, %160, %cst_52 [0] : vector<32x384xf32> to vector<384xf32>
    %162 = vector.shape_cast %161 : vector<384xf32> to vector<1x384xf32>
    %c24_i32_53 = arith.constant 24 : i32
    %163 = tpu.dynamic_rotate %159 by %c24_i32_53 dim 1 : vector<1x384xf32>, i32 -> vector<1x384xf32>
    %164 = arith.addf %159, %163 : vector<1x384xf32>
    %c48_i32_54 = arith.constant 48 : i32
    %165 = tpu.dynamic_rotate %164 by %c48_i32_54 dim 1 : vector<1x384xf32>, i32 -> vector<1x384xf32>
    %166 = arith.addf %164, %165 : vector<1x384xf32>
    %c96_i32_55 = arith.constant 96 : i32
    %167 = tpu.dynamic_rotate %166 by %c96_i32_55 dim 1 : vector<1x384xf32>, i32 -> vector<1x384xf32>
    %168 = arith.addf %166, %167 : vector<1x384xf32>
    %c192_i32_56 = arith.constant 192 : i32
    %169 = tpu.dynamic_rotate %168 by %c192_i32_56 dim 1 : vector<1x384xf32>, i32 -> vector<1x384xf32>
    %170 = arith.addf %168, %169 : vector<1x384xf32>
    %cst_57 = arith.constant 0.001953125 : f32
    %171 = vector.broadcast %cst_57 : f32 to vector<1x384xf32>
    %172 = arith.mulf %170, %171 : vector<1x384xf32>
    %c24_i32_58 = arith.constant 24 : i32
    %173 = tpu.dynamic_rotate %162 by %c24_i32_58 dim 1 : vector<1x384xf32>, i32 -> vector<1x384xf32>
    %174 = arith.addf %162, %173 : vector<1x384xf32>
    %c48_i32_59 = arith.constant 48 : i32
    %175 = tpu.dynamic_rotate %174 by %c48_i32_59 dim 1 : vector<1x384xf32>, i32 -> vector<1x384xf32>
    %176 = arith.addf %174, %175 : vector<1x384xf32>
    %c96_i32_60 = arith.constant 96 : i32
    %177 = tpu.dynamic_rotate %176 by %c96_i32_60 dim 1 : vector<1x384xf32>, i32 -> vector<1x384xf32>
    %178 = arith.addf %176, %177 : vector<1x384xf32>
    %c192_i32_61 = arith.constant 192 : i32
    %179 = tpu.dynamic_rotate %178 by %c192_i32_61 dim 1 : vector<1x384xf32>, i32 -> vector<1x384xf32>
    %180 = arith.addf %178, %179 : vector<1x384xf32>
    %cst_62 = arith.constant 0.001953125 : f32
    %181 = vector.broadcast %cst_62 : f32 to vector<1x384xf32>
    %182 = arith.mulf %180, %181 : vector<1x384xf32>
    %183 = arith.mulf %172, %172 : vector<1x384xf32>
    %184 = arith.subf %182, %183 : vector<1x384xf32>
    %185 = vector.broadcast %172 : vector<1x384xf32> to vector<32x384xf32>
    %186 = arith.subf %155, %185 : vector<32x384xf32>
    %cst_63 = arith.constant 9.99999974E-6 : f32
    %187 = vector.broadcast %cst_63 : f32 to vector<1x384xf32>
    %188 = arith.addf %184, %187 : vector<1x384xf32>
    %189 = math.rsqrt %188 : vector<1x384xf32>
    %190 = arith.mulf %189, %156 : vector<1x384xf32>
    %191 = vector.broadcast %190 : vector<1x384xf32> to vector<32x384xf32>
    %192 = arith.mulf %186, %191 : vector<32x384xf32>
    %193 = vector.broadcast %157 : vector<1x384xf32> to vector<32x384xf32>
    %194 = arith.addf %192, %193 : vector<32x384xf32>
    %cst_64 = arith.constant 0.000000e+00 : f32
    %195 = vector.broadcast %cst_64 : f32 to vector<32x384xf32>
    %196 = arith.maximumf %194, %195 : vector<32x384xf32>
    %c0_65 = arith.constant 0 : index
    %c0_66 = arith.constant 0 : index
    %197 = vector.load %arg8[%c0_65, %c0_66] : memref<384x128xf32, #tpu.memory_space<vmem>>, vector<384x128xf32>
    %cst_67 = arith.constant dense<0.000000e+00> : vector<32x128xf32>
    %198 = tpu.matmul %196, %197, %cst_67 {dimension_numbers = #tpu.dot_dimension_numbers<[1], [0], [0], [1], [0, 0, 1, 1], [], []>} : vector<32x384xf32>, vector<384x128xf32>, vector<32x128xf32> -> vector<32x128xf32>
    %c0_68 = arith.constant 0 : index
    %c0_69 = arith.constant 0 : index
    %199 = vector.load %arg9[%c0_68, %c0_69] : memref<1x128xf32, #tpu.memory_space<vmem>>, vector<1x128xf32>
    %c0_70 = arith.constant 0 : index
    %c0_71 = arith.constant 0 : index
    %200 = vector.load %arg10[%c0_70, %c0_71] : memref<1x128xf32, #tpu.memory_space<vmem>>, vector<1x128xf32>
    %cst_72 = arith.constant dense<0.000000e+00> : vector<128xf32>
    %201 = vector.multi_reduction <add>, %198, %cst_72 [0] : vector<32x128xf32> to vector<128xf32>
    %202 = vector.shape_cast %201 : vector<128xf32> to vector<1x128xf32>
    %203 = arith.mulf %198, %198 : vector<32x128xf32>
    %cst_73 = arith.constant dense<0.000000e+00> : vector<128xf32>
    %204 = vector.multi_reduction <add>, %203, %cst_73 [0] : vector<32x128xf32> to vector<128xf32>
    %205 = vector.shape_cast %204 : vector<128xf32> to vector<1x128xf32>
    %c8_i32 = arith.constant 8 : i32
    %206 = tpu.dynamic_rotate %202 by %c8_i32 dim 1 : vector<1x128xf32>, i32 -> vector<1x128xf32>
    %207 = arith.addf %202, %206 : vector<1x128xf32>
    %c16_i32_74 = arith.constant 16 : i32
    %208 = tpu.dynamic_rotate %207 by %c16_i32_74 dim 1 : vector<1x128xf32>, i32 -> vector<1x128xf32>
    %209 = arith.addf %207, %208 : vector<1x128xf32>
    %c32_i32 = arith.constant 32 : i32
    %210 = tpu.dynamic_rotate %209 by %c32_i32 dim 1 : vector<1x128xf32>, i32 -> vector<1x128xf32>
    %211 = arith.addf %209, %210 : vector<1x128xf32>
    %c64_i32 = arith.constant 64 : i32
    %212 = tpu.dynamic_rotate %211 by %c64_i32 dim 1 : vector<1x128xf32>, i32 -> vector<1x128xf32>
    %213 = arith.addf %211, %212 : vector<1x128xf32>
    %cst_75 = arith.constant 0.001953125 : f32
    %214 = vector.broadcast %cst_75 : f32 to vector<1x128xf32>
    %215 = arith.mulf %213, %214 : vector<1x128xf32>
    %c8_i32_76 = arith.constant 8 : i32
    %216 = tpu.dynamic_rotate %205 by %c8_i32_76 dim 1 : vector<1x128xf32>, i32 -> vector<1x128xf32>
    %217 = arith.addf %205, %216 : vector<1x128xf32>
    %c16_i32_77 = arith.constant 16 : i32
    %218 = tpu.dynamic_rotate %217 by %c16_i32_77 dim 1 : vector<1x128xf32>, i32 -> vector<1x128xf32>
    %219 = arith.addf %217, %218 : vector<1x128xf32>
    %c32_i32_78 = arith.constant 32 : i32
    %220 = tpu.dynamic_rotate %219 by %c32_i32_78 dim 1 : vector<1x128xf32>, i32 -> vector<1x128xf32>
    %221 = arith.addf %219, %220 : vector<1x128xf32>
    %c64_i32_79 = arith.constant 64 : i32
    %222 = tpu.dynamic_rotate %221 by %c64_i32_79 dim 1 : vector<1x128xf32>, i32 -> vector<1x128xf32>
    %223 = arith.addf %221, %222 : vector<1x128xf32>
    %cst_80 = arith.constant 0.001953125 : f32
    %224 = vector.broadcast %cst_80 : f32 to vector<1x128xf32>
    %225 = arith.mulf %223, %224 : vector<1x128xf32>
    %226 = arith.mulf %215, %215 : vector<1x128xf32>
    %227 = arith.subf %225, %226 : vector<1x128xf32>
    %228 = vector.broadcast %215 : vector<1x128xf32> to vector<32x128xf32>
    %229 = arith.subf %198, %228 : vector<32x128xf32>
    %cst_81 = arith.constant 9.99999974E-6 : f32
    %230 = vector.broadcast %cst_81 : f32 to vector<1x128xf32>
    %231 = arith.addf %227, %230 : vector<1x128xf32>
    %232 = math.rsqrt %231 : vector<1x128xf32>
    %233 = arith.mulf %232, %199 : vector<1x128xf32>
    %234 = vector.broadcast %233 : vector<1x128xf32> to vector<32x128xf32>
    %235 = arith.mulf %229, %234 : vector<32x128xf32>
    %236 = vector.broadcast %200 : vector<1x128xf32> to vector<32x128xf32>
    %237 = arith.addf %235, %236 : vector<32x128xf32>
    %c0_82 = arith.constant 0 : index
    %c0_83 = arith.constant 0 : index
    %238 = vector.load %arg11[%c0_82, %c0_83] : memref<64x128xbf16, #tpu.memory_space<vmem>>, vector<64x128xbf16>
    %cst_84 = arith.constant dense<0.000000e+00> : vector<32x128xf32>
    %239 = tpu.matmul %1, %238, %cst_84 {dimension_numbers = #tpu.dot_dimension_numbers<[1], [0], [0], [1], [0, 0, 1, 1], [], []>} : vector<32x64xbf16>, vector<64x128xbf16>, vector<32x128xf32> -> vector<32x128xf32>
    %c0_85 = arith.constant 0 : index
    %c0_86 = arith.constant 0 : index
    %240 = vector.load %arg12[%c0_85, %c0_86] : memref<1x128xf32, #tpu.memory_space<vmem>>, vector<1x128xf32>
    %c0_87 = arith.constant 0 : index
    %c0_88 = arith.constant 0 : index
    %241 = vector.load %arg13[%c0_87, %c0_88] : memref<1x128xf32, #tpu.memory_space<vmem>>, vector<1x128xf32>
    %cst_89 = arith.constant dense<0.000000e+00> : vector<128xf32>
    %242 = vector.multi_reduction <add>, %239, %cst_89 [0] : vector<32x128xf32> to vector<128xf32>
    %243 = vector.shape_cast %242 : vector<128xf32> to vector<1x128xf32>
    %244 = arith.mulf %239, %239 : vector<32x128xf32>
    %cst_90 = arith.constant dense<0.000000e+00> : vector<128xf32>
    %245 = vector.multi_reduction <add>, %244, %cst_90 [0] : vector<32x128xf32> to vector<128xf32>
    %246 = vector.shape_cast %245 : vector<128xf32> to vector<1x128xf32>
    %c8_i32_91 = arith.constant 8 : i32
    %247 = tpu.dynamic_rotate %243 by %c8_i32_91 dim 1 : vector<1x128xf32>, i32 -> vector<1x128xf32>
    %248 = arith.addf %243, %247 : vector<1x128xf32>
    %c16_i32_92 = arith.constant 16 : i32
    %249 = tpu.dynamic_rotate %248 by %c16_i32_92 dim 1 : vector<1x128xf32>, i32 -> vector<1x128xf32>
    %250 = arith.addf %248, %249 : vector<1x128xf32>
    %c32_i32_93 = arith.constant 32 : i32
    %251 = tpu.dynamic_rotate %250 by %c32_i32_93 dim 1 : vector<1x128xf32>, i32 -> vector<1x128xf32>
    %252 = arith.addf %250, %251 : vector<1x128xf32>
    %c64_i32_94 = arith.constant 64 : i32
    %253 = tpu.dynamic_rotate %252 by %c64_i32_94 dim 1 : vector<1x128xf32>, i32 -> vector<1x128xf32>
    %254 = arith.addf %252, %253 : vector<1x128xf32>
    %cst_95 = arith.constant 0.001953125 : f32
    %255 = vector.broadcast %cst_95 : f32 to vector<1x128xf32>
    %256 = arith.mulf %254, %255 : vector<1x128xf32>
    %c8_i32_96 = arith.constant 8 : i32
    %257 = tpu.dynamic_rotate %246 by %c8_i32_96 dim 1 : vector<1x128xf32>, i32 -> vector<1x128xf32>
    %258 = arith.addf %246, %257 : vector<1x128xf32>
    %c16_i32_97 = arith.constant 16 : i32
    %259 = tpu.dynamic_rotate %258 by %c16_i32_97 dim 1 : vector<1x128xf32>, i32 -> vector<1x128xf32>
    %260 = arith.addf %258, %259 : vector<1x128xf32>
    %c32_i32_98 = arith.constant 32 : i32
    %261 = tpu.dynamic_rotate %260 by %c32_i32_98 dim 1 : vector<1x128xf32>, i32 -> vector<1x128xf32>
    %262 = arith.addf %260, %261 : vector<1x128xf32>
    %c64_i32_99 = arith.constant 64 : i32
    %263 = tpu.dynamic_rotate %262 by %c64_i32_99 dim 1 : vector<1x128xf32>, i32 -> vector<1x128xf32>
    %264 = arith.addf %262, %263 : vector<1x128xf32>
    %cst_100 = arith.constant 0.001953125 : f32
    %265 = vector.broadcast %cst_100 : f32 to vector<1x128xf32>
    %266 = arith.mulf %264, %265 : vector<1x128xf32>
    %267 = arith.mulf %256, %256 : vector<1x128xf32>
    %268 = arith.subf %266, %267 : vector<1x128xf32>
    %269 = vector.broadcast %256 : vector<1x128xf32> to vector<32x128xf32>
    %270 = arith.subf %239, %269 : vector<32x128xf32>
    %cst_101 = arith.constant 9.99999974E-6 : f32
    %271 = vector.broadcast %cst_101 : f32 to vector<1x128xf32>
    %272 = arith.addf %268, %271 : vector<1x128xf32>
    %273 = math.rsqrt %272 : vector<1x128xf32>
    %274 = arith.mulf %273, %240 : vector<1x128xf32>
    %275 = vector.broadcast %274 : vector<1x128xf32> to vector<32x128xf32>
    %276 = arith.mulf %270, %275 : vector<32x128xf32>
    %277 = vector.broadcast %241 : vector<1x128xf32> to vector<32x128xf32>
    %278 = arith.addf %276, %277 : vector<32x128xf32>
    %279 = arith.addf %237, %278 : vector<32x128xf32>
    %c0_102 = arith.constant 0 : index
    %c0_103 = arith.constant 0 : index
    %280 = vector.load %arg14[%c0_102, %c0_103] : memref<32x128xf32, #tpu.memory_space<vmem>>, vector<32x128xf32>
    tpu.vector_store %arg14[%c0_102, %c0_103], %279 {strides = array<i32>} : memref<32x128xf32, #tpu.memory_space<vmem>>, vector<32x128xf32>,
    return
  }
  func.func @transform_0(%arg0: i32) -> (i32, i32) {
    %c0_i32 = arith.constant 0 : i32
    %c0_i32_0 = arith.constant 0 : i32
    %c0_i32_1 = arith.constant 0 : i32
    return %c0_i32, %c0_i32_0 : i32, i32
  }
  func.func @transform_1(%arg0: i32) -> (i32, i32) {
    %c0_i32 = arith.constant 0 : i32
    %c0_i32_0 = arith.constant 0 : i32
    %c0_i32_1 = arith.constant 0 : i32
    return %c0_i32, %c0_i32_0 : i32, i32
  }
  func.func @transform_2(%arg0: i32) -> (i32, i32) {
    %c0_i32 = arith.constant 0 : i32
    %c0_i32_0 = arith.constant 0 : i32
    %c0_i32_1 = arith.constant 0 : i32
    return %c0_i32, %c0_i32_0 : i32, i32
  }
  func.func @transform_3(%arg0: i32) -> (i32, i32) {
    %c0_i32 = arith.constant 0 : i32
    %c0_i32_0 = arith.constant 0 : i32
    %c0_i32_1 = arith.constant 0 : i32
    return %c0_i32, %c0_i32_0 : i32, i32
  }
  func.func @transform_4(%arg0: i32) -> (i32, i32) {
    %c0_i32 = arith.constant 0 : i32
    %c0_i32_0 = arith.constant 0 : i32
    %c0_i32_1 = arith.constant 0 : i32
    return %c0_i32, %c0_i32_0 : i32, i32
  }
  func.func @transform_5(%arg0: i32) -> (i32, i32) {
    %c0_i32 = arith.constant 0 : i32
    %c0_i32_0 = arith.constant 0 : i32
    %c0_i32_1 = arith.constant 0 : i32
    return %c0_i32, %c0_i32_0 : i32, i32
  }
  func.func @transform_6(%arg0: i32) -> (i32, i32) {
    %c0_i32 = arith.constant 0 : i32
    %c0_i32_0 = arith.constant 0 : i32
    %c0_i32_1 = arith.constant 0 : i32
    return %c0_i32, %c0_i32_0 : i32, i32
  }
  func.func @transform_7(%arg0: i32) -> (i32, i32) {
    %c0_i32 = arith.constant 0 : i32
    %c0_i32_0 = arith.constant 0 : i32
    %c0_i32_1 = arith.constant 0 : i32
    return %c0_i32, %c0_i32_0 : i32, i32
  }
  func.func @transform_8(%arg0: i32) -> (i32, i32) {
    %c0_i32 = arith.constant 0 : i32
    %c0_i32_0 = arith.constant 0 : i32
    %c0_i32_1 = arith.constant 0 : i32
    return %c0_i32, %c0_i32_0 : i32, i32
  }
  func.func @transform_9(%arg0: i32) -> (i32, i32) {
    %c0_i32 = arith.constant 0 : i32
    %c0_i32_0 = arith.constant 0 : i32
    %c0_i32_1 = arith.constant 0 : i32
    return %c0_i32, %c0_i32_0 : i32, i32
  }
  func.func @transform_10(%arg0: i32) -> (i32, i32) {
    %c0_i32 = arith.constant 0 : i32
    %c0_i32_0 = arith.constant 0 : i32
    %c0_i32_1 = arith.constant 0 : i32
    return %c0_i32, %c0_i32_0 : i32, i32
  }
  func.func @transform_11(%arg0: i32) -> (i32, i32) {
    %c0_i32 = arith.constant 0 : i32
    %c0_i32_0 = arith.constant 0 : i32
    %c0_i32_1 = arith.constant 0 : i32
    return %c0_i32, %c0_i32_0 : i32, i32
  }
  func.func @transform_12(%arg0: i32) -> (i32, i32) {
    %c0_i32 = arith.constant 0 : i32
    %c0_i32_0 = arith.constant 0 : i32
    %c0_i32_1 = arith.constant 0 : i32
    return %c0_i32, %c0_i32_0 : i32, i32
  }
  func.func @transform_13(%arg0: i32) -> (i32, i32) {
    %c0_i32 = arith.constant 0 : i32
    %c0_i32_0 = arith.constant 0 : i32
    %c0_i32_1 = arith.constant 0 : i32
    return %c0_i32, %c0_i32_0 : i32, i32
  }
}

</mosaic_0001>

<bundles_post_ra>
// kernel: tpu_custom_call.1
= control target key start
LH: loop header
LB: loop body
LE: loop exit
PB: predicated region body
PF: predicated region fallthrough
CT: control target
= control target key end

     0   :  { %18 = vsyncpa [#allocation4], 0  ;;  %s4318_s0 = inlined_call_operand.hbm [shape: f32[32,64], index: 0, kind: input, shape index: {}]   ;;  %s4319_s1 = inlined_call_operand.hbm [shape: bf16[64,384], index: 1, kind: input, shape index: {}]   ;;  %s4320_s2 = inlined_call_operand.vmem [shape: f32[1,384], index: 2, kind: input, shape index: {}]   ;;  %s4321_s3 = inlined_call_operand.hbm [shape: f32[1,384], index: 3, kind: input, shape index: {}]   ;;  %s4322_s4 = inlined_call_operand.hbm [shape: f32[9,384], index: 4, kind: input, shape index: {}]   ;;  %s4323_s5 = inlined_call_operand.vmem [shape: f32[1,384], index: 5, kind: input, shape index: {}]   ;;  %s4324_s6 = inlined_call_operand.vmem [shape: f32[1,384], index: 6, kind: input, shape index: {}]   ;;  %s4325_s7 = inlined_call_operand.hbm [shape: f32[384,128], index: 7, kind: input, shape index: {}]   ;;  %s4326_s8 = inlined_call_operand.vmem [shape: f32[1,128], index: 8, kind: input, shape index: {}]   ;;  %s4327_s9 = inlined_call_operand.vmem [shape: f32[1,128], index: 9, kind: input, shape index: {}]   ;;  %s4328_s10 = inlined_call_operand.hbm [shape: bf16[64,128], index: 10, kind: input, shape index: {}]   ;;  %s4329_s11 = inlined_call_operand.vmem [shape: f32[1,128], index: 11, kind: input, shape index: {}]   ;;  %s4330_s12 = inlined_call_operand.vmem [shape: f32[1,128], index: 12, kind: input, shape index: {}]   ;;  %s4331_s13 = inlined_call_operand.hbm [shape: f32[32,128], index: 13, kind: output, shape index: {}]  }
   0x1   :  { %19 = vsyncpa [#allocation7], 0 }
   0x2   :  { %20 = vsyncpa [#allocation10], 0 }
   0x3   :  { %21 = vsyncpa [#allocation13], 0 }
   0x4   :  { %22 = vsyncpa [#allocation5], 0  ;;  %s2689_s25 = smov [#allocation6]  }
   0x5   :  { %s40_s26 = sshll.u32 %s2689_s25, 4  ;;  %s41_s26 = int_to_ptr.vmem [resolvable:$true] %s40_s26 }
   0x6   :  { %s2547_s27 = scalar_lea.vmem %s41_s26, 1536  ;;  %p2552_p1 = scmp.lt.s32.totalorder %s41_s26, %s41_s26 }
   0x7   :  { %p2548_p0 = scmp.ne.s32.totalorder %s41_s26, %s2547_s27  ;;  %p2553_p2 = scmp.lt.s32.totalorder %s2547_s27, %s2547_s27 }
   0x9   :  { %p2554_p3 = por %p2553_p2, %p2552_p1 }
   0xb   :  { %p2555_p4 = pnand %p2554_p3, %p2548_p0 }
   0xd   :  { %2558 = shalt.err (!%p2555_p4)
}
   0xe   :  { %s2690_s28 = smov 192   ;;  %s2691_s29 = smov 12  }
   0xf   :  { %46 = dma.hbm_to_vmem [thread:$0]  %s4319_s1, 1536, %s41_s26, [#allocation7], %s2690_s28, %s2690_s28, %s2691_s29  }
  0x10   :  { %s2692_s15 = smov [#allocation9]  }
  0x11   :  { %s64_s16 = sshll.u32 %s2692_s15, 4  ;;  %s65_s16 = int_to_ptr.vmem [resolvable:$true] %s64_s16 }
  0x12   :  { %s2567_s17 = scalar_lea.vmem %s65_s16, 768  ;;  %p2572_p6 = scmp.lt.s32.totalorder %s65_s16, %s65_s16 }
  0x13   :  { %p2568_p5 = scmp.ne.s32.totalorder %s65_s16, %s2567_s17  ;;  %p2573_p7 = scmp.lt.s32.totalorder %s2567_s17, %s2567_s17 }
  0x15   :  { %p2574_p8 = por %p2573_p7, %p2572_p6 }
  0x17   :  { %p2575_p9 = pnand %p2574_p8, %p2568_p5 }
  0x19   :  { %2578 = shalt.err (!%p2575_p9)
}
  0x1a   :  { %s2693_s18 = smov 384   ;;  %s2694_s19 = smov 24  }
  0x1b   :  { %70 = dma.hbm_to_vmem [thread:$0]  %s4322_s4, 768, %s65_s16, [#allocation10], %s2693_s18, %s2693_s18, %s2694_s19  }
  0x1c   :  { %s2695_s22 = smov [#allocation3]  }
  0x1d   :  { %s28_s23 = sshll.u32 %s2695_s22, 4  ;;  %s29_s23 = int_to_ptr.vmem [resolvable:$true] %s28_s23 }
  0x1e   :  { %s2587_s1 = scalar_lea.vmem %s29_s23, 512  ;;  %p2592_p11 = scmp.lt.s32.totalorder %s29_s23, %s29_s23 }
  0x1f   :  { %p2588_p10 = scmp.ne.s32.totalorder %s29_s23, %s2587_s1  ;;  %p2593_p12 = scmp.lt.s32.totalorder %s2587_s1, %s2587_s1 }
  0x21   :  { %p2594_p13 = por %p2593_p12, %p2592_p11 }
  0x23   :  { %p2595_p0 = pnand %p2594_p13, %p2588_p10 }
  0x25   :  { %2598 = shalt.err (!%p2595_p0)
}
  0x26   :  { %s2696_s24 = smov 128   ;;  %s2697_s25 = smov 8  }
  0x27   :  { %34 = dma.hbm_to_vmem [thread:$0]  %s4318_s0, 512, %s29_s23, [#allocation4], %s2696_s24, %s2696_s24, %s2697_s25  }
  0x28   :  { %s2698_s4 = smov [#allocation8]   ;;  %s2699_s29 = smov [#allocation11]  }
  0x29   :  { %s55_s28 = sshll.u32 %s2698_s4, 4  ;;  %s80_s30 = sshll.u32 %s2699_s29, 4  ;;  %s56_s28 = int_to_ptr.vmem [resolvable:$true] %s55_s28  ;;  %s81_s30 = int_to_ptr.vmem [resolvable:$true] %s80_s30 }
  0x2a   :  { %s2607_s14 = scalar_lea.vmem %s56_s28, 48  ;;  %s2611_s15 = scalar_lea.vmem %s56_s28, 64 }
  0x2b   :  { %p2608_p1 = scmp.ne.s32.totalorder %s56_s28, %s2607_s14  ;;  %p2612_p2 = scmp.lt.s32.totalorder %s56_s28, %s56_s28 }
  0x2c   :  { %p2613_p3 = scmp.lt.s32.totalorder %s2611_s15, %s2607_s14 }
  0x2e   :  { %p2614_p4 = por %p2613_p3, %p2612_p2 }
  0x30   :  { %p2615_p5 = pnand %p2614_p4, %p2608_p1 }
  0x32   :  { %2618 = shalt.err (!%p2615_p5)
}
  0x33   :  { %58 = dma.hbm_to_vmem [thread:$0]  %s4321_s3, 48, %s56_s28, [#allocation7]  }
  0x34   :  { %s2627_s18 = scalar_lea.vmem %s81_s30, 6144  ;;  %p2632_p7 = scmp.lt.s32.totalorder %s81_s30, %s81_s30 }
  0x35   :  { %p2628_p6 = scmp.ne.s32.totalorder %s81_s30, %s2627_s18  ;;  %p2633_p8 = scmp.lt.s32.totalorder %s2627_s18, %s2627_s18 }
  0x37   :  { %p2634_p9 = por %p2633_p8, %p2632_p7 }
  0x39   :  { %p2635_p10 = pnand %p2634_p9, %p2628_p6 }
  0x3b   :  { %2638 = shalt.err (!%p2635_p10)
}
  0x3c   :  { %86 = dma.hbm_to_vmem [thread:$0]  %s4325_s7, 6144, %s81_s30, [#allocation10], %s2696_s24, %s2696_s24, %s2697_s25  }
  0x3d   :  { %s2700_s21 = smov [#allocation12]  }
  0x3e   :  { %s96_s22 = sshll.u32 %s2700_s21, 4  ;;  %s97_s22 = int_to_ptr.vmem [resolvable:$true] %s96_s22 }
  0x3f   :  { %s2647_s23 = scalar_lea.vmem %s97_s22, 512  ;;  %p2652_p12 = scmp.lt.s32.totalorder %s97_s22, %s97_s22 }
  0x40   :  { %p2648_p11 = scmp.ne.s32.totalorder %s97_s22, %s2647_s23  ;;  %p2653_p13 = scmp.lt.s32.totalorder %s2647_s23, %s2647_s23 }
  0x42   :  { %p2654_p0 = por %p2653_p13, %p2652_p12 }
  0x44   :  { %p2655_p1 = pnand %p2654_p0, %p2648_p11 }
  0x46   :  { %2658 = shalt.err (!%p2655_p1)
}
  0x47   :  { %s2701_s3 = smov 64   ;;  %s2702_s1 = smov 4  }
  0x48   :  { %102 = dma.hbm_to_vmem [thread:$0]  %s4328_s10, 512, %s97_s22, [#allocation13], %s2701_s3, %s2701_s3, %s2702_s1  }
  0x49   :  { %2679 = dma.done.wait [#allocation4], 512  }
  0x4a   :  { %2680 = vsyncadd [#allocation4], 4294966784 }
  0x4b   :  { %2681 = dma.done.wait [#allocation7], 1584  }
  0x4c   :  { %2682 = vsyncadd [#allocation7], 4294965712 }
  0x4d   :  { %2683 = dma.done.wait [#allocation10], 6912  }
  0x4e   :  { %2684 = vsyncadd [#allocation10], 4294960384 }
  0x4f   :  { %2685 = dma.done.wait [#allocation13], 512  }
  0x50   :  { %2686 = vsyncadd [#allocation13], 4294966784  ;;  %v2703_v0 = vmov 0   ;;  %v2503_v1 = vld [vmem:[#allocation6 + $0x4c] ss:$12 sps:$4 sm:$0xff]   ;;  %v126_v12 = vld [vmem:[#allocation3] sm:$0xff] }
  0x51   :  { %251 = vmatprep.mubr.bf16.mxu0 %v2703_v0  ;;  %v2505_v2 = vld [vmem:[#allocation6 + $0x50] ss:$12 sps:$4 sm:$0xff]   ;;  %227 = vmatprep.subr.bf16.mxu0 %v2503_v1  ;;  %v2506_v3 = vld [vmem:[#allocation6 + $0x48] ss:$12 sps:$4 sm:$0xff]   ;;  %v2509_v5 = vld [vmem:[#allocation6 + $0x38] ss:$12 sps:$4 sm:$0xff]  }
  0x52   :  { %2419 = vmatprep.subr.bf16.mxu1 %v2505_v2  ;;  %v2507_v4 = vld [vmem:[#allocation6 + $0x34] ss:$12 sps:$4 sm:$0xff]   ;;  %228 = vmatpush1.bf16.msra.mxu0 %v2506_v3  ;;  %v2510_v6 = vld [vmem:[#allocation6 + $0x30] ss:$12 sps:$4 sm:$0xff]   ;;  %v2514_v9 = vld [vmem:[#allocation6 + $0x18] ss:$12 sps:$4 sm:$0xff]  }
  0x53   :  { %2420 = vmatpush3.bf16.msra.mxu1 %v2505_v2  ;;  %229 = vmatprep.subr.bf16.mxu0 %v2507_v4  ;;  %v2511_v7 = vld [vmem:[#allocation6 + $0x1c] ss:$12 sps:$4 sm:$0xff]   ;;  %v2513_v8 = vld [vmem:[#allocation6 + $0x20] ss:$12 sps:$4 sm:$0xff]   ;;  %v2515_v10 = vld [vmem:[#allocation6 + $0x4] ss:$12 sps:$4 sm:$0xff]  }
  0x54   :  { %2421 = vmatprep.subr.bf16.mxu1 %v2509_v5  ;;  %v2517_v11 = vld [vmem:[#allocation6 + $0x8] ss:$12 sps:$4 sm:$0xff]   ;;  %v2518_v14 = vld [vmem:[#allocation6] ss:$12 sps:$4 sm:$0xff]   ;;  %vm212_vm0 = vcmask 523264   ;;  %v129_v17 = vld [vmem:[#allocation3 + $0x18] sm:$0xff] }
  0x55   :  { %v127_v13 = vld [vmem:[#allocation3 + $0x8] sm:$0xff]  ;;  %v128_v16 = vld [vmem:[#allocation3 + $0x10] sm:$0xff]  ;;  %s2704_s7 = smov 48   ;;  %s2705_s10 = smov 96   ;;  %vm637_vm6 = vcmask 1040384   ;;  %vm1250_vm7 = vcmask 1045504  }
  0x56   :  { %230 = vmatpush1.bf16.msra.mxu0 %v2510_v6  ;;  %v2808_v15 = vpack.c.bf16 %v127_v13, %v126_v12  ;;  %v2812_v18 = vpack.c.bf16 %v129_v17, %v128_v16  ;;  %s2710_s21 = smov [#allocation14]  }
  0x57   :  { %2422 = vmatpush3.bf16.msra.mxu1 %v2509_v5  ;;  %231 = vmatprep.subr.bf16.mxu0 %v2511_v7  ;;  %s2301_s22 = sshll.u32 %s2710_s21, 4  ;;  %s2302_s22 = int_to_ptr.vmem [resolvable:$true] %s2301_s22 }
  0x58   :  { %2423 = vmatprep.subr.bf16.mxu1 %v2513_v8  ;;  %4374 = vst [vmem:[#allocation20_spill] sm:$0xff] %v2808_v15  ;;  %2427 = vmatprep.mubr.msk.bf16.mxu1 %vm212_vm0, %v2808_v15  ;;  %4375 = vst [vmem:[#allocation21_spill] sm:$0xff] %v2812_v18  ;;  %p2664_p3 = scmp.lt.s32.totalorder %s2302_s22, %s2302_s22 }
  0x5a   :  { %232 = vmatpush1.bf16.msra.mxu0 %v2514_v9 }
  0x5b   :  { %2424 = vmatpush3.bf16.msra.mxu1 %v2513_v8  ;;  %233 = vmatprep.subr.bf16.mxu0 %v2515_v10 }
  0x5c   :  { %2425 = vmatprep.subr.bf16.mxu1 %v2517_v11 }
  0x5e   :  { %234 = vmatpush1.bf16.msra.mxu0 %v2518_v14 }
  0x5f   :  { %2426 = vmatpush3.bf16.msra.mxu1 %v2517_v11 }
  0x61   :  { %2328 = vmatmul.mubr.msk.bf16.vlgmr.msra.gmra.mxu0 %vm212_vm0, %v2808_v15 }
  0x62   :  { %2428 = vmatmul.mubr.msk.bf16.vlgmr.msra.gmra.mxu1 %vm212_vm0, %v2812_v18  ;;  %261 = vmatprep.mubr.bf16.mxu0 %v2703_v0 }
  0x69   :  { %2329 = vmatmul.mubr.msk.bf16.gmra.mxu0 %vm212_vm0, %v2812_v18 }
 0x121   :  { %v2820_v19 = vpop.f32.mrf.mxu0 }
 0x122   :  { %v2822_v20 = vpop.f32.mrf.mxu1  ;;  %v350_v29 = vmul.f32 %v2820_v19, %v2820_v19 }
 0x123   :  { %v2824_v21 = vpop.f32.mrf.mxu0  ;;  %v358_v37 = vmul.f32 %v2822_v20, %v2822_v20 }
 0x124   :  { %v2826_v22 = vpop.f32.mrf.mxu1  ;;  %v351_v38 = vmul.f32 %v2824_v21, %v2824_v21 }
 0x125   :  { %v2828_v23 = vpop.f32.mrf.mxu0  ;;  %v352_v30 = vmul.f32 %v2826_v22, %v2826_v22 }
 0x126   :  { %v2830_v24 = vpop.f32.mrf.mxu1  ;;  %v353_v25 = vmul.f32 %v2828_v23, %v2828_v23  ;;  %v323_v34 = vadd.f32 %v2828_v23, %v2820_v19 }
 0x127   :  { %v2834_v26 = vpop.f32.mrf.mxu0  ;;  %v361_v46 = vmul.f32 %v2830_v24, %v2830_v24 }
 0x128   :  { %v2836_v27 = vpop.f32.mrf.mxu1  ;;  %v354_v31 = vmul.f32 %v2834_v26, %v2834_v26  ;;  %v362_v39 = vadd.f32 %v353_v25, %v350_v29  ;;  %v332_v42 = vadd.f32 %v2834_v26, %v2824_v21 }
 0x129   :  { %v341_v28 = vadd.f32 %v2836_v27, %v2826_v22  ;;  %v355_v32 = vmul.f32 %v2836_v27, %v2836_v27  ;;  %v2848_v33 = vpop.f32.mrf.mxu0 }
 0x12a   :  { %v356_v36 = vmul.f32 %v2848_v33, %v2848_v33  ;;  %v324_v43 = vadd.f32 %v323_v34, %v2848_v33  ;;  %v371_v47 = vadd.f32 %v354_v31, %v351_v38 }
 0x12b   :  { %v342_v35 = vadd.f32 %v2822_v20, %v341_v28  ;;  %v380_v40 = vadd.f32 %v355_v32, %v352_v30  ;;  %v2859_v41 = vpop.f32.mrf.mxu0 }
 0x12c   :  { %v357_v44 = vmul.f32 %v2859_v41, %v2859_v41  ;;  %v363_v49 = vadd.f32 %v362_v39, %v356_v36  ;;  %v333_v51 = vadd.f32 %v332_v42, %v2859_v41 }
 0x12d   :  { %v343_v45 = vadd.f32 %v2830_v24, %v342_v35  ;;  %v381_v48 = vadd.f32 %v380_v40, %v358_v37  ;;  %v2869_v50 = vpop.f32.mrf.mxu0 }
 0x12e   :  { %v325_v52 = vadd.f32 %v324_v43, %v2869_v50  ;;  %v359_v53 = vmul.f32 %v2869_v50, %v2869_v50  ;;  %v372_v55 = vadd.f32 %v371_v47, %v357_v44 }
 0x12f   :  { %v344_v54 = vrot.slane %v343_v45, 4  ;;  %v2875_v56 = vpop.f32.mrf.mxu0  ;;  %v382_v57 = vadd.f32 %v381_v48, %v361_v46 }
 0x130   :  { %v326_v58 = vrot.slane %v325_v52, 4  ;;  %v364_v59 = vadd.f32 %v363_v49, %v359_v53  ;;  %v334_v60 = vadd.f32 %v333_v51, %v2875_v56  ;;  %v360_v61 = vmul.f32 %v2875_v56, %v2875_v56 }
 0x131   :  { %v345_v62 = vadd.f32 %v344_v54, %v343_v45  ;;  %v383_v63 = vrot.slane %v382_v57, 4  ;;  %v395_v45 = vlaneseq }
 0x132   :  { %v335_v0 = vrot.slane %v334_v60, 4  ;;  %v373_v1 = vadd.f32 %v372_v55, %v360_v61  ;;  %v327_v2 = vadd.f32 %v326_v58, %v325_v52  ;;  %v365_v3 = vrot.slane %v364_v59, 4 }
 0x133   :  { %v346_v4 = vrot.slane %v345_v62, 2  ;;  %v384_v5 = vadd.f32 %v383_v63, %v382_v57  ;;  %v2887_v46 = vand.u32 127, %v395_v45  ;;  %vm618_vm4 = vcmp.lt.s32.totalorder %v395_v45, 384 }
 0x134   :  { %v328_v6 = vrot.slane %v327_v2, 2  ;;  %v366_v7 = vadd.f32 %v365_v3, %v364_v59  ;;  %v336_v8 = vadd.f32 %v335_v0, %v334_v60  ;;  %v374_v9 = vrot.slane %v373_v1, 4 }
 0x135   :  { %v347_v10 = vadd.f32 %v346_v4, %v345_v62  ;;  %v385_v11 = vrot.slane %v384_v5, 2  ;;  %vm397_vm1 = vcmp.lt.s32.totalorder %v2887_v46, 24  ;;  %vm410_vm2 = vcmp.lt.s32.totalorder %v2887_v46, 48 }
 0x136   :  { %v329_v12 = vadd.f32 %v328_v6, %v327_v2  ;;  %v367_v13 = vrot.slane %v366_v7, 2  ;;  %v337_v14 = vrot.slane %v336_v8, 2  ;;  %v375_v16 = vadd.f32 %v374_v9, %v373_v1 }
 0x137   :  { %v348_v17 = vrot.slane %v347_v10, 1  ;;  %v386_v32 = vadd.f32 %v385_v11, %v384_v5  ;;  %vm423_vm3 = vcmp.lt.s32.totalorder %v2887_v46, 96  ;;  %vm436_vm5 = vcmp.lt.s32.totalorder %v2887_v46, 64 }
 0x138   :  { %v330_v25 = vrot.slane %v329_v12, 1  ;;  %v368_v28 = vadd.f32 %v367_v13, %v366_v7  ;;  %v338_v29 = vadd.f32 %v337_v14, %v336_v8  ;;  %v376_v30 = vrot.slane %v375_v16, 2 }
 0x139   :  { %v349_v31 = vadd.f32 %v348_v17, %v347_v10  ;;  %v387_v39 = vrot.slane %v386_v32, 1  ;;  %vm946_vm8 = vcmp.lt.s32.totalorder %v2887_v46, 104  ;;  %vm758_vm11 = vcmp.ge.s32.totalorder %v2887_v46, 24 }
 0x13a   :  { %v331_v34 = vadd.f32 %v330_v25, %v329_v12  ;;  %v369_v35 = vrot.slane %v368_v28, 1  ;;  %v339_v36 = vrot.slane %v338_v29, 1  ;;  %v377_v37 = vadd.f32 %v376_v30, %v375_v16 }
 0x13b   :  { %393 = vrot.lane.b32.xlu1 %v349_v31, %s2694_s19  ;;  %v388_v43 = vadd.f32 %v387_v39, %v386_v32 }
 0x13c   :  { %389 = vrot.lane.b32.xlu0 %v331_v34, %s2694_s19  ;;  %v370_v38 = vadd.f32 %v369_v35, %v368_v28  ;;  %v340_v40 = vadd.f32 %v339_v36, %v338_v29  ;;  %v378_v42 = vrot.slane %v377_v37, 1 }
 0x13e   :  { %v379_v44 = vadd.f32 %v378_v42, %v377_v37 }
 0x13f   :  { %446 = vrot.lane.b32.xlu1 %v370_v38, %s2694_s19 }
 0x140   :  { %391 = vrot.lane.b32.xlu0 %v340_v40, %s2694_s19 }
 0x143   :  { %450 = vrot.lane.b32.xlu1 %v388_v43, %s2694_s19 }
 0x144   :  { %448 = vrot.lane.b32.xlu0 %v379_v44, %s2694_s19 }
 0x1ad   :  { %v394_v47 = vpop.permute.xlu1 %393 }
 0x1ae   :  { %v390_v48 = vpop.permute.xlu0 %389 }
 0x1af   :  { %v400_v49 = vsel %vm397_vm1, %v394_v47, %v390_v48 }
 0x1b0   :  { %v401_v51 = vadd.f32 %v400_v49, %v331_v34 }
 0x1b1   :  { %v447_v52 = vpop.permute.xlu1 %446 }
 0x1b2   :  { %404 = vrot.lane.b32.xlu0 %v401_v51, %s2704_s7  ;;  %v392_v53 = vpop.permute.xlu0 %391 }
 0x1b3   :  { %v398_v54 = vsel %vm397_vm1, %v392_v53, %v394_v47  ;;  %v399_v55 = vsel %vm397_vm1, %v390_v48, %v392_v53 }
 0x1b4   :  { %v402_v57 = vadd.f32 %v399_v55, %v340_v40  ;;  %v403_v58 = vadd.f32 %v398_v54, %v349_v31  ;;  %v2706_v54 = vmov 0.0  }
 0x1b5   :  { %v451_v59 = vpop.permute.xlu1 %450  ;;  %620 = vst.msk [vmem:[#allocation2] ss:$8 sm:$0x7] %vm618_vm4, %v2706_v54  ;;  %623 = vst.msk [vmem:[#allocation2 + $0x61] ss:$8 sm:$0x7] %vm618_vm4, %v2706_v54 }
 0x1b6   :  { %v454_v60 = vsel %vm397_vm1, %v451_v59, %v447_v52  ;;  %406 = vrot.lane.b32.xlu1 %v402_v57, %s2704_s7  ;;  %408 = vrot.lane.b32.xlu0 %v403_v58, %s2704_s7  ;;  %v449_v61 = vpop.permute.xlu0 %448 }
 0x1b7   :  { %v453_v62 = vsel %vm397_vm1, %v447_v52, %v449_v61  ;;  %v455_v63 = vadd.f32 %v454_v60, %v370_v38  ;;  %v452_v1 = vsel %vm397_vm1, %v449_v61, %v451_v59 }
 0x1b8   :  { %v456_v0 = vadd.f32 %v453_v62, %v379_v44  ;;  %v457_v2 = vadd.f32 %v452_v1, %v388_v43 }
 0x1ba   :  { %458 = vrot.lane.b32.xlu1 %v455_v63, %s2704_s7  ;;  %460 = vrot.lane.b32.xlu0 %v456_v0, %s2704_s7 }
 0x1be   :  { %462 = vrot.lane.b32.xlu1 %v457_v2, %s2704_s7 }
 0x224   :  { %v405_v3 = vpop.permute.xlu0 %404 }
 0x228   :  { %v407_v4 = vpop.permute.xlu1 %406  ;;  %v409_v5 = vpop.permute.xlu0 %408 }
 0x229   :  { %v412_v6 = vsel %vm410_vm2, %v405_v3, %v407_v4  ;;  %v413_v7 = vsel %vm410_vm2, %v409_v5, %v405_v3  ;;  %v411_v10 = vsel %vm410_vm2, %v407_v4, %v409_v5 }
 0x22a   :  { %v415_v8 = vadd.f32 %v412_v6, %v402_v57  ;;  %v414_v9 = vadd.f32 %v413_v7, %v401_v51  ;;  %v416_v13 = vadd.f32 %v411_v10, %v403_v58 }
 0x22c   :  { %v459_v11 = vpop.permute.xlu1 %458  ;;  %419 = vrot.lane.b32.xlu1 %v415_v8, %s2705_s10  ;;  %417 = vrot.lane.b32.xlu0 %v414_v9, %s2705_s10  ;;  %v461_v12 = vpop.permute.xlu0 %460 }
 0x22d   :  { %v465_v14 = vsel %vm410_vm2, %v459_v11, %v461_v12 }
 0x22e   :  { %v468_v28 = vadd.f32 %v465_v14, %v456_v0 }
 0x230   :  { %v463_v16 = vpop.permute.xlu1 %462  ;;  %421 = vrot.lane.b32.xlu0 %v416_v13, %s2705_s10 }
 0x231   :  { %v466_v17 = vsel %vm410_vm2, %v463_v16, %v459_v11  ;;  %v464_v29 = vsel %vm410_vm2, %v461_v12, %v463_v16 }
 0x232   :  { %v467_v25 = vadd.f32 %v466_v17, %v455_v63  ;;  %v469_v30 = vadd.f32 %v464_v29, %v457_v2 }
 0x234   :  { %470 = vrot.lane.b32.xlu1 %v467_v25, %s2705_s10  ;;  %472 = vrot.lane.b32.xlu0 %v468_v28, %s2705_s10 }
 0x238   :  { %474 = vrot.lane.b32.xlu1 %v469_v30, %s2705_s10 }
 0x29e   :  { %v420_v31 = vpop.permute.xlu1 %419  ;;  %v418_v32 = vpop.permute.xlu0 %417 }
 0x29f   :  { %v425_v34 = vsel %vm423_vm3, %v418_v32, %v420_v31 }
 0x2a0   :  { %v428_v35 = vadd.f32 %v425_v34, %v415_v8 }
 0x2a2   :  { %432 = vrot.lane.b32.xlu1 %v428_v35, %s2701_s3  ;;  %v422_v36 = vpop.permute.xlu0 %421 }
 0x2a3   :  { %v426_v37 = vsel %vm423_vm3, %v422_v36, %v418_v32  ;;  %v424_v39 = vsel %vm423_vm3, %v420_v31, %v422_v36  ;;  %v2961_v36 = vshrl.u32 %v395_v45, 7 }
 0x2a4   :  { %v427_v38 = vadd.f32 %v426_v37, %v414_v9  ;;  %v429_v43 = vadd.f32 %v424_v39, %v416_v13  ;;  %v321_v39 = vld [vmem:[%s4320_s2] sm:$0x7]  ;;  %s2707_s2 = smov 104  }
 0x2a5   :  { %4376 = vst [vmem:[#allocation22_spill] sm:$0xff] %v2961_v36  ;;  %v2964_v37 = vsub.s32 2, %v2961_v36  ;;  %v698_v15 = vadd.s32 16, %v2961_v36 }
 0x2a6   :  { %v471_v40 = vpop.permute.xlu1 %470  ;;  %430 = vrot.lane.b32.xlu0 %v427_v38, %s2701_s3  ;;  %v473_v42 = vpop.permute.xlu0 %472 }
 0x2a7   :  { %v477_v44 = vsel %vm423_vm3, %v471_v40, %v473_v42  ;;  %4377 = vst [vmem:[#allocation23_spill] sm:$0xff] %v2964_v37 }
 0x2a8   :  { %v480_v51 = vadd.f32 %v477_v44, %v468_v28 }
 0x2aa   :  { %v475_v47 = vpop.permute.xlu1 %474  ;;  %434 = vrot.lane.b32.xlu0 %v429_v43, %s2701_s3 }
 0x2ab   :  { %v478_v48 = vsel %vm423_vm3, %v475_v47, %v471_v40  ;;  %v476_v52 = vsel %vm423_vm3, %v473_v42, %v475_v47  ;;  %v2973_v40 = vsub.s32 1, %v2961_v36  ;;  %v545_v42 = vrot.slane %v321_v39, %v2964_v37 }
 0x2ac   :  { %v479_v49 = vadd.f32 %v478_v48, %v467_v25  ;;  %v481_v53 = vadd.f32 %v476_v52, %v469_v30 }
 0x2ad   :  { %4379 = vst [vmem:[#allocation25_spill] sm:$0xff] %v2973_v40 }
 0x2ae   :  { %482 = vrot.lane.b32.xlu1 %v479_v49, %s2701_s3  ;;  %484 = vrot.lane.b32.xlu0 %v480_v51, %s2701_s3 }
 0x2b2   :  { %486 = vrot.lane.b32.xlu1 %v481_v53, %s2701_s3 }
 0x314   :  { %v433_v57 = vpop.permute.xlu1 %432 }
 0x318   :  { %v431_v55 = vpop.permute.xlu0 %430 }
 0x319   :  { %v438_v58 = vsel %vm436_vm5, %v431_v55, %v433_v57 }
 0x31a   :  { %v442_v60 = vadd.f32 %v438_v58, %v429_v43  ;;  %v322_v43 = vld [vmem:[#allocation8] sm:$0x7] }
 0x31b   :  { %v2985_v54 = vrot.slane %v322_v43, %v2964_v37 }
 0x31c   :  { %v435_v59 = vpop.permute.xlu0 %434  ;;  %v445_v3 = vmul.f32 0.001953125, %v442_v60 }
 0x31d   :  { %v437_v61 = vsel %vm436_vm5, %v433_v57, %v435_v59  ;;  %v439_v62 = vsel %vm436_vm5, %v435_v59, %v431_v55  ;;  %v2988_v55 = vrot.slane %v322_v43, %v2973_v40 }
 0x31e   :  { %v440_v63 = vadd.f32 %v437_v61, %v427_v38  ;;  %v441_v0 = vadd.f32 %v439_v62, %v428_v35  ;;  %v499_v9 = vmul.f32 %v445_v3, %v445_v3  ;;  %v2967_v38 = vsub.s32 0, %v2961_v36 }
 0x320   :  { %v483_v1 = vpop.permute.xlu1 %482  ;;  %v485_v2 = vpop.permute.xlu0 %484  ;;  %v443_v6 = vmul.f32 0.001953125, %v440_v63  ;;  %v444_v7 = vmul.f32 0.001953125, %v441_v0  ;;  %4378 = vst [vmem:[#allocation24_spill] sm:$0xff] %v2967_v38  ;;  %v514_v45 = vrot.slane %v445_v3, %v2967_v38  ;;  %v580_v52 = vrot.slane %v322_v43, %v2967_v38 }
 0x321   :  { %v489_v4 = vsel %vm436_vm5, %v483_v1, %v485_v2 }
 0x322   :  { %v493_v5 = vadd.f32 %v489_v4, %v481_v53  ;;  %v497_v17 = vmul.f32 %v443_v6, %v443_v6  ;;  %v498_v25 = vmul.f32 %v444_v7, %v444_v7  ;;  %v506_v44 = vrot.slane %v443_v6, %v2967_v38 }
 0x323   :  { %v2979_v47 = vrot.slane %v444_v7, %v2967_v38  ;;  %v520_v57 = vsub.f32 %v2836_v27, %v514_v45  ;;  %v517_v58 = vsub.f32 %v2826_v22, %v514_v45  ;;  %v523_v59 = vsub.f32 %v2822_v20, %v514_v45 }
 0x324   :  { %v487_v8 = vpop.permute.xlu1 %486  ;;  %v496_v10 = vmul.f32 0.001953125, %v493_v5  ;;  %v526_v60 = vsub.f32 %v2830_v24, %v514_v45  ;;  %v518_v62 = vsub.f32 %v2828_v23, %v506_v44  ;;  %v515_v63 = vsub.f32 %v2820_v19, %v506_v44 }
 0x325   :  { %v488_v11 = vsel %vm436_vm5, %v485_v2, %v487_v8  ;;  %v490_v12 = vsel %vm436_vm5, %v487_v8, %v483_v1  ;;  %v516_v1 = vsub.f32 %v2824_v21, %v2979_v47  ;;  %v519_v27 = vsub.f32 %v2834_v26, %v2979_v47 }
 0x326   :  { %v491_v13 = vadd.f32 %v488_v11, %v479_v49  ;;  %v492_v14 = vadd.f32 %v490_v12, %v480_v51  ;;  %v502_v16 = vsub.f32 %v496_v10, %v499_v9  ;;  %v537_v49 = vrot.slane %v321_v39, %v2967_v38 }
 0x327   :  { %v541_v51 = vrot.slane %v321_v39, %v2973_v40  ;;  %v521_v22 = vsub.f32 %v2848_v33, %v506_v44  ;;  %v524_v20 = vsub.f32 %v2869_v50, %v506_v44  ;;  %v522_v6 = vsub.f32 %v2859_v41, %v2979_v47 }
 0x328   :  { %v494_v28 = vmul.f32 0.001953125, %v491_v13  ;;  %v495_v29 = vmul.f32 0.001953125, %v492_v14  ;;  %v529_v30 = vadd.f32 1e-05, %v502_v16  ;;  %v525_v21 = vsub.f32 %v2875_v56, %v2979_v47 }
 0x32a   :  { %v500_v31 = vsub.f32 %v494_v28, %v497_v17  ;;  %v501_v32 = vsub.f32 %v495_v29, %v498_v25  ;;  %2523 = vrsqrt.f32 %v529_v30 }
 0x32c   :  { %v527_v34 = vadd.f32 1e-05, %v500_v31  ;;  %v528_v35 = vadd.f32 1e-05, %v501_v32 }
 0x32e   :  { %2525 = vrsqrt.f32 %v527_v34 }
 0x32f   :  { %2527 = vrsqrt.f32 %v528_v35 }
 0x337   :  { %v2524_v48 = vpop.eup %2523 }
 0x338   :  { %v551_v53 = vmul.f32 %v2524_v48, %v545_v42 }
 0x33a   :  { %v563_v0 = vrot.slane %v551_v53, %v2967_v38 }
 0x33b   :  { %v2526_v61 = vpop.eup %2525 }
 0x33c   :  { %v2528_v2 = vpop.eup %2527  ;;  %v549_v3 = vmul.f32 %v2526_v61, %v537_v49  ;;  %v569_v24 = vmul.f32 %v563_v0, %v520_v57  ;;  %v566_v4 = vmul.f32 %v563_v0, %v517_v58  ;;  %v572_v23 = vmul.f32 %v563_v0, %v523_v59 }
 0x33d   :  { %v550_v5 = vmul.f32 %v2528_v2, %v541_v51  ;;  %v575_v7 = vmul.f32 %v563_v0, %v526_v60 }
 0x33e   :  { %v555_v19 = vrot.slane %v549_v3, %v2967_v38  ;;  %v597_v8 = vadd.f32 %v2985_v54, %v569_v24  ;;  %v594_v26 = vadd.f32 %v2985_v54, %v566_v4  ;;  %v600_v50 = vadd.f32 %v2985_v54, %v572_v23 }
 0x33f   :  { %v559_v33 = vrot.slane %v550_v5, %v2967_v38 }
 0x340   :  { %v567_v9 = vmul.f32 %v555_v19, %v518_v62  ;;  %v564_v10 = vmul.f32 %v555_v19, %v515_v63  ;;  %v570_v11 = vmul.f32 %v555_v19, %v521_v22  ;;  %v573_v12 = vmul.f32 %v555_v19, %v524_v20 }
 0x341   :  { %v3012_v13 = vmax.f32 %v597_v8, 0.0  ;;  %v3014_v14 = vmax.f32 %v594_v26, 0.0  ;;  %v565_v41 = vmul.f32 %v559_v33, %v516_v1  ;;  %v568_v16 = vmul.f32 %v559_v33, %v519_v27 }
 0x342   :  { %v595_v17 = vadd.f32 %v580_v52, %v567_v9  ;;  %v592_v56 = vadd.f32 %v580_v52, %v564_v10  ;;  %v598_v25 = vadd.f32 %v580_v52, %v570_v11  ;;  %v3016_v28 = vmax.f32 %v600_v50, 0.0 }
 0x343   :  { %v645_v29 = vrot.slane %v3012_v13, 7  ;;  %v640_v30 = vrot.slane %v3014_v14, 7  ;;  %v593_v31 = vadd.f32 %v2988_v55, %v565_v41  ;;  %v596_v32 = vadd.f32 %v2988_v55, %v568_v16 }
 0x344   :  { %4380 = vst [vmem:[#allocation26_spill] sm:$0xff] %v3016_v28  ;;  %v3022_v34 = vmax.f32 %v595_v17, 0.0  ;;  %v3024_v35 = vmax.f32 %v592_v56, 0.0  ;;  %v3026_v39 = vmax.f32 %v598_v25, 0.0  ;;  %v651_v42 = vrot.slane %v3016_v28, 7 }
 0x345   :  { %v3030_v45 = vsel %vm637_vm6, %v640_v30, %v645_v29  ;;  %676 = vst [vmem:[#allocation2 + $0x10] sm:$0xfe] %v640_v30  ;;  %v3032_v43 = vmax.f32 %v593_v31, 0.0  ;;  %v3034_v44 = vmax.f32 %v596_v32, 0.0  ;;  %v601_v47 = vadd.f32 %v580_v52, %v573_v12 }
 0x346   :  { %1027 = vrot.lane.b32.xlu1 %v3022_v34, %s2694_s19  ;;  %v641_v48 = vrot.slane %v3022_v34, 7  ;;  %1025 = vrot.lane.b32.xlu0 %v3024_v35, %s2694_s19  ;;  %v638_v49 = vrot.slane %v3024_v35, 7  ;;  %v647_v51 = vrot.slane %v3026_v39, 7  ;;  %v3044_v53 = vsel %vm637_vm6, %v645_v29, %v651_v42 }
 0x347   :  { %v639_v57 = vrot.slane %v3032_v43, 7  ;;  %v643_v58 = vrot.slane %v3034_v44, 7  ;;  %v3048_v52 = vmax.f32 %v601_v47, 0.0  ;;  %v571_v59 = vmul.f32 %v559_v33, %v522_v6 }
 0x348   :  { %v3051_v60 = vsel %vm637_vm6, %v638_v49, %v641_v48  ;;  %674 = vst [vmem:[#allocation2] sm:$0xfe] %v638_v49  ;;  %v3054_v61 = vsel %vm637_vm6, %v641_v48, %v647_v51  ;;  %v603_v62 = vadd.f32 %v2985_v54, %v575_v7  ;;  %v574_v63 = vmul.f32 %v559_v33, %v525_v21 }
 0x349   :  { %4381 = vst [vmem:[#allocation27_spill] sm:$0xff] %v3048_v52  ;;  %675 = vst [vmem:[#allocation2 + $0x8] sm:$0xfe] %v639_v57  ;;  %v3058_v0 = vsel %vm637_vm6, %v639_v57, %v643_v58  ;;  %v653_v1 = vrot.slane %v3048_v52, 7  ;;  %v599_v2 = vadd.f32 %v2988_v55, %v571_v59  ;;  %v1252_v33 = vrot.slane %v3051_v60, 2 }
 0x34a   :  { %1043 = vrot.lane.b32.xlu1 %v3012_v13, %s2694_s19  ;;  %1041 = vrot.lane.b32.xlu0 %v3014_v14, %s2694_s19  ;;  %v3066_v3 = vmax.f32 %v603_v62, 0.0  ;;  %v602_v27 = vadd.f32 %v2988_v55, %v574_v63  ;;  %v1255_v9 = vrot.slane %v3058_v0, 2  ;;  %v1260_v12 = vrot.slane %v3054_v61, 2 }
 0x34b   :  { %v3070_v54 = vsel %vm637_vm6, %v647_v51, %v653_v1  ;;  %686 = vst [vmem:[#allocation2 + $0x60] sm:$0x1] %v653_v1  ;;  %v3072_v22 = vmax.f32 %v599_v2, 0.0  ;;  %v1258_v41 = vrot.slane %v3030_v45, 2  ;;  %v1264_v16 = vrot.slane %v3044_v53, 2 }
 0x34c   :  { %4382 = vst [vmem:[#allocation28_spill] sm:$0xff] %v3066_v3  ;;  %v657_v20 = vrot.slane %v3066_v3, 7  ;;  %v3075_v24 = vmax.f32 %v602_v27, 0.0  ;;  %v3136_v21 = vld [vmem:[#allocation2 + $0x10] sm:$0xff]  ;;  %v3199_v25 = vsel %vm1250_vm7, %v1252_v33, %v1260_v12  ;;  %v1266_v47 = vrot.slane %v3070_v54, 2 }
 0x34d   :  { %4383 = vst [vmem:[#allocation29_spill] sm:$0xff] %v3072_v22  ;;  %v649_v4 = vrot.slane %v3072_v22, 7  ;;  %v1231_v17 = vld [vmem:[#allocation2 + $0x10] sm:$0xfc]  ;;  %4387 = vst [vmem:[#allocation33_spill] sm:$0xff] %v3199_v25  ;;  %v3202_v29 = vsel %vm1250_vm7, %v1258_v41, %v1264_v16 }
 0x34e   :  { %4384 = vst [vmem:[#allocation30_spill] sm:$0xff] %v3075_v24  ;;  %1033 = vrot.lane.b32.xlu1 %v3032_v43, %s2694_s19  ;;  %1035 = vrot.lane.b32.xlu0 %v3034_v44, %s2694_s19  ;;  %v3083_v55 = vsel %vm637_vm6, %v651_v42, %v657_v20  ;;  %688 = vst [vmem:[#allocation2 + $0x70] sm:$0x1] %v657_v20  ;;  %v655_v5 = vrot.slane %v3075_v24, 7  ;;  %v1257_v30 = vrot.slane %v1231_v17, 2 }
 0x34f   :  { %v3087_v23 = vsel %vm637_vm6, %v643_v58, %v649_v4  ;;  %v3124_v6 = vld [vmem:[#allocation2] sm:$0xff]  ;;  %4388 = vst [vmem:[#allocation34_spill] sm:$0xff] %v3202_v29  ;;  %v1270_v48 = vrot.slane %v3083_v55, 2  ;;  %v3221_v51 = vsel %vm1250_vm7, %v1260_v12, %v1266_v47 }
 0x350   :  { %v3090_v19 = vsel %vm637_vm6, %v649_v4, %v655_v5  ;;  %687 = vst [vmem:[#allocation2 + $0x68] sm:$0x1] %v655_v5  ;;  %v3130_v7 = vld [vmem:[#allocation2 + $0x8] sm:$0xff]  ;;  %v1229_v8 = vld [vmem:[#allocation2] sm:$0xfc]  ;;  %v1262_v10 = vrot.slane %v3087_v23, 2  ;;  %v3209_v32 = vsel %vm1250_vm7, %v1257_v30, %v1258_v41 }
 0x351   :  { %v1251_v26 = vrot.slane %v1229_v8, 2  ;;  %v1230_v56 = vld [vmem:[#allocation2 + $0x8] sm:$0xfc]  ;;  %4389 = vst [vmem:[#allocation35_spill] sm:$0xff] %v3209_v32  ;;  %4391 = vst [vmem:[#allocation37_spill] sm:$0xff] %v3221_v51  ;;  %v3224_v57 = vsel %vm1250_vm7, %v1264_v16, %v1270_v48  ;;  %v1268_v59 = vrot.slane %v3090_v19, 2 }
 0x352   :  { %1029 = vrot.lane.b32.xlu1 %v3026_v39, %s2694_s19  ;;  %1045 = vrot.lane.b32.xlu0 %v3016_v28, %s2694_s19  ;;  %v3189_v11 = vsel %vm1250_vm7, %v1255_v9, %v1262_v10  ;;  %v1254_v31 = vrot.slane %v1230_v56, 2  ;;  %v1232_v49 = vld [vmem:[#allocation2 + $0x60] sm:$0x3]  ;;  %4392 = vst [vmem:[#allocation38_spill] sm:$0xff] %v3224_v57 }
 0x353   :  { %v3180_v50 = vsel %vm1250_vm7, %v1251_v26, %v1252_v33  ;;  %4386 = vst [vmem:[#allocation32_spill] sm:$0xff] %v3189_v11  ;;  %v1272_v58 = vrot.slane %v1232_v49, 2  ;;  %v3235_v2 = vsel %vm1250_vm7, %v1262_v10, %v1268_v59 }
 0x354   :  { %4385 = vst [vmem:[#allocation31_spill] sm:$0xff] %v3180_v50  ;;  %v3212_v42 = vsel %vm1250_vm7, %v1254_v31, %v1255_v9  ;;  %4394 = vst [vmem:[#allocation40_spill] sm:$0xff] %v3235_v2 }
 0x355   :  { %4390 = vst [vmem:[#allocation36_spill] sm:$0xff] %v3212_v42  ;;  %v1234_v62 = vld [vmem:[#allocation2 + $0x70] sm:$0x3]  ;;  %v3232_v1 = vsel %vm1250_vm7, %v1266_v47, %v1272_v58 }
 0x356   :  { %1031 = vrot.lane.b32.xlu1 %v3048_v52, %s2694_s19  ;;  %1037 = vrot.lane.b32.xlu0 %v3072_v22, %s2694_s19  ;;  %4393 = vst [vmem:[#allocation39_spill] sm:$0xff] %v3232_v1  ;;  %v1276_v27 = vrot.slane %v1234_v62, 2 }
 0x357   :  { %v1233_v63 = vld [vmem:[#allocation2 + $0x68] sm:$0x3] }
 0x358   :  { %v1274_v20 = vrot.slane %v1233_v63, 2  ;;  %v3246_v8 = vsel %vm1250_vm7, %v1270_v48, %v1276_v27 }
 0x359   :  { %4395 = vst [vmem:[#allocation41_spill] sm:$0xff] %v3246_v8 }
 0x35a   :  { %1145 = vrot.lane.b32.xlu1 %v3024_v35, %s2707_s2  ;;  %1047 = vrot.lane.b32.xlu0 %v3066_v3, %s2694_s19  ;;  %v3249_v26 = vsel %vm1250_vm7, %v1268_v59, %v1274_v20 }
 0x35b   :  { %4396 = vst [vmem:[#allocation42_spill] sm:$0xff] %v3249_v26 }
 0x35e   :  { %1161 = vrot.lane.b32.xlu1 %v3014_v14, %s2707_s2  ;;  %1147 = vrot.lane.b32.xlu0 %v3022_v34, %s2707_s2 }
 0x362   :  { %1039 = vrot.lane.b32.xlu1 %v3075_v24, %s2694_s19  ;;  %1163 = vrot.lane.b32.xlu0 %v3012_v13, %s2707_s2 }
 0x366   :  { %1155 = vrot.lane.b32.xlu1 %v3034_v44, %s2707_s2  ;;  %1153 = vrot.lane.b32.xlu0 %v3032_v43, %s2707_s2 }
 0x36a   :  { %1165 = vrot.lane.b32.xlu1 %v3016_v28, %s2707_s2  ;;  %1149 = vrot.lane.b32.xlu0 %v3026_v39, %s2707_s2 }
 0x36e   :  { %1157 = vrot.lane.b32.xlu1 %v3072_v22, %s2707_s2  ;;  %1167 = vrot.lane.b32.xlu0 %v3066_v3, %s2707_s2 }
 0x372   :  { %1151 = vrot.lane.b32.xlu1 %v3048_v52, %s2707_s2  ;;  %776 = vrot.lane.b32.xlu0 %v3124_v6, %s2694_s19  ;;  %v1111_v52 = vsub.s32 4, %v2961_v36 }
 0x376   :  { %1159 = vrot.lane.b32.xlu1 %v3075_v24, %s2707_s2  ;;  %784 = vrot.lane.b32.xlu0 %v3130_v7, %s2694_s19 }
 0x37a   :  { %792 = vrot.lane.b32.xlu1 %v3136_v21, %s2694_s19  ;;  %938 = vrot.lane.b32.xlu0 %v3136_v21, %s2707_s2 }
 0x37e   :  { %922 = vrot.lane.b32.xlu1 %v3124_v6, %s2707_s2  ;;  %794 = vrot.lane.b32.xlu0 %v3030_v45, %s2694_s19 }
 0x382   :  { %930 = vrot.lane.b32.xlu1 %v3130_v7, %s2707_s2  ;;  %780 = vrot.lane.b32.xlu0 %v3054_v61, %s2694_s19 }
 0x386   :  { %796 = vrot.lane.b32.xlu0 %v3044_v53, %s2694_s19  ;;  %778 = vrot.lane.b32.xlu1 %v3051_v60, %s2694_s19 }
 0x38a   :  { %924 = vrot.lane.b32.xlu0 %v3051_v60, %s2707_s2  ;;  %786 = vrot.lane.b32.xlu1 %v3058_v0, %s2694_s19 }
 0x38e   :  { %932 = vrot.lane.b32.xlu0 %v3058_v0, %s2707_s2  ;;  %788 = vrot.lane.b32.xlu1 %v3087_v23, %s2694_s19 }
 0x392   :  { %798 = vrot.lane.b32.xlu0 %v3083_v55, %s2694_s19  ;;  %940 = vrot.lane.b32.xlu1 %v3030_v45, %s2707_s2 }
 0x396   :  { %934 = vrot.lane.b32.xlu0 %v3087_v23, %s2707_s2  ;;  %782 = vrot.lane.b32.xlu1 %v3070_v54, %s2694_s19 }
 0x39a   :  { %790 = vrot.lane.b32.xlu0 %v3090_v19, %s2694_s19  ;;  %926 = vrot.lane.b32.xlu1 %v3054_v61, %s2707_s2 }
 0x39e   :  { %944 = vrot.lane.b32.xlu0 %v3083_v55, %s2707_s2  ;;  %942 = vrot.lane.b32.xlu1 %v3044_v53, %s2707_s2 }
 0x3a2   :  { %928 = vrot.lane.b32.xlu1 %v3070_v54, %s2707_s2  ;;  %1290 = vrot.lane.b32.xlu0 %v3180_v50, %s2694_s19 }
 0x3a6   :  { %936 = vrot.lane.b32.xlu1 %v3090_v19, %s2707_s2  ;;  %1300 = vrot.lane.b32.xlu0 %v3189_v11, %s2694_s19 }
 0x3aa   :  { %1292 = vrot.lane.b32.xlu1 %v3199_v25, %s2694_s19  ;;  %1308 = vrot.lane.b32.xlu0 %v3202_v29, %s2694_s19 }
 0x3ae   :  { %1306 = vrot.lane.b32.xlu1 %v3209_v32, %s2694_s19  ;;  %1298 = vrot.lane.b32.xlu0 %v3212_v42, %s2694_s19 }
 0x3b2   :  { %1294 = vrot.lane.b32.xlu1 %v3221_v51, %s2694_s19  ;;  %1310 = vrot.lane.b32.xlu0 %v3224_v57, %s2694_s19 }
 0x3b6   :  { %1296 = vrot.lane.b32.xlu1 %v3232_v1, %s2694_s19  ;;  %1302 = vrot.lane.b32.xlu0 %v3235_v2, %s2694_s19 }
 0x3b8   :  { %v3241_v4 = vpop.permute.xlu1 %1027  ;;  %v3243_v5 = vpop.permute.xlu0 %1025 }
 0x3ba   :  { %1312 = vrot.lane.b32.xlu1 %v3246_v8, %s2694_s19  ;;  %1304 = vrot.lane.b32.xlu0 %v3249_v26, %s2694_s19 }
 0x3bc   :  { %v3255_v33 = vpop.permute.xlu1 %1043  ;;  %v3257_v9 = vpop.permute.xlu0 %1041 }
 0x3be   :  { %1444 = vrot.lane.b32.xlu1 %v3199_v25, %s2707_s2  ;;  %1442 = vrot.lane.b32.xlu0 %v3180_v50, %s2707_s2 }
 0x3c0   :  { %v3263_v10 = vpop.permute.xlu1 %1033  ;;  %v3265_v12 = vpop.permute.xlu0 %1035 }
 0x3c2   :  { %1458 = vrot.lane.b32.xlu1 %v3209_v32, %s2707_s2  ;;  %1452 = vrot.lane.b32.xlu0 %v3189_v11, %s2707_s2  ;;  %v3336_v11 = vld [vmem:[#allocation9 + $0x8] sm:$0xff] }
 0x3c3   :  { %v3362_v3 = vrot.slane %v3336_v11, %v2973_v40 }
 0x3c4   :  { %v3271_v41 = vpop.permute.xlu1 %1029  ;;  %v3273_v16 = vpop.permute.xlu0 %1045 }
 0x3c6   :  { %1450 = vrot.lane.b32.xlu1 %v3212_v42, %s2707_s2  ;;  %1460 = vrot.lane.b32.xlu0 %v3202_v29, %s2707_s2 }
 0x3c8   :  { %v3279_v17 = vpop.permute.xlu1 %1031  ;;  %v3281_v56 = vpop.permute.xlu0 %1037 }
 0x3c9   :  { %4397 = vst [vmem:[#allocation43_spill] sm:$0xff] %v3279_v17  ;;  %4398 = vst [vmem:[#allocation44_spill] sm:$0xff] %v3281_v56 }
 0x3ca   :  { %1462 = vrot.lane.b32.xlu1 %v3224_v57, %s2707_s2  ;;  %1446 = vrot.lane.b32.xlu0 %v3221_v51, %s2707_s2  ;;  %v718_v51 = vand.u32 15, %v698_v15 }
 0x3cc   :  { %v3287_v30 = vpop.permute.xlu1 %1145  ;;  %v3289_v31 = vpop.permute.xlu0 %1047  ;;  %vm3355_vm10 = vcmp.ge.s32.totalorder %v718_v51, 1 }
 0x3cd   :  { %4399 = vst [vmem:[#allocation45_spill] sm:$0xff] %v3287_v30  ;;  %4400 = vst [vmem:[#allocation46_spill] sm:$0xff] %v3289_v31  ;;  %v882_v28 = vsel %vm3355_vm10, %v3044_v53, 0.0  ;;  %v3481_v53 = vrot.slane %v3336_v11, %v2964_v37 }
 0x3ce   :  { %1448 = vrot.lane.b32.xlu1 %v3232_v1, %s2707_s2  ;;  %1454 = vrot.lane.b32.xlu0 %v3235_v2, %s2707_s2  ;;  %v704_v1 = vand.u32 15, %v2961_v36  ;;  %vm3633_vm15 = vmand %vm3355_vm10, %vm758_vm11 }
 0x3d0   :  { %v3295_v47 = vpop.permute.xlu1 %1161  ;;  %v3297_v48 = vpop.permute.xlu0 %1147  ;;  %vm3338_vm9 = vcmp.ge.s32.totalorder %v704_v1, 1 }
 0x3d1   :  { %4401 = vst [vmem:[#allocation47_spill] sm:$0xff] %v3295_v47  ;;  %4402 = vst [vmem:[#allocation48_spill] sm:$0xff] %v3297_v48  ;;  %v875_v15 = vsel %vm3338_vm9, %v3130_v7, 0.0 }
 0x3d2   :  { %1464 = vrot.lane.b32.xlu1 %v3246_v8, %s2707_s2  ;;  %1456 = vrot.lane.b32.xlu0 %v3249_v26, %s2707_s2  ;;  %vm3391_vm12 = vmand %vm3338_vm9, %vm758_vm11 }
 0x3d4   :  { %v3303_v49 = vpop.permute.xlu1 %1039  ;;  %v3305_v58 = vpop.permute.xlu0 %1163 }
 0x3d5   :  { %4403 = vst [vmem:[#allocation49_spill] sm:$0xff] %v3303_v49  ;;  %4404 = vst [vmem:[#allocation50_spill] sm:$0xff] %v3305_v58 }
 0x3d8   :  { %v3308_v59 = vpop.permute.xlu1 %1155  ;;  %v3310_v62 = vpop.permute.xlu0 %1153 }
 0x3d9   :  { %4405 = vst [vmem:[#allocation51_spill] sm:$0xff] %v3308_v59  ;;  %v3316_v63 = vsel %vm946_vm8, %v3308_v59, %v3305_v58 }
 0x3da   :  { %4406 = vst [vmem:[#allocation52_spill] sm:$0xff] %v3316_v63 }
 0x3dc   :  { %v1166_v27 = vpop.permute.xlu1 %1165  ;;  %v1150_v20 = vpop.permute.xlu0 %1149 }
 0x3dd   :  { %v3320_v18 = vsel %vm946_vm8, %v1166_v27, %v1150_v20 }
 0x3de   :  { %4407 = vst [vmem:[#allocation53_spill] sm:$0xff] %v3320_v18  ;;  %v3381_v18 = vadd.s32 256, %v2887_v46  ;;  %v1538_v46 = vld [vmem:[%s4323_s5] sm:$0x7]  ;;  %s2708_s5 = smov 16  }
 0x3e0   :  { %v1158_v2 = vpop.permute.xlu1 %1157  ;;  %v1168_v26 = vpop.permute.xlu0 %1167  ;;  %4417 = vst [vmem:[#allocation59_spill] sm:$0xff] %v3381_v18  ;;  %vm763_vm13 = vcmp.lt.s32.totalorder %v3381_v18, 360 }
 0x3e1   :  { %v3325_v57 = vsel %vm946_vm8, %v1158_v2, %v1166_v27  ;;  %v3329_v8 = vsel %vm946_vm8, %v1150_v20, %v1158_v2  ;;  %v3342_v27 = vld [vmem:[#allocation9 + $0x10] sm:$0xff]  ;;  %v3346_v2 = vrot.slane %v3336_v11, %v2967_v38  ;;  %vm3431_vm14 = vmand %vm3338_vm9, %vm763_vm13 }
 0x3e2   :  { %4408 = vst [vmem:[#allocation54_spill] sm:$0xff] %v3325_v57  ;;  %4409 = vst [vmem:[#allocation55_spill] sm:$0xff] %v3329_v8  ;;  %v3353_v20 = vrot.slane %v3342_v27, %v2973_v40  ;;  %v3374_v57 = vld [vmem:[#allocation9] sm:$0xff]  ;;  %v876_v8 = vsel %vm3338_vm9, %v3136_v21, 0.0  ;;  %v3410_v17 = vrot.slane %v3342_v27, %v1111_v52 }
 0x3e3   :  { %v3397_v21 = vrot.slane %v3374_v57, %v2967_v38  ;;  %vm3709_vm4 = vmand %vm3355_vm10, %vm763_vm13 }
 0x3e4   :  { %v1152_v42 = vpop.permute.xlu1 %1151  ;;  %v777_v32 = vpop.permute.xlu0 %776  ;;  %v900_v58 = vmul.f32 %v3353_v20, %v876_v8 }
 0x3e5   :  { %v3334_v50 = vsel %vm946_vm8, %v1168_v26, %v1152_v42 }
 0x3e6   :  { %4410 = vst [vmem:[#allocation56_spill] sm:$0xff] %v3334_v50 }
 0x3e8   :  { %v1160_v1 = vpop.permute.xlu1 %1159  ;;  %v785_v24 = vpop.permute.xlu0 %784 }
 0x3e9   :  { %v3366_v50 = vsel %vm946_vm8, %v1160_v1, %v1168_v26  ;;  %v3370_v7 = vsel %vm946_vm8, %v1152_v42, %v1160_v1  ;;  %v804_v51 = vsel %vm397_vm1, %v777_v32, %v785_v24  ;;  %v899_v42 = vmul.f32 %v3362_v3, %v875_v15 }
 0x3ea   :  { %4415 = vst [vmem:[#allocation57_spill] sm:$0xff] %v3366_v50  ;;  %4416 = vst [vmem:[#allocation58_spill] sm:$0xff] %v3370_v7  ;;  %v839_v26 = vsel %vm3338_vm9, %v804_v51, 0.0  ;;  %v3401_v7 = vrot.slane %v3342_v27, %v2967_v38  ;;  %v889_v15 = vrot.slane %v3374_v57, %v2973_v40  ;;  %v874_v51 = vsel %vm3338_vm9, %v3124_v6, 0.0 }
 0x3eb   :  { %v863_v1 = vmul.f32 %v3346_v2, %v839_v26  ;;  %v1075_v26 = vsub.s32 3, %v2961_v36  ;;  %v3417_v40 = vrot.slane %v3374_v57, %v1111_v52  ;;  %v3437_v50 = vrot.slane %v3342_v27, %v2964_v37 }
 0x3ec   :  { %4420 = vst [vmem:[#allocation60_spill] sm:$0xff] %v3401_v7  ;;  %v793_v49 = vpop.permute.xlu1 %792  ;;  %v939_v31 = vpop.permute.xlu0 %938 }
 0x3ed   :  { %v911_v63 = vadd.f32 %v899_v42, %v863_v1  ;;  %v800_v56 = vsel %vm397_vm1, %v785_v24, %v793_v49  ;;  %v808_v38 = vsel %vm397_vm1, %v793_v49, %v777_v32  ;;  %v898_v42 = vmul.f32 %v889_v15, %v874_v51  ;;  %4423 = vst [vmem:[#allocation61_spill] sm:$0xff] %v3437_v50 }
 0x3ee   :  { %v838_v6 = vsel %vm3391_vm12, %v808_v38, 0.0  ;;  %v840_v48 = vsel %vm3338_vm9, %v800_v56, 0.0  ;;  %v880_v38 = vsel %vm3355_vm10, %v3054_v61, 0.0  ;;  %v3443_v8 = vrot.slane %v3374_v57, %v1075_v26 }
 0x3ef   :  { %v862_v1 = vmul.f32 %v3397_v21, %v838_v6  ;;  %v864_v24 = vmul.f32 %v3401_v7, %v840_v48  ;;  %v3446_v56 = vrot.slane %v3342_v27, %v1075_v26  ;;  %v3451_v51 = vrot.slane %v3336_v11, %v1111_v52 }
 0x3f0   :  { %v923_v48 = vpop.permute.xlu1 %922  ;;  %v3448_v49 = vpop.permute.xlu0 %794  ;;  %v1057_v6 = vsel %vm397_vm1, %v3257_v9, %v3243_v5  ;;  %v3463_v7 = vmul.f32 %v889_v15, %v3051_v60  ;;  %v1049_v52 = vsel %vm397_vm1, %v3263_v10, %v3257_v9  ;;  %v881_v60 = vsel %vm3355_vm10, %v3087_v23, 0.0 }
 0x3f1   :  { %v910_v18 = vadd.f32 %v898_v42, %v862_v1  ;;  %v912_v59 = vadd.f32 %v900_v58, %v864_v24  ;;  %v955_v61 = vsel %vm946_vm8, %v939_v31, %v923_v48  ;;  %v3472_v58 = vmul.f32 %v889_v15, %v3070_v54 }
 0x3f2   :  { %v979_v22 = vsel %vm3431_vm14, %v955_v61, 0.0  ;;  %v3477_v1 = vrot.slane %v3374_v57, %v2964_v37  ;;  %v1061_v9 = vsel %vm758_vm11, %v1057_v6, 0.0  ;;  %v3489_v54 = vrot.slane %v3336_v11, %v1075_v26 }
 0x3f3   :  { %4424 = vst [vmem:[#allocation62_spill] sm:$0xff] %v3472_v58  ;;  %v1003_v42 = vmul.f32 %v3437_v50, %v979_v22  ;;  %v1195_v22 = vsub.s32 5, %v2961_v36  ;;  %v1087_v61 = vmul.f32 %v3446_v56, %v1049_v52  ;;  %v1053_v26 = vsel %vm397_vm1, %v3243_v5, %v3263_v10 }
 0x3f4   :  { %v931_v24 = vpop.permute.xlu1 %930  ;;  %v3492_v32 = vpop.permute.xlu0 %780  ;;  %v3507_v50 = vmul.f32 %v889_v15, %v880_v38  ;;  %v1123_v15 = vmul.f32 %v3410_v17, %v3014_v14  ;;  %v903_v14 = vmul.f32 %v3353_v20, %v3030_v45  ;;  %v1121_v45 = vmul.f32 %v3417_v40, %v3024_v35 }
 0x3f5   :  { %v1015_v58 = vadd.f32 %v1003_v42, %v912_v59  ;;  %v947_v37 = vsel %vm946_vm8, %v931_v24, %v939_v31  ;;  %v951_v23 = vsel %vm946_vm8, %v923_v48, %v931_v24  ;;  %v3513_v48 = vmul.f32 %v3362_v3, %v3058_v0 }
 0x3f6   :  { %v977_v6 = vsel %vm3338_vm9, %v951_v23, 0.0  ;;  %v978_v36 = vsel %vm3338_vm9, %v947_v37, 0.0  ;;  %v1085_v42 = vmul.f32 %v3443_v8, %v1061_v9  ;;  %v3517_v5 = vrot.slane %v3374_v57, %v1195_v22 }
 0x3f7   :  { %v1099_v59 = vadd.f32 %v1087_v61, %v1015_v58  ;;  %v1001_v52 = vmul.f32 %v3477_v1, %v977_v6  ;;  %v1002_v31 = vmul.f32 %v3481_v53, %v978_v36  ;;  %v3520_v10 = vrot.slane %v3336_v11, %v1195_v22 }
 0x3f8   :  { %v3522_v37 = vpop.permute.xlu0 %796  ;;  %v779_v29 = vpop.permute.xlu1 %778  ;;  %v1086_v36 = vmul.f32 %v3489_v54, %v1053_v26  ;;  %v1169_v9 = vsel %vm946_vm8, %v3310_v62, %v3295_v47  ;;  %v1173_v24 = vsel %vm946_vm8, %v3287_v30, %v3310_v62  ;;  %v1124_v26 = vmul.f32 %v3417_v40, %v3022_v34  ;;  %v4438_v30 = vld [vmem:[#allocation44_spill] sm:$0xff] }
 0x3f9   :  { %v1013_v38 = vadd.f32 %v1001_v52, %v910_v18  ;;  %v1014_v58 = vadd.f32 %v1002_v31, %v911_v63  ;;  %v809_v0 = vsel %vm397_vm1, %v3448_v49, %v779_v29  ;;  %v3540_v61 = vadd.f32 %v1123_v15, %v1099_v59 }
 0x3fa   :  { %v841_v23 = vsel %vm758_vm11, %v809_v0, 0.0  ;;  %v3547_v6 = vrot.slane %v3342_v27, %v1195_v22  ;;  %v3550_v62 = vmul.f32 %v3362_v3, %v881_v60  ;;  %v1122_v59 = vmul.f32 %v3451_v51, %v3032_v43 }
 0x3fb   :  { %4425 = vst [vmem:[#allocation63_spill] sm:$0xff] %v3540_v61  ;;  %v1097_v18 = vadd.f32 %v1085_v42, %v1013_v38  ;;  %v1098_v63 = vadd.f32 %v1086_v36, %v1014_v58  ;;  %v1058_v42 = vsel %vm397_vm1, %v3255_v33, %v3241_v4  ;;  %v1205_v34 = vmul.f32 %v3517_v5, %v1173_v24  ;;  %v4437_v61 = vld [vmem:[#allocation61_spill] sm:$0xff] }
 0x3fc   :  { %v925_v52 = vpop.permute.xlu0 %924  ;;  %v787_v31 = vpop.permute.xlu1 %786  ;;  %v1206_v22 = vmul.f32 %v3520_v10, %v1169_v9  ;;  %v3563_v15 = vmul.f32 %v3353_v20, %v882_v28  ;;  %v865_v60 = vmul.f32 %v3397_v21, %v841_v23  ;;  %v1125_v43 = vmul.f32 %v3451_v51, %v3034_v44 }
 0x3fd   :  { %v805_v35 = vsel %vm397_vm1, %v779_v29, %v787_v31  ;;  %v1133_v36 = vadd.f32 %v1121_v45, %v1097_v18  ;;  %v1134_v38 = vadd.f32 %v1122_v59, %v1098_v63  ;;  %v3572_v58 = vmul.f32 %v3362_v3, %v3090_v19 }
 0x3fe   :  { %v3576_v0 = vmul.f32 %v3353_v20, %v3083_v55  ;;  %v3580_v28 = vmul.f32 %v3410_v17, %v3012_v13  ;;  %v1064_v29 = vsel %vm758_vm11, %v1058_v42, 0.0  ;;  %v801_v9 = vsel %vm397_vm1, %v787_v31, %v3448_v49  ;;  %v4428_v31 = vld [vmem:[#allocation29_spill] sm:$0xff]  ;;  %v4429_v42 = vld [vmem:[#allocation60_spill] sm:$0xff] }
 0x3ff   :  { %v3587_v18 = vadd.f32 %v1205_v34, %v1133_v36  ;;  %v3589_v3 = vadd.f32 %v1206_v22, %v1134_v38  ;;  %v1054_v55 = vsel %vm397_vm1, %v3241_v4, %v3265_v12  ;;  %v1059_v13 = vsel %vm397_vm1, %v3273_v16, %v3271_v41  ;;  %v4432_v36 = vld [vmem:[#allocation48_spill] sm:$0xff] }
 0x400   :  { %v933_v44 = vpop.permute.xlu0 %932  ;;  %v789_v24 = vpop.permute.xlu1 %788  ;;  %v866_v19 = vmul.f32 %v3346_v2, %v805_v35  ;;  %v913_v49 = vadd.f32 %v3463_v7, %v865_v60  ;;  %v3606_v23 = vmul.f32 %v3417_v40, %v3026_v39  ;;  %v3610_v4 = vmul.f32 %v3451_v51, %v4428_v31  ;;  %v4430_v7 = vld [vmem:[#allocation26_spill] sm:$0xff]  ;;  %v4431_v35 = vld [vmem:[#allocation51_spill] sm:$0xff] }
 0x401   :  { %4426 = vst [vmem:[#allocation64_spill] sm:$0xff] %v3587_v18  ;;  %4427 = vst [vmem:[#allocation65_spill] sm:$0xff] %v3589_v3  ;;  %v952_v20 = vsel %vm946_vm8, %v925_v52, %v933_v44  ;;  %v1088_v45 = vmul.f32 %v3443_v8, %v1064_v29  ;;  %v1050_v59 = vsel %vm397_vm1, %v3265_v12, %v3255_v33  ;;  %v1067_v60 = vsel %vm758_vm11, %v1059_v13, 0.0  ;;  %v4436_v18 = vld [vmem:[#allocation50_spill] sm:$0xff] }
 0x402   :  { %v1004_v63 = vmul.f32 %v3477_v1, %v952_v20  ;;  %v867_v34 = vmul.f32 %v4429_v42, %v801_v9  ;;  %v3620_v22 = vmul.f32 %v3410_v17, %v4430_v7  ;;  %v1089_v39 = vmul.f32 %v3489_v54, %v1054_v55 }
 0x403   :  { %v1174_v38 = vsel %vm946_vm8, %v4432_v36, %v4431_v35  ;;  %v810_v12 = vsel %vm397_vm1, %v3522_v37, %v3492_v32  ;;  %v914_v9 = vadd.f32 %v3513_v48, %v866_v19  ;;  %v1178_v48 = vsel %vm946_vm8, %v4436_v18, %v4432_v36 }
 0x404   :  { %v1016_v29 = vadd.f32 %v1004_v63, %v913_v49  ;;  %v799_v20 = vpop.permute.xlu0 %798  ;;  %v941_v31 = vpop.permute.xlu1 %940  ;;  %v806_v63 = vsel %vm397_vm1, %v3492_v32, %v789_v24  ;;  %v915_v19 = vadd.f32 %v903_v14, %v867_v34  ;;  %v802_v32 = vsel %vm397_vm1, %v789_v24, %v3522_v37 }
 0x405   :  { %v948_v55 = vsel %vm946_vm8, %v933_v44, %v941_v31  ;;  %v956_v13 = vsel %vm946_vm8, %v941_v31, %v925_v52  ;;  %v1208_v44 = vmul.f32 %v3517_v5, %v1174_v38  ;;  %v1090_v47 = vmul.f32 %v3446_v56, %v1050_v59 }
 0x406   :  { %v1100_v49 = vadd.f32 %v1088_v45, %v1016_v29  ;;  %v982_v35 = vsel %vm763_vm13, %v956_v13, 0.0  ;;  %v1005_v3 = vmul.f32 %v3481_v53, %v948_v55  ;;  %v844_v45 = vsel %vm3633_vm15, %v810_v12, 0.0 }
 0x407   :  { %v1006_v52 = vmul.f32 %v4437_v61, %v982_v35  ;;  %v1055_v14 = vsel %vm397_vm1, %v3271_v41, %v4438_v30  ;;  %v845_v18 = vsel %vm3355_vm10, %v806_v63, 0.0  ;;  %v1051_v37 = vsel %vm397_vm1, %v4438_v30, %v3273_v16  ;;  %v4440_v63 = vld [vmem:[#allocation43_spill] sm:$0xff]  ;;  %v4441_v35 = vld [vmem:[#allocation46_spill] sm:$0xff] }
 0x408   :  { %v1136_v29 = vadd.f32 %v1124_v26, %v1100_v49  ;;  %v1017_v31 = vadd.f32 %v1005_v3, %v914_v9  ;;  %v935_v55 = vpop.permute.xlu0 %934  ;;  %v783_v13 = vpop.permute.xlu1 %782  ;;  %v1091_v26 = vmul.f32 %v3443_v8, %v1067_v60  ;;  %v1186_v59 = vsel %vm763_vm13, %v1178_v48, 0.0  ;;  %v4439_v60 = vld [vmem:[#allocation52_spill] sm:$0xff] }
 0x409   :  { %v1018_v34 = vadd.f32 %v1006_v52, %v915_v19  ;;  %v868_v36 = vmul.f32 %v3397_v21, %v844_v45  ;;  %v846_v41 = vsel %vm3355_vm10, %v802_v32, 0.0  ;;  %v1092_v33 = vmul.f32 %v3489_v54, %v1055_v14 }
 0x40a   :  { %v1101_v24 = vadd.f32 %v1089_v39, %v1017_v31  ;;  %v3675_v3 = vadd.f32 %v1208_v44, %v1136_v29  ;;  %v1209_v12 = vmul.f32 %v3520_v10, %v4439_v60  ;;  %v869_v9 = vmul.f32 %v3346_v2, %v845_v18 }
 0x40b   :  { %v1102_v38 = vadd.f32 %v1090_v47, %v1018_v34  ;;  %v1093_v49 = vmul.f32 %v3446_v56, %v1051_v37  ;;  %v1060_v48 = vsel %vm397_vm1, %v4441_v35, %v4440_v63  ;;  %v811_v47 = vsel %vm397_vm1, %v799_v20, %v783_v13 }
 0x40c   :  { %v1137_v16 = vadd.f32 %v1125_v43, %v1101_v24  ;;  %v791_v30 = vpop.permute.xlu0 %790  ;;  %v927_v39 = vpop.permute.xlu1 %926  ;;  %v1210_v19 = vmul.f32 %v3547_v6, %v1186_v59  ;;  %v870_v52 = vmul.f32 %v4429_v42, %v846_v41  ;;  %v916_v29 = vadd.f32 %v3507_v50, %v868_v36  ;;  %v4444_v50 = vld [vmem:[#allocation49_spill] sm:$0xff] }
 0x40d   :  { %v953_v44 = vsel %vm946_vm8, %v927_v39, %v935_v55  ;;  %v803_v32 = vsel %vm397_vm1, %v791_v30, %v799_v20  ;;  %v1138_v18 = vadd.f32 %v3580_v28, %v1102_v38  ;;  %v1070_v34 = vsel %vm758_vm11, %v1060_v48, 0.0 }
 0x40e   :  { %v983_v43 = vsel %vm3355_vm10, %v953_v44, 0.0  ;;  %v3699_v45 = vadd.f32 %v1209_v12, %v1137_v16  ;;  %v1052_v20 = vsel %vm397_vm1, %v4444_v50, %v4441_v35  ;;  %v917_v37 = vadd.f32 %v3550_v62, %v869_v9 }
 0x40f   :  { %v1007_v31 = vmul.f32 %v3477_v1, %v983_v43  ;;  %v847_v24 = vsel %vm758_vm11, %v811_v47, 0.0  ;;  %v3727_v38 = vadd.f32 %v1210_v19, %v1138_v18  ;;  %v918_v12 = vadd.f32 %v3563_v15, %v870_v52  ;;  %v4446_v47 = vld [vmem:[#allocation55_spill] sm:$0xff] }
 0x410   :  { %v945_v59 = vpop.permute.xlu0 %944  ;;  %v943_v36 = vpop.permute.xlu1 %942  ;;  %v873_v16 = vmul.f32 %v4429_v42, %v803_v32  ;;  %v807_v35 = vsel %vm397_vm1, %v783_v13, %v791_v30  ;;  %v1056_v15 = vsel %vm397_vm1, %v4440_v63, %v4444_v50  ;;  %v4445_v42 = vld [vmem:[#allocation53_spill] sm:$0xff]  ;;  %v1211_v44 = vmul.f32 %v3517_v5, %v4446_v47 }
 0x411   :  { %v1019_v41 = vadd.f32 %v1007_v31, %v916_v29  ;;  %v949_v60 = vsel %vm946_vm8, %v935_v55, %v943_v36  ;;  %v957_v28 = vsel %vm946_vm8, %v943_v36, %v927_v39  ;;  %v1189_v25 = vsel %vm763_vm13, %v4445_v42, 0.0  ;;  %v4447_v36 = vld [vmem:[#allocation54_spill] sm:$0xff] }
 0x412   :  { %v984_v62 = vsel %vm3355_vm10, %v949_v60, 0.0  ;;  %v985_v9 = vsel %vm3709_vm4, %v957_v28, 0.0  ;;  %v871_v19 = vmul.f32 %v3397_v21, %v847_v24  ;;  %v1096_v63 = vmul.f32 %v3446_v56, %v1052_v20  ;;  %v4449_v56 = vld [vmem:[#allocation62_spill] sm:$0xff] }
 0x413   :  { %v1103_v48 = vadd.f32 %v1091_v26, %v1019_v41  ;;  %v1008_v55 = vmul.f32 %v3481_v53, %v984_v62  ;;  %v1009_v39 = vmul.f32 %v4437_v61, %v985_v9  ;;  %v872_v32 = vmul.f32 %v3346_v2, %v807_v35  ;;  %v4448_v41 = vld [vmem:[#allocation56_spill] sm:$0xff] }
 0x414   :  { %v929_v13 = vpop.permute.xlu1 %928  ;;  %v3749_v26 = vpop.permute.xlu0 %1290  ;;  %v921_v31 = vadd.f32 %v3576_v0, %v873_v16  ;;  %v1213_v24 = vmul.f32 %v3547_v6, %v1189_v25  ;;  %v1192_v2 = vsel %vm763_vm13, %v4448_v41, 0.0  ;;  %v919_v0 = vadd.f32 %v4449_v56, %v871_v19 }
 0x415   :  { %v1020_v30 = vadd.f32 %v1008_v55, %v917_v37  ;;  %v1021_v52 = vadd.f32 %v1009_v39, %v918_v12  ;;  %v958_v43 = vsel %vm946_vm8, %v945_v59, %v929_v13  ;;  %v1139_v29 = vadd.f32 %v3606_v23, %v1103_v48  ;;  %v4450_v39 = vld [vmem:[#allocation28_spill] sm:$0xff] }
 0x416   :  { %v988_v14 = vsel %vm763_vm13, %v958_v43, 0.0  ;;  %v1212_v23 = vmul.f32 %v3520_v10, %v4447_v36  ;;  %v920_v12 = vadd.f32 %v3572_v58, %v872_v32  ;;  %v1094_v35 = vmul.f32 %v3443_v8, %v1070_v34  ;;  %v4452_v8 = vld [vmem:[#allocation27_spill] sm:$0xff] }
 0x417   :  { %v1104_v21 = vadd.f32 %v1092_v33, %v1020_v30  ;;  %v1105_v18 = vadd.f32 %v1093_v49, %v1021_v52  ;;  %v1012_v50 = vmul.f32 %v4437_v61, %v988_v14  ;;  %v3760_v37 = vadd.f32 %v1211_v44, %v1139_v29 }
 0x418   :  { %v937_v20 = vpop.permute.xlu1 %936  ;;  %v1301_v60 = vpop.permute.xlu0 %1300  ;;  %v1095_v42 = vmul.f32 %v3489_v54, %v1056_v15  ;;  %v1130_v34 = vmul.f32 %v3417_v40, %v4452_v8 }
 0x419   :  { %v1024_v28 = vadd.f32 %v1012_v50, %v921_v31  ;;  %v950_v33 = vsel %vm946_vm8, %v937_v20, %v945_v59  ;;  %v954_v61 = vsel %vm946_vm8, %v929_v13, %v937_v20  ;;  %v1140_v49 = vadd.f32 %v3610_v4, %v1104_v21  ;;  %v4453_v13 = vld [vmem:[#allocation30_spill] sm:$0xff]  ;;  %v4455_v21 = vld [vmem:[#allocation57_spill] sm:$0xff] }
 0x41a   :  { %v1010_v16 = vmul.f32 %v3477_v1, %v954_v61  ;;  %v1011_v62 = vmul.f32 %v3481_v53, %v950_v33  ;;  %v1141_v9 = vadd.f32 %v3620_v22, %v1105_v18  ;;  %v1132_v59 = vmul.f32 %v3410_v17, %v4450_v39  ;;  %v4451_v1 = vld [vmem:[#allocation22_spill] sm:$0xff]  ;;  %v4460_v61 = vld [vmem:[#allocation33_spill] sm:$0xff] }
 0x41b   :  { %v1108_v48 = vadd.f32 %v1096_v63, %v1024_v28  ;;  %v3779_v55 = vadd.f32 %v1212_v23, %v1140_v49  ;;  %v697_v53 = vadd.s32 8, %v4451_v1  ;;  %v1216_v22 = vmul.f32 %v3547_v6, %v1192_v2  ;;  %v4454_v31 = vld [vmem:[#allocation58_spill] sm:$0xff]  ;;  %v4462_v39 = vld [vmem:[#allocation45_spill] sm:$0xff] }
 0x41c   :  { %v1022_v25 = vadd.f32 %v1010_v16, %v919_v0  ;;  %v1023_v4 = vadd.f32 %v1011_v62, %v920_v12  ;;  %v1293_v47 = vpop.permute.xlu1 %1292  ;;  %v1309_v58 = vpop.permute.xlu0 %1308  ;;  %v3784_v44 = vadd.f32 %v1213_v24, %v1141_v9  ;;  %v1131_v30 = vmul.f32 %v3451_v51, %v4453_v13 }
 0x41d   :  { %v1144_v19 = vadd.f32 %v1132_v59, %v1108_v48  ;;  %v711_v32 = vand.u32 15, %v697_v53  ;;  %v1214_v14 = vmul.f32 %v3517_v5, %v4454_v31  ;;  %v1215_v18 = vmul.f32 %v3520_v10, %v4455_v21  ;;  %v4463_v59 = vld [vmem:[#allocation47_spill] sm:$0xff]  ;;  %v4469_v21 = vld [vmem:[#allocation36_spill] sm:$0xff] }
 0x41e   :  { %v1106_v17 = vadd.f32 %v1094_v35, %v1022_v25  ;;  %v1107_v52 = vadd.f32 %v1095_v42, %v1023_v4  ;;  %v1408_v40 = vsub.s32 7, %v4451_v1  ;;  %v699_v50 = vadd.s32 24, %v4451_v1  ;;  %v4461_v35 = vld [vmem:[#allocation34_spill] sm:$0xff]  ;;  %v4464_v4 = vld [vmem:[#allocation32_spill] sm:$0xff]  ;;  %v4465_v53 = vld [vmem:[#allocation31_spill] sm:$0xff] }
 0x41f   :  { %v3792_v54 = vadd.f32 %v1216_v22, %v1144_v19  ;;  %v1360_v36 = vsub.s32 6, %v4451_v1  ;;  %vm3807_vm6 = vcmp.lt.s32.totalorder %v711_v32, 15  ;;  %v1323_v10 = vsel %vm397_vm1, %v1309_v58, %v1293_v47 }
 0x420   :  { %v1142_v15 = vadd.f32 %v1130_v34, %v1106_v17  ;;  %v1143_v43 = vadd.f32 %v1131_v30, %v1107_v52  ;;  %v1307_v29 = vpop.permute.xlu1 %1306  ;;  %v1299_v63 = vpop.permute.xlu0 %1298  ;;  %vm3815_vm7 = vmand %vm3807_vm6, %vm758_vm11  ;;  %v1409_v56 = vrot.slane %v3374_v57, %v1408_v40  ;;  %v1417_v0 = vrot.slane %v3342_v27, %v1408_v40 }
 0x421   :  { %v725_v20 = vand.u32 15, %v699_v50  ;;  %v1319_v28 = vsel %vm397_vm1, %v1293_v47, %v1301_v60  ;;  %v1413_v33 = vrot.slane %v3336_v11, %v1408_v40  ;;  %v1397_v49 = vsel %vm3807_vm6, %v4460_v61, 0.0  ;;  %v4470_v40 = vld [vmem:[#allocation37_spill] sm:$0xff] }
 0x422   :  { %v3800_v51 = vadd.f32 %v1214_v14, %v1142_v15  ;;  %v3802_v24 = vadd.f32 %v1215_v18, %v1143_v43  ;;  %v3830_v12 = vrot.slane %v3374_v57, %v1360_v36  ;;  %v1315_v16 = vsel %vm397_vm1, %v1301_v60, %v1309_v58  ;;  %v4468_v43 = vld [vmem:[#allocation35_spill] sm:$0xff] }
 0x423   :  { %v1399_v48 = vsel %vm3807_vm6, %v4461_v35, 0.0  ;;  %v1177_v42 = vsel %vm946_vm8, %v4463_v59, %v4462_v39  ;;  %v3842_v25 = vrot.slane %v3336_v11, %v1360_v36  ;;  %v1349_v57 = vsel %vm3815_vm7, %v1323_v10, 0.0  ;;  %v4472_v10 = vld [vmem:[#allocation41_spill] sm:$0xff] }
 0x424   :  { %v3805_v23 = vpop.permute.xlu1 %1294  ;;  %v1311_v41 = vpop.permute.xlu0 %1310  ;;  %v1398_v60 = vsel %vm3807_vm6, %v4464_v4, 0.0  ;;  %v1350_v47 = vsel %vm3807_vm6, %v1319_v28, 0.0  ;;  %v3852_v58 = vrot.slane %v3342_v27, %v1360_v36  ;;  %v1322_v1 = vsel %vm397_vm1, %v1307_v29, %v3749_v26  ;;  %v4471_v36 = vld [vmem:[#allocation39_spill] sm:$0xff]  ;;  %v4474_v4 = vld [vmem:[#allocation42_spill] sm:$0xff] }
 0x425   :  { %v3858_v11 = vmul.f32 %v1409_v56, %v4465_v53  ;;  %v1421_v22 = vmul.f32 %v1409_v56, %v1397_v49  ;;  %vm3860_vm9 = vcmp.lt.s32.totalorder %v725_v20, 15  ;;  %v1351_v8 = vsel %vm3807_vm6, %v1315_v16, 0.0  ;;  %v4473_v16 = vld [vmem:[#allocation38_spill] sm:$0xff] }
 0x426   :  { %v1423_v34 = vmul.f32 %v1417_v0, %v1399_v48  ;;  %v1183_v27 = vsel %vm763_vm13, %v1177_v42, 0.0  ;;  %v1373_v13 = vmul.f32 %v3830_v12, %v1349_v57  ;;  %v1314_v30 = vsel %vm397_vm1, %v1299_v63, %v1307_v29  ;;  %vm3928_vm10 = vmand %vm3860_vm9, %vm758_vm11 }
 0x427   :  { %v1422_v15 = vmul.f32 %v1413_v33, %v1398_v60  ;;  %v1420_v32 = vmul.f32 %v1417_v0, %v4468_v43  ;;  %v1374_v31 = vmul.f32 %v3842_v25, %v1350_v47  ;;  %v1346_v14 = vsel %vm758_vm11, %v1322_v1, 0.0  ;;  %v4475_v60 = vld [vmem:[#allocation63_spill] sm:$0xff]  ;;  %v4476_v1 = vld [vmem:[#allocation40_spill] sm:$0xff]  ;;  %vm4036_vm12 = vmand %vm3860_vm9, %vm763_vm13 }
 0x428   :  { %v1297_v62 = vpop.permute.xlu1 %1296  ;;  %v1303_v9 = vpop.permute.xlu0 %1302  ;;  %v3876_v18 = vmul.f32 %v1413_v33, %v4469_v21  ;;  %v3879_v50 = vmul.f32 %v1409_v56, %v4470_v40  ;;  %v1403_v29 = vsel %vm3860_vm9, %v4471_v36, 0.0  ;;  %v1375_v5 = vmul.f32 %v3852_v58, %v1351_v8 }
 0x429   :  { %v1405_v20 = vsel %vm3860_vm9, %v4472_v10, 0.0  ;;  %v1207_v28 = vmul.f32 %v3547_v6, %v1183_v27  ;;  %v1318_v61 = vsel %vm397_vm1, %v3749_v26, %v1299_v63  ;;  %v1372_v49 = vmul.f32 %v3852_v58, %v1314_v30 }
 0x42a   :  { %v3894_v35 = vmul.f32 %v1417_v0, %v4473_v16  ;;  %v1385_v48 = vadd.f32 %v1373_v13, %v3675_v3  ;;  %v1370_v39 = vmul.f32 %v3830_v12, %v1346_v14  ;;  %v1324_v59 = vsel %vm397_vm1, %v1311_v41, %v3805_v23 }
 0x42b   :  { %v3901_v6 = vmul.f32 %v1409_v56, %v1403_v29  ;;  %v1404_v26 = vsel %vm3860_vm9, %v4474_v4, 0.0  ;;  %v1386_v63 = vadd.f32 %v1374_v31, %v3699_v45  ;;  %v1219_v47 = vadd.f32 %v1207_v28, %v4475_v60  ;;  %v4477_v31 = vld [vmem:[#allocation64_spill] sm:$0xff]  ;;  %v4480_v28 = vld [vmem:[#allocation65_spill] sm:$0xff]  ;;  %v3963_v4 = vld [vmem:[#allocation9 + $0x20] ss:$0 sm:$0xff] }
 0x42c   :  { %v1313_v17 = vpop.permute.xlu1 %1312  ;;  %v1305_v52 = vpop.permute.xlu0 %1304  ;;  %v3909_v3 = vmul.f32 %v1413_v33, %v4476_v1  ;;  %v3911_v53 = vmul.f32 %v1417_v0, %v1405_v20  ;;  %v1387_v8 = vadd.f32 %v1375_v5, %v3727_v38  ;;  %v1371_v27 = vmul.f32 %v3842_v25, %v1318_v61 }
 0x42d   :  { %v1384_v13 = vadd.f32 %v1372_v49, %v1219_v47  ;;  %v1352_v56 = vsel %vm758_vm11, %v1324_v59, 0.0  ;;  %v1316_v30 = vsel %vm397_vm1, %v1303_v9, %v1311_v41  ;;  %v1317_v45 = vsel %vm397_vm1, %v1305_v52, %v1313_v17  ;;  %v3953_v49 = vld [vmem:[#allocation9 + $0x28] ss:$0 sm:$0xff]  ;;  %vm3973_vm11 = vmand %vm3807_vm6, %vm763_vm13 }
 0x42e   :  { %v3921_v43 = vmul.f32 %v1413_v33, %v1404_v26  ;;  %v1382_v14 = vadd.f32 %v1370_v39, %v4477_v31  ;;  %v1325_v0 = vsel %vm397_vm1, %v1313_v17, %v1297_v62  ;;  %v1433_v41 = vadd.f32 %v1421_v22, %v1385_v48 }
 0x42f   :  { %v1320_v33 = vsel %vm397_vm1, %v3805_v23, %v1303_v9  ;;  %v1321_v40 = vsel %vm397_vm1, %v1297_v62, %v1305_v52  ;;  %v1434_v5 = vadd.f32 %v1422_v15, %v1386_v63  ;;  %v1376_v10 = vmul.f32 %v3830_v12, %v1352_v56 }
 0x430   :  { %v1445_v42 = vpop.permute.xlu1 %1444  ;;  %v1443_v57 = vpop.permute.xlu0 %1442  ;;  %v1378_v20 = vmul.f32 %v3852_v58, %v1316_v30  ;;  %v1357_v17 = vsel %vm3860_vm9, %v1317_v45, 0.0  ;;  %v1383_v23 = vadd.f32 %v1371_v27, %v4480_v28  ;;  %v1432_v9 = vadd.f32 %v1420_v32, %v1384_v13  ;;  %v3959_v32 = vld [vmem:[#allocation9 + $0x18] ss:$0 sm:$0xff] }
 0x431   :  { %v1355_v62 = vsel %vm3928_vm10, %v1325_v0, 0.0  ;;  %v1435_v52 = vadd.f32 %v1423_v34, %v1387_v8  ;;  %v1377_v61 = vmul.f32 %v3842_v25, %v1320_v33  ;;  %v1356_v15 = vsel %vm3860_vm9, %v1321_v40, 0.0 }
 0x432   :  { %v1430_v39 = vadd.f32 %v3858_v11, %v1382_v14  ;;  %v1381_v59 = vmul.f32 %v3852_v58, %v1357_v17  ;;  %v1388_v60 = vadd.f32 %v1376_v10, %v3760_v37  ;;  %v1390_v47 = vadd.f32 %v1378_v20, %v3784_v44 }
 0x433   :  { %v1379_v1 = vmul.f32 %v3830_v12, %v1355_v62 }
 0x434   :  { %v1459_v21 = vpop.permute.xlu1 %1458  ;;  %v1453_v29 = vpop.permute.xlu0 %1452  ;;  %v1393_v31 = vadd.f32 %v1381_v59, %v3792_v54  ;;  %v1438_v38 = vadd.f32 %v3894_v35, %v1390_v47 }
 0x435   :  { %v1474_v36 = vsel %vm946_vm8, %v1459_v21, %v1443_v57  ;;  %v1471_v22 = vsel %vm946_vm8, %v1445_v42, %v1453_v29  ;;  %v1391_v0 = vadd.f32 %v1379_v1, %v3800_v51 }
 0x436   :  { %v1492_v16 = vsel %vm763_vm13, %v1474_v36, 0.0  ;;  %v1493_v34 = vsel %vm3807_vm6, %v1471_v22, 0.0  ;;  %v1441_v28 = vadd.f32 %v3911_v53, %v1393_v31 }
 0x437   :  { %v1516_v27 = vmul.f32 %v3953_v49, %v1492_v16  ;;  %v1517_v30 = vmul.f32 %v3959_v32, %v1493_v34  ;;  %v1439_v62 = vadd.f32 %v3901_v6, %v1391_v0 }
 0x438   :  { %v1451_v48 = vpop.permute.xlu1 %1450  ;;  %v1461_v58 = vpop.permute.xlu0 %1460 }
 0x439   :  { %v1466_v26 = vsel %vm946_vm8, %v1451_v48, %v1459_v21  ;;  %v1470_v63 = vsel %vm946_vm8, %v1443_v57, %v1451_v48  ;;  %v1467_v8 = vsel %vm946_vm8, %v1453_v29, %v1461_v58  ;;  %v1380_v57 = vmul.f32 %v3842_v25, %v1356_v15 }
 0x43a   :  { %v1475_v13 = vsel %vm946_vm8, %v1461_v58, %v1445_v42  ;;  %v1494_v56 = vsel %vm3807_vm6, %v1467_v8, 0.0  ;;  %v1514_v37 = vmul.f32 %v3959_v32, %v1470_v63  ;;  %v1515_v44 = vmul.f32 %v3963_v4, %v1466_v26 }
 0x43b   :  { %v1495_v12 = vsel %vm3973_vm11, %v1475_v13, 0.0  ;;  %v1389_v25 = vadd.f32 %v1377_v61, %v3779_v55  ;;  %v1518_v14 = vmul.f32 %v3963_v4, %v1494_v56  ;;  %v1431_v21 = vadd.f32 %v3876_v18, %v1383_v23 }
 0x43c   :  { %v1463_v45 = vpop.permute.xlu1 %1462  ;;  %v1519_v42 = vmul.f32 %v3953_v49, %v1495_v12  ;;  %v1447_v2 = vpop.permute.xlu0 %1446  ;;  %v1392_v40 = vadd.f32 %v1380_v57, %v3802_v24  ;;  %v4003_v36 = vadd.f32 %v1516_v27, %v1432_v9  ;;  %v4009_v29 = vadd.f32 %v1517_v30, %v1433_v41 }
 0x43d   :  { %v1476_v33 = vsel %vm946_vm8, %v1463_v45, %v1447_v2  ;;  %v4011_v10 = vadd.f32 %v1514_v37, %v1430_v39  ;;  %v4013_v35 = vadd.f32 %v1515_v44, %v1431_v21  ;;  %v4016_v20 = vadd.f32 %v1518_v14, %v1434_v5 }
 0x43e   :  { %v4005_v55 = vadd.f32 %v1519_v42, %v1435_v52  ;;  %v1498_v54 = vsel %vm763_vm13, %v1476_v33, 0.0  ;;  %v1436_v24 = vadd.f32 %v3879_v50, %v1388_v60  ;;  %v1437_v17 = vadd.f32 %v3909_v3, %v1389_v25 }
 0x43f   :  { %v1522_v51 = vmul.f32 %v3953_v49, %v1498_v54  ;;  %v1440_v52 = vadd.f32 %v3921_v43, %v1392_v40  ;;  %v1569_v6 = vmul.f32 %v4003_v36, %v4003_v36  ;;  %v1570_v61 = vmul.f32 %v4009_v29, %v4009_v29 }
 0x440   :  { %v1449_v18 = vpop.permute.xlu1 %1448  ;;  %v1455_v22 = vpop.permute.xlu0 %1454  ;;  %v1572_v5 = vmul.f32 %v4005_v55, %v4005_v55  ;;  %v1567_v15 = vmul.f32 %v4011_v10, %v4011_v10  ;;  %v1568_v7 = vmul.f32 %v4013_v35, %v4013_v35  ;;  %v1571_v48 = vmul.f32 %v4016_v20, %v4016_v20 }
 0x441   :  { %v4021_v23 = vadd.f32 %v1522_v51, %v1438_v38  ;;  %v1468_v41 = vsel %vm946_vm8, %v1455_v22, %v1463_v45  ;;  %v1472_v9 = vsel %vm946_vm8, %v1447_v2, %v1455_v22  ;;  %v1540_v60 = vadd.f32 %v4009_v29, %v4011_v10 }
 0x442   :  { %v1520_v50 = vmul.f32 %v3959_v32, %v1472_v9  ;;  %v1521_v3 = vmul.f32 %v3963_v4, %v1468_v41  ;;  %v1558_v47 = vadd.f32 %v4005_v55, %v4003_v36  ;;  %v1597_v1 = vadd.f32 %v1572_v5, %v1569_v6 }
 0x443   :  { %v1575_v26 = vmul.f32 %v4021_v23, %v4021_v23  ;;  %v1579_v30 = vadd.f32 %v1570_v61, %v1567_v15  ;;  %v1549_v37 = vadd.f32 %v4016_v20, %v4013_v35  ;;  %v1588_v45 = vadd.f32 %v1571_v48, %v1568_v7 }
 0x444   :  { %v1465_v16 = vpop.permute.xlu1 %1464  ;;  %v4051_v39 = vadd.f32 %v1520_v50, %v1436_v24  ;;  %v4053_v59 = vadd.f32 %v1521_v3, %v1437_v17  ;;  %v1457_v34 = vpop.permute.xlu0 %1456  ;;  %v1559_v31 = vadd.f32 %v1558_v47, %v4021_v23 }
 0x445   :  { %v1477_v43 = vsel %vm946_vm8, %v1465_v16, %v1449_v18  ;;  %v1469_v11 = vsel %vm946_vm8, %v1457_v34, %v1465_v16  ;;  %v1473_v58 = vsel %vm946_vm8, %v1449_v18, %v1457_v34 }
 0x446   :  { %v1501_v63 = vsel %vm4036_vm12, %v1477_v43, 0.0  ;;  %v1573_v8 = vmul.f32 %v4051_v39, %v4051_v39  ;;  %v1574_v57 = vmul.f32 %v4053_v59, %v4053_v59  ;;  %v1499_v13 = vsel %vm3860_vm9, %v1473_v58, 0.0 }
 0x447   :  { %v1525_v27 = vmul.f32 %v3953_v49, %v1501_v63  ;;  %v1500_v56 = vsel %vm3860_vm9, %v1469_v11, 0.0  ;;  %v1523_v44 = vmul.f32 %v3959_v32, %v1499_v13  ;;  %v1598_v49 = vadd.f32 %v1597_v1, %v1575_v26 }
 0x448   :  { %v1524_v12 = vmul.f32 %v3963_v4, %v1500_v56  ;;  %v1541_v14 = vadd.f32 %v1540_v60, %v4051_v39  ;;  %v1550_v42 = vadd.f32 %v1549_v37, %v4053_v59  ;;  %v1580_v38 = vadd.f32 %v1579_v30, %v1573_v8 }
 0x449   :  { %v4082_v25 = vadd.f32 %v1525_v27, %v1441_v28  ;;  %v4087_v19 = vadd.f32 %v1523_v44, %v1439_v62  ;;  %v1589_v0 = vadd.f32 %v1588_v45, %v1574_v57 }
 0x44a   :  { %v4089_v2 = vadd.f32 %v1524_v12, %v1440_v52 }
 0x44b   :  { %v1578_v32 = vmul.f32 %v4082_v25, %v4082_v25  ;;  %v1560_v4 = vadd.f32 %v1559_v31, %v4082_v25  ;;  %v1576_v21 = vmul.f32 %v4087_v19, %v4087_v19  ;;  %v1542_v54 = vadd.f32 %v1541_v14, %v4087_v19 }
 0x44c   :  { %v1577_v33 = vmul.f32 %v4089_v2, %v4089_v2  ;;  %v1551_v40 = vadd.f32 %v1550_v42, %v4089_v2 }
 0x44d   :  { %v1561_v51 = vrot.slane %v1560_v4, 4  ;;  %v1599_v18 = vadd.f32 %v1598_v49, %v1578_v32  ;;  %v1581_v17 = vadd.f32 %v1580_v38, %v1576_v21  ;;  %v1543_v22 = vrot.slane %v1542_v54, 4 }
 0x44e   :  { %v1552_v24 = vrot.slane %v1551_v40, 4  ;;  %v1590_v28 = vadd.f32 %v1589_v0, %v1577_v33 }
 0x44f   :  { %v1562_v41 = vadd.f32 %v1561_v51, %v1560_v4  ;;  %v1600_v9 = vrot.slane %v1599_v18, 4  ;;  %v1582_v5 = vrot.slane %v1581_v17, 4  ;;  %v1544_v50 = vadd.f32 %v1543_v22, %v1542_v54 }
 0x450   :  { %v1553_v62 = vadd.f32 %v1552_v24, %v1551_v40  ;;  %v1591_v3 = vrot.slane %v1590_v28, 4 }
 0x451   :  { %v1563_v53 = vrot.slane %v1562_v41, 2  ;;  %v1601_v52 = vadd.f32 %v1600_v9, %v1599_v18  ;;  %v1583_v61 = vadd.f32 %v1582_v5, %v1581_v17  ;;  %v1545_v15 = vrot.slane %v1544_v50, 2 }
 0x452   :  { %v1554_v6 = vrot.slane %v1553_v62, 2  ;;  %v1592_v7 = vadd.f32 %v1591_v3, %v1590_v28 }
 0x453   :  { %v1564_v16 = vadd.f32 %v1563_v53, %v1562_v41  ;;  %v1602_v48 = vrot.slane %v1601_v52, 2  ;;  %v1584_v34 = vrot.slane %v1583_v61, 2  ;;  %v1546_v26 = vadd.f32 %v1545_v15, %v1544_v50 }
 0x454   :  { %v1555_v43 = vadd.f32 %v1554_v6, %v1553_v62  ;;  %v1593_v63 = vrot.slane %v1592_v7, 2 }
 0x455   :  { %v1565_v11 = vrot.slane %v1564_v16, 1  ;;  %v1585_v60 = vadd.f32 %v1584_v34, %v1583_v61  ;;  %v1547_v1 = vrot.slane %v1546_v26, 1  ;;  %v1603_v13 = vadd.f32 %v1602_v48, %v1601_v52 }
 0x456   :  { %v1556_v58 = vrot.slane %v1555_v43, 1  ;;  %v1594_v8 = vadd.f32 %v1593_v63, %v1592_v7 }
 0x457   :  { %v1566_v47 = vadd.f32 %v1565_v11, %v1564_v16  ;;  %v1586_v27 = vrot.slane %v1585_v60, 1  ;;  %v1548_v56 = vadd.f32 %v1547_v1, %v1546_v26  ;;  %v1604_v44 = vrot.slane %v1603_v13, 1 }
 0x458   :  { %v1557_v57 = vadd.f32 %v1556_v58, %v1555_v43  ;;  %v1595_v30 = vrot.slane %v1594_v8, 1 }
 0x459   :  { %1610 = vrot.lane.b32.xlu0 %v1566_v47, %s2694_s19  ;;  %v1587_v37 = vadd.f32 %v1586_v27, %v1585_v60  ;;  %v1605_v45 = vadd.f32 %v1604_v44, %v1603_v13 }
 0x45a   :  { %1608 = vrot.lane.b32.xlu1 %v1557_v57, %s2694_s19  ;;  %v1596_v12 = vadd.f32 %v1595_v30, %v1594_v8 }
 0x45d   :  { %1606 = vrot.lane.b32.xlu0 %v1548_v56, %s2694_s19 }
 0x45e   :  { %1657 = vrot.lane.b32.xlu1 %v1587_v37, %s2694_s19 }
 0x461   :  { %1659 = vrot.lane.b32.xlu0 %v1596_v12, %s2694_s19 }
 0x462   :  { %1661 = vrot.lane.b32.xlu1 %v1605_v45, %s2694_s19 }
 0x4cb   :  { %v1611_v31 = vpop.permute.xlu0 %1610 }
 0x4cc   :  { %v1609_v49 = vpop.permute.xlu1 %1608 }
 0x4cd   :  { %v1612_v14 = vsel %vm397_vm1, %v1609_v49, %v1611_v31 }
 0x4ce   :  { %v1617_v42 = vadd.f32 %v1612_v14, %v1566_v47 }
 0x4cf   :  { %v1607_v38 = vpop.permute.xlu0 %1606 }
 0x4d0   :  { %v1658_v0 = vpop.permute.xlu1 %1657  ;;  %1622 = vrot.lane.b32.xlu0 %v1617_v42, %s2704_s7  ;;  %v1613_v32 = vsel %vm397_vm1, %v1607_v38, %v1609_v49  ;;  %v1614_v4 = vsel %vm397_vm1, %v1611_v31, %v1607_v38  ;;  %v1842_v38 = vld [vmem:[#allocation11 + $0x78] sm:$0xff] }
 0x4d1   :  { %v1615_v21 = vadd.f32 %v1614_v4, %v1548_v56  ;;  %v1616_v33 = vadd.f32 %v1613_v32, %v1557_v57  ;;  %v1874_v32 = vld [vmem:[#allocation11 + $0x178] sm:$0xff]  ;;  %v1841_v4 = vld [vmem:[#allocation11 + $0x70] sm:$0xff] }
 0x4d2   :  { %2431 = vmatprep.subr.mxu1 %v1874_v32 }
 0x4d3   :  { %1620 = vrot.lane.b32.xlu1 %v1616_v33, %s2704_s7  ;;  %v1660_v40 = vpop.permute.xlu0 %1659  ;;  %2432 = vmatpush3.msra.mxu1 %v1874_v32  ;;  %v4178_v32 = vld [vmem:[#allocation12 + $0x18] sm:$0xff]  }
 0x4d4   :  { %v1662_v54 = vpop.permute.xlu1 %1661  ;;  %1618 = vrot.lane.b32.xlu0 %v1615_v21, %s2704_s7  ;;  %v1664_v51 = vsel %vm397_vm1, %v1658_v0, %v1660_v40 }
 0x4d5   :  { %v1665_v18 = vsel %vm397_vm1, %v1662_v54, %v1658_v0  ;;  %v1667_v24 = vadd.f32 %v1664_v51, %v1596_v12  ;;  %v1663_v22 = vsel %vm397_vm1, %v1660_v40, %v1662_v54  ;;  %v1857_v0 = vld [vmem:[#allocation11 + $0xf0] sm:$0xff]  ;;  %v1840_v40 = vld [vmem:[#allocation11 + $0x68] sm:$0xff]  ;;  %v1855_v51 = vld [vmem:[#allocation11 + $0xe0] sm:$0xff] }
 0x4d6   :  { %v1666_v17 = vadd.f32 %v1665_v18, %v1587_v37  ;;  %v1668_v28 = vadd.f32 %v1663_v22, %v1605_v45  ;;  %v1872_v54 = vld [vmem:[#allocation11 + $0x168] sm:$0xff]  ;;  %v1839_v18 = vld [vmem:[#allocation11 + $0x60] sm:$0xff]  ;;  %v1838_v22 = vld [vmem:[#allocation11 + $0x58] sm:$0xff] }
 0x4d8   :  { %1669 = vrot.lane.b32.xlu1 %v1666_v17, %s2704_s7  ;;  %1671 = vrot.lane.b32.xlu0 %v1667_v24, %s2704_s7 }
 0x4dc   :  { %1673 = vrot.lane.b32.xlu1 %v1668_v28, %s2704_s7 }
 0x542   :  { %v1623_v41 = vpop.permute.xlu0 %1622 }
 0x545   :  { %v1621_v9 = vpop.permute.xlu1 %1620 }
 0x546   :  { %v1619_v62 = vpop.permute.xlu0 %1618  ;;  %v1624_v52 = vsel %vm410_vm2, %v1621_v9, %v1623_v41 }
 0x547   :  { %v1625_v5 = vsel %vm410_vm2, %v1619_v62, %v1621_v9  ;;  %v1626_v50 = vsel %vm410_vm2, %v1623_v41, %v1619_v62  ;;  %v1629_v15 = vadd.f32 %v1624_v52, %v1617_v42  ;;  %v1858_v42 = vld [vmem:[#allocation11 + $0xf8] sm:$0xff]  ;;  %v1853_v41 = vld [vmem:[#allocation11 + $0xd0] sm:$0xff]  ;;  %v1835_v52 = vld [vmem:[#allocation11 + $0x40] sm:$0xff] }
 0x548   :  { %v1627_v3 = vadd.f32 %v1626_v50, %v1615_v21  ;;  %v1628_v53 = vadd.f32 %v1625_v5, %v1616_v33  ;;  %2349 = vmatprep.subr.mxu0 %v1858_v42  ;;  %v1856_v21 = vld [vmem:[#allocation11 + $0xe8] sm:$0xff]  ;;  %v1873_v33 = vld [vmem:[#allocation11 + $0x170] sm:$0xff]  ;;  %v1843_v42 = vld [vmem:[#allocation11 + $0x80] sm:$0xff] }
 0x549   :  { %2350 = vmatpush3.msra.mxu0 %v1842_v38  ;;  %2433 = vmatprep.subr.mxu1 %v1873_v33  ;;  %v1837_v9 = vld [vmem:[#allocation11 + $0x50] sm:$0xff]  ;;  %v1852_v5 = vld [vmem:[#allocation11 + $0xc8] sm:$0xff]  ;;  %v1827_v38 = vld [vmem:[#allocation11] sm:$0xff] }
 0x54a   :  { %v1670_v6 = vpop.permute.xlu1 %1669  ;;  %1630 = vrot.lane.b32.xlu0 %v1627_v3, %s2705_s10  ;;  %1632 = vrot.lane.b32.xlu1 %v1628_v53, %s2705_s10  ;;  %v1672_v61 = vpop.permute.xlu0 %1671  ;;  %v1869_v62 = vld [vmem:[#allocation11 + $0x150] sm:$0xff]  ;;  %v1836_v50 = vld [vmem:[#allocation11 + $0x48] sm:$0xff] }
 0x54b   :  { %v1676_v7 = vsel %vm410_vm2, %v1670_v6, %v1672_v61  ;;  %2351 = vmatprep.subr.mxu0 %v1857_v0  ;;  %2434 = vmatpush3.msra.mxu1 %v1873_v33  ;;  %v1859_v0 = vld [vmem:[#allocation11 + $0x100] sm:$0xff] }
 0x54c   :  { %v1679_v43 = vadd.f32 %v1676_v7, %v1667_v24  ;;  %2352 = vmatpush3.msra.mxu0 %v1841_v4  ;;  %v1871_v24 = vld [vmem:[#allocation11 + $0x160] sm:$0xff]  ;;  %2435 = vmatprep.subr.mxu1 %v1872_v54  ;;  %v1866_v7 = vld [vmem:[#allocation11 + $0x138] sm:$0xff] }
 0x54d   :  { %2353 = vmatprep.subr.mxu0 %v1856_v21  ;;  %2436 = vmatpush3.msra.mxu1 %v1872_v54 }
 0x54e   :  { %v1674_v16 = vpop.permute.xlu1 %1673  ;;  %1634 = vrot.lane.b32.xlu0 %v1629_v15, %s2705_s10  ;;  %2354 = vmatpush3.msra.mxu0 %v1840_v40 }
 0x54f   :  { %v1677_v48 = vsel %vm410_vm2, %v1674_v16, %v1670_v6  ;;  %v1675_v26 = vsel %vm410_vm2, %v1672_v61, %v1674_v16  ;;  %2355 = vmatprep.subr.mxu0 %v1855_v51  ;;  %2437 = vmatprep.subr.mxu1 %v1871_v24  ;;  %v1867_v6 = vld [vmem:[#allocation11 + $0x140] sm:$0xff]  ;;  %v1850_v61 = vld [vmem:[#allocation11 + $0xb8] sm:$0xff]  ;;  %v1849_v16 = vld [vmem:[#allocation11 + $0xb0] sm:$0xff] }
 0x550   :  { %v1678_v34 = vadd.f32 %v1677_v48, %v1666_v17  ;;  %v1680_v63 = vadd.f32 %v1675_v26, %v1668_v28  ;;  %v1854_v17 = vld [vmem:[#allocation11 + $0xd8] sm:$0xff]  ;;  %2356 = vmatpush3.msra.mxu0 %v1839_v18  ;;  %2438 = vmatpush3.msra.mxu1 %v1871_v24  ;;  %v1833_v48 = vld [vmem:[#allocation11 + $0x30] sm:$0xff]  ;;  %v1832_v26 = vld [vmem:[#allocation11 + $0x28] sm:$0xff] }
 0x551   :  { %v1870_v28 = vld [vmem:[#allocation11 + $0x158] sm:$0xff]  ;;  %2357 = vmatprep.subr.mxu0 %v1854_v17 }
 0x552   :  { %1681 = vrot.lane.b32.xlu1 %v1678_v34, %s2705_s10  ;;  %1683 = vrot.lane.b32.xlu0 %v1679_v43, %s2705_s10 }
 0x553   :  { %2358 = vmatpush3.msra.mxu0 %v1838_v22  ;;  %2439 = vmatprep.subr.mxu1 %v1870_v28 }
 0x554   :  { %2359 = vmatprep.subr.mxu0 %v1853_v41  ;;  %2440 = vmatpush3.msra.mxu1 %v1870_v28 }
 0x555   :  { %2360 = vmatpush3.msra.mxu0 %v1837_v9  ;;  %2441 = vmatprep.subr.mxu1 %v1869_v62 }
 0x556   :  { %1685 = vrot.lane.b32.xlu1 %v1680_v63, %s2705_s10  ;;  %2361 = vmatprep.subr.mxu0 %v1852_v5 }
 0x557   :  { %2442 = vmatpush3.msra.mxu1 %v1869_v62  ;;  %2362 = vmatpush3.msra.mxu0 %v1836_v50 }
 0x5bc   :  { %v1631_v11 = vpop.permute.xlu0 %1630  ;;  %v1633_v58 = vpop.permute.xlu1 %1632 }
 0x5bd   :  { %v1637_v27 = vsel %vm423_vm3, %v1631_v11, %v1633_v58 }
 0x5be   :  { %v4156_v56 = vadd.f32 %v1637_v27, %v1628_v53  ;;  %v1851_v53 = vld [vmem:[#allocation11 + $0xc0] sm:$0xff]  ;;  %v1862_v27 = vld [vmem:[#allocation11 + $0x118] sm:$0xff] }
 0x5bf   :  { %2363 = vmatprep.subr.mxu0 %v1851_v53 }
 0x5c0   :  { %v1635_v60 = vpop.permute.xlu0 %1634  ;;  %2364 = vmatpush3.msra.mxu0 %v1835_v52 }
 0x5c1   :  { %v1636_v47 = vsel %vm423_vm3, %v1633_v58, %v1635_v60  ;;  %v1638_v1 = vsel %vm423_vm3, %v1635_v60, %v1631_v11  ;;  %2365 = vmatprep.subr.mxu0 %v1850_v61  ;;  %v1847_v11 = vld [vmem:[#allocation11 + $0xa0] sm:$0xff] }
 0x5c2   :  { %v4146_v8 = vadd.f32 %v1638_v1, %v1627_v3  ;;  %v4148_v57 = vadd.f32 %v1636_v47, %v1629_v15  ;;  %v1868_v3 = vld [vmem:[#allocation11 + $0x148] sm:$0xff]  ;;  %v1834_v15 = vld [vmem:[#allocation11 + $0x38] sm:$0xff]  ;;  %v1831_v58 = vld [vmem:[#allocation11 + $0x20] sm:$0xff] }
 0x5c3   :  { %2443 = vmatprep.subr.mxu1 %v1868_v3  ;;  %2366 = vmatpush3.msra.mxu0 %v1834_v15  ;;  %v1863_v60 = vld [vmem:[#allocation11 + $0x120] sm:$0xff]  ;;  %v1846_v47 = vld [vmem:[#allocation11 + $0x98] sm:$0xff] }
 0x5c4   :  { %v1682_v13 = vpop.permute.xlu1 %1681  ;;  %1642 = vrot.lane.b32.xlu0 %v4146_v8, %s2701_s3  ;;  %1646 = vrot.lane.b32.xlu1 %v4148_v57, %s2701_s3  ;;  %v1684_v30 = vpop.permute.xlu0 %1683  ;;  %v1830_v1 = vld [vmem:[#allocation11 + $0x18] sm:$0xff] }
 0x5c5   :  { %v1688_v49 = vsel %vm423_vm3, %v1682_v13, %v1684_v30  ;;  %2444 = vmatpush3.msra.mxu1 %v1868_v3  ;;  %2367 = vmatprep.subr.mxu0 %v1849_v16 }
 0x5c6   :  { %v4174_v14 = vadd.f32 %v1688_v49, %v1679_v43  ;;  %2445 = vmatprep.subr.mxu1 %v1867_v6  ;;  %v1865_v43 = vld [vmem:[#allocation11 + $0x130] sm:$0xff]  ;;  %2368 = vmatpush3.msra.mxu0 %v1833_v48  ;;  %v1860_v49 = vld [vmem:[#allocation11 + $0x108] sm:$0xff] }
 0x5c7   :  { %2446 = vmatpush3.msra.mxu1 %v1867_v6 }
 0x5c8   :  { %v1686_v37 = vpop.permute.xlu1 %1685  ;;  %1644 = vrot.lane.b32.xlu0 %v4156_v56, %s2701_s3  ;;  %2447 = vmatprep.subr.mxu1 %v1866_v7 }
 0x5c9   :  { %v1687_v44 = vsel %vm423_vm3, %v1684_v30, %v1686_v37  ;;  %v1689_v12 = vsel %vm423_vm3, %v1686_v37, %v1682_v13  ;;  %2448 = vmatpush3.msra.mxu1 %v1866_v7  ;;  %v1845_v13 = vld [vmem:[#allocation11 + $0x90] sm:$0xff] }
 0x5ca   :  { %v4164_v45 = vadd.f32 %v1689_v12, %v1678_v34  ;;  %v4166_v31 = vadd.f32 %v1687_v44, %v1680_v63  ;;  %v1848_v34 = vld [vmem:[#allocation11 + $0xa8] sm:$0xff]  ;;  %2449 = vmatprep.subr.mxu1 %v1865_v43  ;;  %v1829_v30 = vld [vmem:[#allocation11 + $0x10] sm:$0xff] }
 0x5cb   :  { %v1864_v63 = vld [vmem:[#allocation11 + $0x128] sm:$0xff]  ;;  %2369 = vmatprep.subr.mxu0 %v1848_v34  ;;  %2450 = vmatpush3.msra.mxu1 %v1865_v43  ;;  %v1861_v37 = vld [vmem:[#allocation11 + $0x110] sm:$0xff] }
 0x5cc   :  { %1693 = vrot.lane.b32.xlu1 %v4164_v45, %s2701_s3  ;;  %1697 = vrot.lane.b32.xlu0 %v4166_v31, %s2701_s3  ;;  %v1844_v44 = vld [vmem:[#allocation11 + $0x88] sm:$0xff] }
 0x5cd   :  { %2370 = vmatpush3.msra.mxu0 %v1832_v26  ;;  %2451 = vmatprep.subr.mxu1 %v1864_v63  ;;  %v1828_v12 = vld [vmem:[#allocation11 + $0x8] sm:$0xff] }
 0x5ce   :  { %2371 = vmatprep.subr.mxu0 %v1847_v11  ;;  %2452 = vmatpush3.msra.mxu1 %v1864_v63 }
 0x5cf   :  { %2372 = vmatpush3.msra.mxu0 %v1831_v58  ;;  %2453 = vmatprep.subr.mxu1 %v1863_v60 }
 0x5d0   :  { %1695 = vrot.lane.b32.xlu1 %v4174_v14, %s2701_s3  ;;  %2373 = vmatprep.subr.mxu0 %v1846_v47 }
 0x5d1   :  { %2454 = vmatpush3.msra.mxu1 %v1863_v60  ;;  %2374 = vmatpush3.msra.mxu0 %v1830_v1  ;;  %v1539_v1 = vld [vmem:[%s4324_s6] sm:$0x7]  ;;  %s2709_s6 = smov 32  }
 0x5d2   :  { %2455 = vmatprep.subr.mxu1 %v1862_v27  ;;  %2375 = vmatprep.subr.mxu0 %v1845_v13  ;;  %v4487_v13 = vld [vmem:[#allocation23_spill] sm:$0xff] }
 0x5d3   :  { %2456 = vmatpush3.msra.mxu1 %v1862_v27  ;;  %2376 = vmatpush3.msra.mxu0 %v1829_v30  ;;  %v1756_v30 = vrot.slane %v1538_v46, %v4487_v13 }
 0x5d4   :  { %2457 = vmatprep.subr.mxu1 %v1861_v37  ;;  %2377 = vmatprep.subr.mxu0 %v1844_v44 }
 0x5d5   :  { %2458 = vmatpush3.msra.mxu1 %v1861_v37  ;;  %2378 = vmatpush3.msra.mxu0 %v1828_v12 }
 0x5d6   :  { %2459 = vmatprep.subr.mxu1 %v1860_v49  ;;  %2379 = vmatprep.subr.mxu0 %v1843_v42 }
 0x5d7   :  { %2460 = vmatpush3.msra.mxu1 %v1860_v49  ;;  %2380 = vmatpush3.msra.mxu0 %v1827_v38 }
 0x5d8   :  { %2461 = vmatprep.subr.mxu1 %v1859_v0  ;;  %2469 = vmatprep.subr.bf16.mxu0 %v4178_v32 }
 0x5d9   :  { %2462 = vmatpush3.msra.mxu1 %v1859_v0 }
 0x636   :  { %v1647_v4 = vpop.permute.xlu1 %1646  ;;  %v1643_v21 = vpop.permute.xlu0 %1642 }
 0x637   :  { %v1650_v33 = vsel %vm436_vm5, %v1647_v4, %v1643_v21 }
 0x638   :  { %v1652_v54 = vadd.f32 %v1650_v33, %v4156_v56 }
 0x63a   :  { %v1645_v40 = vpop.permute.xlu0 %1644  ;;  %v1655_v41 = vmul.f32 0.001953125, %v1652_v54 }
 0x63b   :  { %v1648_v51 = vsel %vm436_vm5, %v1645_v40, %v1647_v4  ;;  %v1649_v18 = vsel %vm436_vm5, %v1643_v21, %v1645_v40 }
 0x63c   :  { %v1651_v24 = vadd.f32 %v1648_v51, %v4146_v8  ;;  %v1653_v17 = vadd.f32 %v1649_v18, %v4148_v57  ;;  %v1709_v3 = vmul.f32 %v1655_v41, %v1655_v41  ;;  %v1799_v51 = vrot.slane %v1539_v1, %v4487_v13 }
 0x63e   :  { %v1694_v22 = vpop.permute.xlu1 %1693  ;;  %v1698_v28 = vpop.permute.xlu0 %1697  ;;  %v1654_v5 = vmul.f32 0.001953125, %v1651_v24  ;;  %v1656_v56 = vmul.f32 0.001953125, %v1653_v17 }
 0x63f   :  { %v1701_v9 = vsel %vm436_vm5, %v1698_v28, %v1694_v22 }
 0x640   :  { %v1703_v62 = vadd.f32 %v1701_v9, %v4174_v14  ;;  %v1708_v15 = vmul.f32 %v1654_v5, %v1654_v5  ;;  %v1710_v7 = vmul.f32 %v1656_v56, %v1656_v56 }
 0x642   :  { %v1696_v50 = vpop.permute.xlu1 %1695  ;;  %v1706_v53 = vmul.f32 0.001953125, %v1703_v62 }
 0x643   :  { %v1699_v52 = vsel %vm436_vm5, %v1696_v50, %v1698_v28  ;;  %v1700_v8 = vsel %vm436_vm5, %v1694_v22, %v1696_v50 }
 0x644   :  { %v1702_v57 = vadd.f32 %v1699_v52, %v4164_v45  ;;  %v1704_v6 = vadd.f32 %v1700_v8, %v4166_v31  ;;  %v1712_v61 = vsub.f32 %v1706_v53, %v1709_v3  ;;  %v4485_v45 = vld [vmem:[#allocation25_spill] sm:$0xff]  ;;  %v4486_v31 = vld [vmem:[#allocation24_spill] sm:$0xff] }
 0x645   :  { %v1752_v11 = vrot.slane %v1538_v46, %v4485_v45  ;;  %v1721_v58 = vrot.slane %v1655_v41, %v4486_v31  ;;  %v1748_v47 = vrot.slane %v1538_v46, %v4486_v31  ;;  %v1717_v37 = vrot.slane %v1654_v5, %v4486_v31 }
 0x646   :  { %v1705_v16 = vmul.f32 0.001953125, %v1702_v57  ;;  %v1707_v14 = vmul.f32 0.001953125, %v1704_v6  ;;  %v1739_v48 = vadd.f32 1e-05, %v1712_v61  ;;  %v1725_v12 = vrot.slane %v1656_v56, %v4486_v31 }
 0x647   :  { %v1727_v49 = vsub.f32 %v4013_v35, %v1721_v58  ;;  %v1795_v38 = vrot.slane %v1539_v1, %v4485_v45  ;;  %v4215_v21 = vrot.slane %v1539_v1, %v4486_v31  ;;  %v1730_v33 = vsub.f32 %v4016_v20, %v1721_v58  ;;  %v2521_v45 = vld [vmem:[#allocation12 + $0x8] sm:$0xff]  }
 0x648   :  { %v1711_v43 = vsub.f32 %v1705_v16, %v1708_v15  ;;  %v1713_v34 = vsub.f32 %v1707_v14, %v1710_v7  ;;  %2529 = vrsqrt.f32 %v1739_v48  ;;  %v1733_v18 = vsub.f32 %v4053_v59, %v1721_v58  ;;  %v2520_v48 = vld [vmem:[#allocation12 + $0x10] sm:$0xff]  }
 0x649   :  { %v1726_v24 = vsub.f32 %v4011_v10, %v1717_v37  ;;  %v1729_v22 = vsub.f32 %v4009_v29, %v1717_v37  ;;  %v1728_v41 = vsub.f32 %v4003_v36, %v1725_v12  ;;  %v1731_v20 = vsub.f32 %v4005_v55, %v1725_v12 }
 0x64a   :  { %v1738_v26 = vadd.f32 1e-05, %v1711_v43  ;;  %v1740_v63 = vadd.f32 1e-05, %v1713_v34  ;;  %v1734_v5 = vsub.f32 %v4021_v23, %v1725_v12  ;;  %v1737_v59 = vsub.f32 %v4082_v25, %v1725_v12 }
 0x64b   :  { %v1732_v36 = vsub.f32 %v4051_v39, %v1717_v37  ;;  %v1736_v61 = vsub.f32 %v4089_v2, %v1721_v58  ;;  %v1735_v39 = vsub.f32 %v4087_v19, %v1717_v37  ;;  %v4488_v37 = vld [vmem:[#allocation20_spill] sm:$0xff] }
 0x64c   :  { %2531 = vrsqrt.f32 %v1738_v26 }
 0x64d   :  { %2533 = vrsqrt.f32 %v1740_v63 }
 0x655   :  { %v2530_v60 = vpop.eup %2529 }
 0x656   :  { %v1761_v27 = vmul.f32 %v2530_v60, %v1752_v11 }
 0x658   :  { %v1770_v42 = vrot.slane %v1761_v27, %v4486_v31 }
 0x659   :  { %v2532_v44 = vpop.eup %2531 }
 0x65a   :  { %v2534_v0 = vpop.eup %2533  ;;  %v1760_v4 = vmul.f32 %v2532_v44, %v1748_v47  ;;  %v1776_v40 = vmul.f32 %v1770_v42, %v1727_v49  ;;  %v1779_v17 = vmul.f32 %v1770_v42, %v1730_v33  ;;  %v1782_v53 = vmul.f32 %v1770_v42, %v1733_v18  ;;  %v4489_v44 = vld [vmem:[#allocation21_spill] sm:$0xff] }
 0x65b   :  { %v1762_v54 = vmul.f32 %v2534_v0, %v1756_v30  ;;  %v1785_v34 = vmul.f32 %v1770_v42, %v1736_v61 }
 0x65c   :  { %v1766_v35 = vrot.slane %v1760_v4, %v4486_v31  ;;  %v1804_v28 = vadd.f32 %v1795_v38, %v1776_v40  ;;  %v1807_v29 = vadd.f32 %v1795_v38, %v1779_v17  ;;  %v1810_v43 = vadd.f32 %v1795_v38, %v1782_v53 }
 0x65d   :  { %v1774_v9 = vrot.slane %v1762_v54, %v4486_v31  ;;  %v1813_v47 = vadd.f32 %v1795_v38, %v1785_v34 }
 0x65e   :  { %v1775_v62 = vmul.f32 %v1766_v35, %v1726_v24  ;;  %v1778_v56 = vmul.f32 %v1766_v35, %v1729_v22  ;;  %v1816_v50 = vmax.f32 %v1804_v28, 0.0  ;;  %v1781_v7 = vmul.f32 %v1766_v35, %v1732_v36 }
 0x65f   :  { %v1777_v10 = vmul.f32 %v1774_v9, %v1728_v41  ;;  %v1780_v3 = vmul.f32 %v1774_v9, %v1731_v20  ;;  %v1783_v8 = vmul.f32 %v1774_v9, %v1734_v5  ;;  %v1786_v55 = vmul.f32 %v1774_v9, %v1737_v59 }
 0x660   :  { %v1803_v52 = vadd.f32 %v4215_v21, %v1775_v62  ;;  %1939 = vmatprep.mubr.f32.mxu0 %v1816_v50  ;;  %v1806_v25 = vadd.f32 %v4215_v21, %v1778_v56  ;;  %v1819_v26 = vmax.f32 %v1807_v29, 0.0  ;;  %v1809_v11 = vadd.f32 %v4215_v21, %v1781_v7 }
 0x661   :  { %v1805_v57 = vadd.f32 %v1799_v51, %v1777_v10  ;;  %v1808_v6 = vadd.f32 %v1799_v51, %v1780_v3  ;;  %v1811_v15 = vadd.f32 %v1799_v51, %v1783_v8  ;;  %v1814_v63 = vadd.f32 %v1799_v51, %v1786_v55 }
 0x662   :  { %v1815_v23 = vmax.f32 %v1803_v52, 0.0  ;;  %v1818_v2 = vmax.f32 %v1806_v25, 0.0  ;;  %v1784_v58 = vmul.f32 %v1766_v35, %v1735_v39  ;;  %v1822_v60 = vmax.f32 %v1810_v43, 0.0 }
 0x663   :  { %v1817_v16 = vmax.f32 %v1805_v57, 0.0  ;;  %v1820_v14 = vmax.f32 %v1808_v6, 0.0  ;;  %v1823_v46 = vmax.f32 %v1811_v15, 0.0  ;;  %v1826_v1 = vmax.f32 %v1814_v63, 0.0 }
 0x664   :  { %1940 = vmatmul.mubr.f32.vlgmr.msra.gmra.mxu0 %v1815_v23  ;;  %v1821_v19 = vmax.f32 %v1809_v11, 0.0  ;;  %v1812_v27 = vadd.f32 %v4215_v21, %v1784_v58  ;;  %v1825_v13 = vmax.f32 %v1813_v47, 0.0 }
 0x665   :  { %2463 = vmatprep.mubr.f32.mxu1 %v1817_v16  ;;  %2470 = vmatpush3.bf16.msra.mxu0 %v4178_v32  ;;  %v2522_v32 = vld [vmem:[#allocation12] sm:$0xff]  }
 0x666   :  { %1944 = vmatprep.mubr.f32.mxu0 %v1819_v26  ;;  %2464 = vmatmul.mubr.f32.vlgmr.msra.gmra.mxu1 %v1820_v14  ;;  %v1824_v30 = vmax.f32 %v1812_v27, 0.0 }
 0x667   :  { %2466 = vmatprep.mubr.f32.mxu1 %v1823_v46  ;;  %2471 = vmatprep.subr.bf16.mxu0 %v2520_v48 }
 0x668   :  { %1945 = vmatmul.mubr.f32.gmra.mxu0 %v1818_v2 }
 0x669   :  { %2472 = vmatpush3.bf16.msra.mxu0 %v2520_v48  ;;  %1949 = vmatprep.mubr.f32.mxu0 %v1822_v60 }
 0x66a   :  { %2467 = vmatmul.mubr.f32.gmra.mxu1 %v1826_v1  ;;  %2473 = vmatprep.subr.bf16.mxu0 %v2521_v45 }
 0x66c   :  { %1950 = vmatmul.mubr.f32.gmra.mxu0 %v1821_v19 }
 0x66d   :  { %2474 = vmatpush3.bf16.msra.mxu0 %v2521_v45  ;;  %1954 = vmatprep.mubr.f32.mxu0 %v1825_v13 }
 0x66e   :  { %2475 = vmatprep.subr.bf16.mxu0 %v2522_v32 }
 0x670   :  { %1955 = vmatmul.mubr.f32.gmra.mxu0 %v1824_v30 }
 0x671   :  { %2476 = vmatpush3.bf16.msra.mxu0 %v2522_v32  ;;  %2477 = vmatprep.mubr.msk.bf16.mxu0 %vm212_vm0, %v4488_v37 }
 0x674   :  { %2478 = vmatmul.mubr.msk.bf16.vlgmr.msra.gmra.mxu0 %vm212_vm0, %v4489_v44 }
 0x724   :  { %v2381_v12 = vpop.f32.mrf.mxu0 }
 0x726   :  { %v2465_v49 = vpop.f32.mrf.mxu1  ;;  %v2382_v42 = vpop.f32.mrf.mxu0 }
 0x727   :  { %v2383_v21 = vadd.f32 %v2382_v42, %v2381_v12 }
 0x728   :  { %v2026_v38 = vpop.f32.mrf.mxu1  ;;  %v2384_v0 = vpop.f32.mrf.mxu0 }
 0x729   :  { %v4242_v24 = vadd.f32 %v2383_v21, %v2026_v38 }
 0x72a   :  { %v2385_v4 = vpop.f32.mrf.mxu0  ;;  %v2468_v40 = vpop.f32.mrf.mxu1 }
 0x72b   :  { %v2386_v33 = vadd.f32 %v2385_v4, %v2384_v0  ;;  %v2056_v20 = vmul.f32 %v4242_v24, %v4242_v24 }
 0x72c   :  { %v2387_v54 = vpop.f32.mrf.mxu0  ;;  %v2036_v17 = vpop.f32.mrf.mxu1 }
 0x72d   :  { %v4240_v51 = vadd.f32 %v2465_v49, %v2386_v33 }
 0x72e   :  { %v2388_v18 = vpop.f32.mrf.mxu0 }
 0x72f   :  { %v2389_v35 = vadd.f32 %v2388_v18, %v2387_v54  ;;  %v2057_v28 = vmul.f32 %v4240_v51, %v4240_v51  ;;  %v2047_v62 = vadd.f32 %v4240_v51, %v4242_v24 }
 0x730   :  { %v2390_v22 = vpop.f32.mrf.mxu0 }
 0x731   :  { %v4246_v41 = vadd.f32 %v2389_v35, %v2036_v17  ;;  %v2060_v50 = vadd.f32 %v2057_v28, %v2056_v20 }
 0x732   :  { %v2391_v9 = vpop.f32.mrf.mxu0 }
 0x733   :  { %v2058_v5 = vmul.f32 %v4246_v41, %v4246_v41  ;;  %v2392_v56 = vadd.f32 %v2391_v9, %v2390_v22  ;;  %v2048_v10 = vadd.f32 %v2047_v62, %v4246_v41 }
 0x734   :  { %v4254_v59 = vpop.f32.mrf.mxu0 }
 0x735   :  { %v4257_v3 = vadd.f32 %v2468_v40, %v2392_v56  ;;  %v2061_v52 = vadd.f32 %v2060_v50, %v2058_v5  ;;  %v2220_v16 = vmul.f32 %v4254_v59, %v4254_v59 }
 0x736   :  { %v4259_v53 = vpop.f32.mrf.mxu0 }
 0x737   :  { %v2049_v29 = vadd.f32 %v2048_v10, %v4257_v3  ;;  %v2059_v8 = vmul.f32 %v4257_v3, %v4257_v3  ;;  %v2218_v55 = vmul.f32 %v4259_v53, %v4259_v53 }
 0x738   :  { %v4264_v36 = vpop.f32.mrf.mxu0 }
 0x739   :  { %v2050_v57 = vrot.slane %v2049_v29, 4  ;;  %v2062_v6 = vadd.f32 %v2061_v52, %v2059_v8  ;;  %v2221_v26 = vmul.f32 %v4264_v36, %v4264_v36 }
 0x73a   :  { %v4268_v61 = vpop.f32.mrf.mxu0 }
 0x73b   :  { %v2209_v23 = vadd.f32 %v4268_v61, %v4259_v53  ;;  %v2219_v15 = vmul.f32 %v4268_v61, %v4268_v61  ;;  %v2051_v25 = vadd.f32 %v2050_v57, %v2049_v29  ;;  %v2063_v7 = vrot.slane %v2062_v6, 4 }
 0x73d   :  { %v2210_v14 = vadd.f32 %v4254_v59, %v2209_v23  ;;  %v2222_v48 = vadd.f32 %v2219_v15, %v2218_v55  ;;  %v2052_v43 = vrot.slane %v2051_v25, 2  ;;  %v2064_v34 = vadd.f32 %v2063_v7, %v2062_v6 }
 0x73f   :  { %v2211_v63 = vadd.f32 %v4264_v36, %v2210_v14  ;;  %v2223_v39 = vadd.f32 %v2222_v48, %v2220_v16  ;;  %v2053_v46 = vadd.f32 %v2052_v43, %v2051_v25  ;;  %v2065_v2 = vrot.slane %v2064_v34, 2 }
 0x741   :  { %v2212_v45 = vrot.slane %v2211_v63, 4  ;;  %v2224_v11 = vadd.f32 %v2223_v39, %v2221_v26  ;;  %v2054_v58 = vrot.slane %v2053_v46, 1  ;;  %v2066_v60 = vadd.f32 %v2065_v2, %v2064_v34 }
 0x743   :  { %v2213_v47 = vadd.f32 %v2212_v45, %v2211_v63  ;;  %v2225_v1 = vrot.slane %v2224_v11, 4  ;;  %v2055_v19 = vadd.f32 %v2054_v58, %v2053_v46  ;;  %v2067_v32 = vrot.slane %v2066_v60, 1 }
 0x745   :  { %2069 = vrot.lane.b32.xlu0 %v2055_v19, %s2697_s25  ;;  %v2214_v27 = vrot.slane %v2213_v47, 2  ;;  %v2226_v13 = vadd.f32 %v2225_v1, %v2224_v11  ;;  %v2068_v30 = vadd.f32 %v2067_v32, %v2066_v60  ;;  %v2045_v1 = vld [vmem:[%s4326_s8] sm:$0x1] }
 0x747   :  { %v2215_v37 = vadd.f32 %v2214_v27, %v2213_v47  ;;  %v2227_v44 = vrot.slane %v2226_v13, 2 }
 0x749   :  { %2082 = vrot.lane.b32.xlu0 %v2068_v30, %s2697_s25  ;;  %v2216_v12 = vrot.slane %v2215_v37, 1  ;;  %v2228_v49 = vadd.f32 %v2227_v44, %v2226_v13 }
 0x74b   :  { %v2217_v42 = vadd.f32 %v2216_v12, %v2215_v37  ;;  %v2229_v38 = vrot.slane %v2228_v49, 1  ;;  %v2207_v37 = vld [vmem:[%s4329_s11] sm:$0x1] }
 0x74d   :  { %2231 = vrot.lane.b32.xlu1 %v2217_v42, %s2697_s25  ;;  %v2230_v0 = vadd.f32 %v2229_v38, %v2228_v49 }
 0x751   :  { %2244 = vrot.lane.b32.xlu1 %v2230_v0, %s2697_s25 }
 0x7b7   :  { %v2070_v4 = vpop.permute.xlu0 %2069 }
 0x7b8   :  { %v2071_v21 = vadd.f32 %v2070_v4, %v2055_v19 }
 0x7ba   :  { %2072 = vrot.lane.b32.xlu0 %v2071_v21, %s2708_s5 }
 0x7bb   :  { %v2083_v33 = vpop.permute.xlu0 %2082 }
 0x7bc   :  { %v2084_v40 = vadd.f32 %v2083_v33, %v2068_v30 }
 0x7be   :  { %2085 = vrot.lane.b32.xlu0 %v2084_v40, %s2708_s5 }
 0x7bf   :  { %v2232_v54 = vpop.permute.xlu1 %2231 }
 0x7c0   :  { %v2233_v18 = vadd.f32 %v2232_v54, %v2217_v42 }
 0x7c2   :  { %2234 = vrot.lane.b32.xlu1 %v2233_v18, %s2708_s5 }
 0x7c3   :  { %v2245_v35 = vpop.permute.xlu1 %2244 }
 0x7c4   :  { %v2246_v17 = vadd.f32 %v2245_v35, %v2230_v0 }
 0x7c6   :  { %2247 = vrot.lane.b32.xlu1 %v2246_v17, %s2708_s5 }
 0x82c   :  { %v2073_v22 = vpop.permute.xlu0 %2072 }
 0x82d   :  { %v2074_v28 = vadd.f32 %v2073_v22, %v2071_v21 }
 0x82f   :  { %2075 = vrot.lane.b32.xlu0 %v2074_v28, %s2709_s6 }
 0x830   :  { %v2086_v9 = vpop.permute.xlu0 %2085 }
 0x831   :  { %v2087_v20 = vadd.f32 %v2086_v9, %v2084_v40 }
 0x833   :  { %2088 = vrot.lane.b32.xlu0 %v2087_v20, %s2709_s6 }
 0x834   :  { %v2235_v62 = vpop.permute.xlu1 %2234 }
 0x835   :  { %v2236_v5 = vadd.f32 %v2235_v62, %v2233_v18 }
 0x837   :  { %2237 = vrot.lane.b32.xlu1 %v2236_v5, %s2709_s6 }
 0x838   :  { %v2248_v56 = vpop.permute.xlu1 %2247 }
 0x839   :  { %v2249_v50 = vadd.f32 %v2248_v56, %v2246_v17 }
 0x83b   :  { %2250 = vrot.lane.b32.xlu1 %v2249_v50, %s2709_s6 }
 0x8a1   :  { %v2076_v10 = vpop.permute.xlu0 %2075 }
 0x8a2   :  { %v2077_v52 = vadd.f32 %v2076_v10, %v2074_v28 }
 0x8a4   :  { %2078 = vrot.lane.b32.xlu0 %v2077_v52, %s2701_s3 }
 0x8a5   :  { %v2089_v29 = vpop.permute.xlu0 %2088 }
 0x8a6   :  { %v2090_v8 = vadd.f32 %v2089_v29, %v2087_v20 }
 0x8a8   :  { %2091 = vrot.lane.b32.xlu0 %v2090_v8, %s2701_s3 }
 0x8a9   :  { %v2238_v57 = vpop.permute.xlu1 %2237 }
 0x8aa   :  { %v2239_v6 = vadd.f32 %v2238_v57, %v2236_v5 }
 0x8ac   :  { %2240 = vrot.lane.b32.xlu1 %v2239_v6, %s2701_s3 }
 0x8ad   :  { %v2251_v55 = vpop.permute.xlu1 %2250 }
 0x8ae   :  { %v2252_v23 = vadd.f32 %v2251_v55, %v2249_v50 }
 0x8b0   :  { %2253 = vrot.lane.b32.xlu1 %v2252_v23, %s2701_s3 }
 0x916   :  { %v2079_v15 = vpop.permute.xlu0 %2078 }
 0x917   :  { %v2080_v25 = vadd.f32 %v2079_v15, %v2077_v52 }
 0x919   :  { %v2081_v7 = vmul.f32 0.001953125, %v2080_v25 }
 0x91a   :  { %v2092_v16 = vpop.permute.xlu0 %2091 }
 0x91b   :  { %v2093_v14 = vadd.f32 %v2092_v16, %v2090_v8  ;;  %v2095_v48 = vmul.f32 %v2081_v7, %v2081_v7  ;;  %v2100_v27 = vrot.slane %v2081_v7, %v4486_v31 }
 0x91d   :  { %v2094_v43 = vmul.f32 0.001953125, %v2093_v14  ;;  %v2101_v12 = vsub.f32 %v4242_v24, %v2100_v27  ;;  %v2102_v49 = vsub.f32 %v4240_v51, %v2100_v27  ;;  %v2103_v42 = vsub.f32 %v4246_v41, %v2100_v27  ;;  %v2335_v51 = vld [vmem:[%s4327_s9] ss:$0 sm:$0xff]  ;;  %s2659_s9 = scalar_lea.vmem %s2302_s22, 512 }
 0x91e   :  { %v2241_v34 = vpop.permute.xlu1 %2240  ;;  %v2104_v38 = vsub.f32 %v4257_v3, %v2100_v27  ;;  %v2342_v41 = vld [vmem:[%s4330_s12] ss:$0 sm:$0xff]  ;;  %p2660_p2 = scmp.ne.s32.totalorder %s2302_s22, %s2659_s9  ;;  %p2665_p4 = scmp.lt.s32.totalorder %s2659_s9, %s2659_s9 }
 0x91f   :  { %v2242_v26 = vadd.f32 %v2241_v34, %v2239_v6  ;;  %v2096_v63 = vsub.f32 %v2094_v43, %v2095_v48 }
 0x920   :  { %p2666_p5 = por %p2665_p4, %p2664_p3 }
 0x921   :  { %v2105_v39 = vadd.f32 1e-05, %v2096_v63  ;;  %v2243_v46 = vmul.f32 0.001953125, %v2242_v26 }
 0x922   :  { %v2254_v2 = vpop.permute.xlu1 %2253  ;;  %p2667_p6 = pnand %p2666_p5, %p2660_p2 }
 0x923   :  { %v2255_v45 = vadd.f32 %v2254_v2, %v2252_v23  ;;  %2535 = vrsqrt.f32 %v2105_v39  ;;  %v2257_v11 = vmul.f32 %v2243_v46, %v2243_v46  ;;  %v2262_v13 = vrot.slane %v2243_v46, %v4486_v31 }
 0x925   :  { %v2256_v58 = vmul.f32 0.001953125, %v2255_v45  ;;  %v2263_v0 = vsub.f32 %v4259_v53, %v2262_v13  ;;  %v2264_v18 = vsub.f32 %v4268_v61, %v2262_v13  ;;  %v2265_v35 = vsub.f32 %v4254_v59, %v2262_v13 }
 0x926   :  { %v2266_v17 = vsub.f32 %v4264_v36, %v2262_v13 }
 0x927   :  { %v2258_v60 = vsub.f32 %v2256_v58, %v2257_v11 }
 0x929   :  { %v2267_v47 = vadd.f32 1e-05, %v2258_v60 }
 0x92b   :  { %2537 = vrsqrt.f32 %v2267_v47 }
 0x930   :  { %v2536_v19 = vpop.eup %2535 }
 0x931   :  { %v2107_v32 = vmul.f32 %v2536_v19, %v2045_v1 }
 0x933   :  { %v2111_v30 = vrot.slane %v2107_v32, %v4486_v31 }
 0x935   :  { %v2112_v21 = vmul.f32 %v2111_v30, %v2101_v12  ;;  %v2113_v33 = vmul.f32 %v2111_v30, %v2102_v49  ;;  %v2114_v40 = vmul.f32 %v2111_v30, %v2103_v42  ;;  %v2115_v54 = vmul.f32 %v2111_v30, %v2104_v38 }
 0x937   :  { %v2122_v9 = vadd.f32 %v2335_v51, %v2112_v21  ;;  %v2123_v61 = vadd.f32 %v2335_v51, %v2113_v33  ;;  %v2124_v20 = vadd.f32 %v2335_v51, %v2114_v40  ;;  %v2125_v59 = vadd.f32 %v2335_v51, %v2115_v54 }
 0x938   :  { %v2538_v44 = vpop.eup %2537 }
 0x939   :  { %v2269_v4 = vmul.f32 %v2538_v44, %v2207_v37 }
 0x93b   :  { %v2273_v24 = vrot.slane %v2269_v4, %v4486_v31 }
 0x93d   :  { %v2274_v3 = vmul.f32 %v2273_v24, %v2263_v0  ;;  %v2275_v53 = vmul.f32 %v2273_v24, %v2264_v18  ;;  %v2276_v22 = vmul.f32 %v2273_v24, %v2265_v35  ;;  %v2277_v28 = vmul.f32 %v2273_v24, %v2266_v17 }
 0x93f   :  { %v2284_v36 = vadd.f32 %v2342_v41, %v2274_v3  ;;  %v2285_v31 = vadd.f32 %v2342_v41, %v2275_v53  ;;  %v2286_v62 = vadd.f32 %v2342_v41, %v2276_v22  ;;  %v2287_v5 = vadd.f32 %v2342_v41, %v2277_v28 }
 0x941   :  { %v2288_v56 = vadd.f32 %v2284_v36, %v2122_v9  ;;  %v2289_v50 = vadd.f32 %v2285_v31, %v2123_v61  ;;  %v2290_v10 = vadd.f32 %v2286_v62, %v2124_v20  ;;  %v2291_v52 = vadd.f32 %v2287_v5, %v2125_v59 }
 0x943   :  { %2292 = vst [vmem:[#allocation14] sm:$0xff] %v2288_v56  ;;  %2293 = vst [vmem:[#allocation14 + $0x8] sm:$0xff] %v2289_v50 }
 0x944   :  { %2294 = vst [vmem:[#allocation14 + $0x10] sm:$0xff] %v2290_v10  ;;  %2295 = vst [vmem:[#allocation14 + $0x18] sm:$0xff] %v2291_v52 }
 0x945   :  { %2670 = shalt.err (!%p2667_p6)
}
 0x946   :  { %2307 = dma.vmem_to_hbm [thread:$0]  %s2302_s22, 512, %s4331_s13, [#allocation5], %s2696_s24, %s2696_s24, %s2697_s25  }
 0x947   :  { %2687 = dma.done.wait [#allocation5], 512  }
 0x948   :  { %2688 = vsyncadd [#allocation5], 4294966784 }
 0x949   :  { %2311 = vsyncpa [#allocation4], 1 }
 0x94a   :  { %2312 = vsyncpa [#allocation7], 1 }
 0x94b   :  { %2313 = vsyncpa [#allocation10], 1 }
 0x94c   :  { %2314 = vsyncpa [#allocation13], 1 }
 0x94d   :  { %2315 = vsyncpa [#allocation5], 1 }

</bundles_post_ra>
